<compile_context>
chip_gen: v5e
topology: v5e:2x2
jax: 0.10.0
libtpu: 0.0.40
codegen_flags: <defaults>
</compile_context>

<pallas_src>
import functools

import numpy as np

import jax
import jax.numpy as jnp
from jax.experimental import pallas as pl
from jax.experimental.pallas import tpu as pltpu

LEAKY_SLOPE = 0.01                          # F.leaky_relu default negative_slope
CHANNELS = [1, 4, 8, 16, 16, 16, 8, 4, 3]   # 1->4->8->16->16->16->8->4->3


# ---------------------------------------------------------------------------
# constant 0/1 resampling matrices (built once with numpy, passed as inputs)
# ---------------------------------------------------------------------------
def _lp(h, w):
    return (h + 2) * (w + 2)


def _interior_mask(h, w):
    """(1, Lp) mask: 1 at interior pixels of the padded-flat image, 0 at border."""
    m = np.zeros((1, _lp(h, w)), np.float32)
    for i in range(h):
        for j in range(w):
            m[0, (i + 1) * (w + 2) + (j + 1)] = 1.0
    return m


def _down_matrix(h, w):
    """(Lp(h,w), Lp(h//2,w//2)): stride-2 decimation of the interior pixels."""
    hd, wd = h // 2, w // 2
    m = np.zeros((_lp(h, w), _lp(hd, wd)), np.float32)
    for i in range(hd):
        for j in range(wd):
            src = (2 * i + 1) * (w + 2) + (2 * j + 1)
            dst = (i + 1) * (wd + 2) + (j + 1)
            m[src, dst] = 1.0
    return m


def _up_matrix(h, w):
    """(Lp(h,w), Lp(2h,2w)): nearest-neighbor 2x upsample of the interior pixels."""
    hu, wu = 2 * h, 2 * w
    m = np.zeros((_lp(h, w), _lp(hu, wu)), np.float32)
    for i in range(hu):
        for j in range(wu):
            src = (i // 2 + 1) * (w + 2) + (j // 2 + 1)
            dst = (i + 1) * (wu + 2) + (j + 1)
            m[src, dst] = 1.0
    return m


# ---------------------------------------------------------------------------
# in-kernel helpers (operate on traced VMEM-resident values)
# ---------------------------------------------------------------------------
def _embed_pad_flat(x, h, w):
    """(C, H*W) row-major -> (C, (H+2)*(W+2)) padded-flat with zero border."""
    c = x.shape[0]
    z_row = jnp.zeros((c, w + 2), jnp.float32)
    z_one = jnp.zeros((c, 1), jnp.float32)
    pieces = [z_row]
    for r in range(h):
        pieces.extend([z_one, x[:, r * w:(r + 1) * w], z_one])
    pieces.append(z_row)
    return jnp.concatenate(pieces, axis=1)


def _extract_interior(x, h, w):
    """(C, (H+2)*(W+2)) padded-flat -> (C, H*W) row-major interior."""
    wp = w + 2
    rows = [x[:, (r + 1) * wp + 1:(r + 1) * wp + 1 + w] for r in range(h)]
    return jnp.concatenate(rows, axis=1)


def _conv3x3_flat(x, wf, b, w_dim, activation):
    """3x3 stride-1 'same' conv on a padded-flat activation.

    x  : (Cin, Lp) f32, Lp = (H+2)*(W+2), border cells must be zero.
    wf : (Cout, 9*Cin), taps flattened (dy*3+dx)-major, Cin-minor.
    b  : (Cout, 1)
    Returns (Cout, Lp); interior positions hold the conv result, border
    positions hold don't-care values (callers mask / drop them).
    """
    cin, lp = x.shape
    cout = wf.shape[0]
    wp = w_dim + 2
    zpad = jnp.zeros((cin, wp + 1), jnp.float32)
    xw = jnp.concatenate([zpad, x, zpad], axis=1)       # (Cin, Lp + 2*(Wp+1))

    acc = jnp.zeros((cout, lp), jnp.float32)
    for dy in range(3):
        for dx in range(3):
            t = dy * 3 + dx
            start = (wp + 1) + (dy - 1) * wp + (dx - 1)
            tap = xw[:, start:start + lp]               # (Cin, Lp) shifted view
            w_t = wf[:, t * cin:(t + 1) * cin]          # (Cout, Cin)
            if cin == 1:                                # outer product on VPU
                acc = acc + w_t * tap
            else:                                       # MXU, f32 accumulate
                acc = acc + jnp.dot(w_t, tap,
                                    preferred_element_type=jnp.float32)
    acc = acc + b
    if activation == "leaky_relu":
        acc = jnp.where(acc >= 0, acc, LEAKY_SLOPE * acc)
    else:  # sigmoid
        acc = 1.0 / (1.0 + jnp.exp(-acc))
    return acc


# ---------------------------------------------------------------------------
# fused autoencoder kernel (one grid step = one image)
# ---------------------------------------------------------------------------
def _ae_kernel(x_ref,
               wr1, br1, wr2, br2, wr3, br3, wr4, br4,
               wr5, br5, wr6, br6, wr7, br7, wr8, br8,
               m0_ref, d01_ref, d12_ref, d23_ref,
               u32_ref, u21_ref, u10_ref,
               o_ref, *, height, width):
    f32 = jnp.float32
    h0, w0 = height, width
    w1_, w2_ = w0 // 2, w0 // 4

    x = x_ref[0].astype(f32)                               # (1, H*W)
    h = _embed_pad_flat(x, h0, w0)                         # (1, Lp0), zero border
    m0 = m0_ref[...]                                       # (1, Lp0)

    # conv1: 1 -> 4   (same, HxW)
    h = _conv3x3_flat(h, wr1[...], br1[...], w0, "leaky_relu") * m0
    # conv2: 4 -> 8   (stride 2 -> H/2 x W/2): same-conv then constant decimation
    h = jnp.dot(_conv3x3_flat(h, wr2[...], br2[...], w0, "leaky_relu"),
                d01_ref[...], preferred_element_type=f32)
    # conv3: 8 -> 16  (stride 2 -> H/4 x W/4)
    h = jnp.dot(_conv3x3_flat(h, wr3[...], br3[...], w1_, "leaky_relu"),
                d12_ref[...], preferred_element_type=f32)
    # conv4: 16 -> 16 (stride 2 -> H/8 x W/8)
    h = jnp.dot(_conv3x3_flat(h, wr4[...], br4[...], w2_, "leaky_relu"),
                d23_ref[...], preferred_element_type=f32)
    # conv5: 16 -> 16 (nearest x2 -> H/4 x W/4, then same conv)
    h = jnp.dot(h, u32_ref[...], preferred_element_type=f32)
    h = _conv3x3_flat(h, wr5[...], br5[...], w2_, "leaky_relu")
    # conv6: 16 -> 8  (nearest x2 -> H/2 x W/2, then same conv)
    h = jnp.dot(h, u21_ref[...], preferred_element_type=f32)
    h = _conv3x3_flat(h, wr6[...], br6[...], w1_, "leaky_relu")
    # conv7: 8 -> 4   (nearest x2 -> H x W, then same conv)
    h = jnp.dot(h, u10_ref[...], preferred_element_type=f32)
    h = _conv3x3_flat(h, wr7[...], br7[...], w0, "leaky_relu") * m0
    # conv8: 4 -> 3   (same, HxW) + sigmoid
    y = _conv3x3_flat(h, wr8[...], br8[...], w0, "sigmoid")

    y = _extract_interior(y, h0, w0)                       # (3, H*W) lane-dense
    o_ref[...] = y[None, :, :].astype(o_ref.dtype)


# ---------------------------------------------------------------------------
# wrapper
# ---------------------------------------------------------------------------
def make_colorization_ae(height, width):
    """Builds the fused forward pass for a given image size (H, W % 8 == 0)."""
    assert height % 8 == 0 and width % 8 == 0, "3 stride-2 stages need /8 dims"
    hw = height * width

    consts = tuple(jnp.asarray(c) for c in (
        _interior_mask(height, width),
        _down_matrix(height, width),
        _down_matrix(height // 2, width // 2),
        _down_matrix(height // 4, width // 4),
        _up_matrix(height // 8, width // 8),
        _up_matrix(height // 4, width // 4),
        _up_matrix(height // 2, width // 2),
    ))

    kernel = functools.partial(_ae_kernel, height=height, width=width)

    def _full_block(arr):
        nd = arr.ndim
        return pl.BlockSpec(arr.shape, lambda i, _nd=nd: (0,) * _nd)

    @jax.jit
    def forward(packed_params, x_nchw):
        n = x_nchw.shape[0]
        x_flat = x_nchw.reshape(n, 1, hw)                  # free, contiguous

        flat = [x_flat]
        for wf, b in packed_params:
            flat.extend([wf, b])
        flat.extend(consts)

        in_specs = [pl.BlockSpec((1, 1, hw), lambda i: (i, 0, 0))]
        in_specs += [_full_block(a) for a in flat[1:]]

        out = pl.pallas_call(
            kernel,
            out_shape=jax.ShapeDtypeStruct((n, 3, hw), x_nchw.dtype),
            grid=(n,),
            in_specs=in_specs,
            out_specs=pl.BlockSpec((1, 3, hw), lambda i: (i, 0, 0)),
            compiler_params=pltpu.CompilerParams(
                dimension_semantics=("parallel",)),
        )(*flat)
        return out.reshape(n, 3, height, width)            # free, contiguous

    return forward


# ---------------------------------------------------------------------------
# parameters (deterministic synthetic weights, PyTorch Conv2d layout)
# ---------------------------------------------------------------------------
def init_params(key):
    params = []
    for cin, cout in zip(CHANNELS[:-1], CHANNELS[1:]):
        key, wk, bk = jax.random.split(key, 3)
        bound = 1.0 / float(np.sqrt(cin * 9))
        w = jax.random.uniform(wk, (cout, cin, 3, 3), jnp.float32, -bound, bound)
        b = jax.random.uniform(bk, (cout,), jnp.float32, -bound, bound)
        params.append((w, b))
    return params


def pack_params(params):
    """PyTorch-layout params -> kernel layout: w (Cout, 9*Cin), b (Cout, 1)."""
    packed = []
    for w, b in params:
        cout, cin = w.shape[0], w.shape[1]
        wf = jnp.transpose(w, (0, 2, 3, 1)).reshape(cout, 9 * cin)
        packed.append((wf, b.reshape(cout, 1)))
    return packed


# ---------------------------------------------------------------------------
# pure-XLA reference of the same (assumed) module, for a numerical check
# ---------------------------------------------------------------------------
def _reference_forward(params, x_nchw):
    def conv(x, w, b, stride):
        y = jax.lax.conv_general_dilated(
            x, w, window_strides=(stride, stride), padding=((1, 1), (1, 1)),
            dimension_numbers=("NCHW", "OIHW", "NCHW"),
            precision=jax.lax.Precision.HIGHEST)
        return y + b[None, :, None, None]

    def lrelu(v):
        return jnp.where(v >= 0, v, LEAKY_SLOPE * v)

    def up2(v):
        return jnp.repeat(jnp.repeat(v, 2, axis=2), 2, axis=3)

    h = lrelu(conv(x_nchw, *params[0], 1))
    h = lrelu(conv(h, *params[1], 2))
    h = lrelu(conv(h, *params[2], 2))
    h = lrelu(conv(h, *params[3], 2))
    h = lrelu(conv(up2(h), *params[4], 1))
    h = lrelu(conv(up2(h), *params[5], 1))
    h = lrelu(conv(up2(h), *params[6], 1))
    z = conv(h, *params[7], 1)
    return 1.0 / (1.0 + jnp.exp(-z))


if __name__ == "__main__":
    key = jax.random.PRNGKey(0)
    xkey, pkey = jax.random.split(key)
    # grayscale input, NCHW like PyTorch: (batch=2, channels=1, 16, 16)
    x = jax.random.normal(xkey, (2, 1, 16, 16), jnp.float32)
    params = init_params(pkey)
    packed = pack_params(params)

    forward = make_colorization_ae(16, 16)
    y = jax.block_until_ready(forward(packed, x))

    assert y.shape == (2, 3, 16, 16), y.shape
    assert y.dtype == jnp.float32
    assert bool(jnp.all(jnp.isfinite(y)))
    assert bool(jnp.all((y >= 0.0) & (y <= 1.0)))          # sigmoid output range

    # numerical check vs. a pure-XLA reference of the same (assumed) module
    y_ref = jax.block_until_ready(_reference_forward(params, x))
    max_err = float(jnp.max(jnp.abs(y - y_ref)))
    assert max_err < 5e-3, f"mismatch vs reference: {max_err}"

    print("KERNEL_OK")
</pallas_src>

<mosaic_0001>
module attributes {stable_mosaic.version = 11 : i64} {
  func.func @_ae_kernel(%arg0: i32, %arg1: memref<1x1x256xf32, #tpu.memory_space<vmem>>, %arg2: memref<4x9xf32, #tpu.memory_space<vmem>>, %arg3: memref<4x1xf32, #tpu.memory_space<vmem>>, %arg4: memref<8x36xf32, #tpu.memory_space<vmem>>, %arg5: memref<8x1xf32, #tpu.memory_space<vmem>>, %arg6: memref<16x72xf32, #tpu.memory_space<vmem>>, %arg7: memref<16x1xf32, #tpu.memory_space<vmem>>, %arg8: memref<16x144xf32, #tpu.memory_space<vmem>>, %arg9: memref<16x1xf32, #tpu.memory_space<vmem>>, %arg10: memref<16x144xf32, #tpu.memory_space<vmem>>, %arg11: memref<16x1xf32, #tpu.memory_space<vmem>>, %arg12: memref<8x144xf32, #tpu.memory_space<vmem>>, %arg13: memref<8x1xf32, #tpu.memory_space<vmem>>, %arg14: memref<4x72xf32, #tpu.memory_space<vmem>>, %arg15: memref<4x1xf32, #tpu.memory_space<vmem>>, %arg16: memref<3x36xf32, #tpu.memory_space<vmem>>, %arg17: memref<3x1xf32, #tpu.memory_space<vmem>>, %arg18: memref<1x324xf32, #tpu.memory_space<vmem>>, %arg19: memref<324x100xf32, #tpu.memory_space<vmem>>, %arg20: memref<100x36xf32, #tpu.memory_space<vmem>>, %arg21: memref<36x16xf32, #tpu.memory_space<vmem>>, %arg22: memref<16x36xf32, #tpu.memory_space<vmem>>, %arg23: memref<36x100xf32, #tpu.memory_space<vmem>>, %arg24: memref<100x324xf32, #tpu.memory_space<vmem>>, %arg25: memref<1x3x256xf32, #tpu.memory_space<vmem>>) attributes {dimension_semantics = [#tpu.dimension_semantics<parallel>], iteration_bounds = array<i64: 2>, scalar_prefetch = 0 : i64, scratch_operands = 0 : i64, tpu.core_type = #tpu.core_type<tc>, window_params = [{transform_indices = @transform_0, window_bounds = array<i64: 1, 1, 256>}, {pipeline_mode = #tpu.pipeline_mode<synchronous>, transform_indices = @transform_1, window_bounds = array<i64: 4, 9>}, {pipeline_mode = #tpu.pipeline_mode<synchronous>, transform_indices = @transform_2, window_bounds = array<i64: 4, 1>}, {pipeline_mode = #tpu.pipeline_mode<synchronous>, transform_indices = @transform_3, window_bounds = array<i64: 8, 36>}, {pipeline_mode = #tpu.pipeline_mode<synchronous>, transform_indices = @transform_4, window_bounds = array<i64: 8, 1>}, {pipeline_mode = #tpu.pipeline_mode<synchronous>, transform_indices = @transform_5, window_bounds = array<i64: 16, 72>}, {pipeline_mode = #tpu.pipeline_mode<synchronous>, transform_indices = @transform_6, window_bounds = array<i64: 16, 1>}, {pipeline_mode = #tpu.pipeline_mode<synchronous>, transform_indices = @transform_7, window_bounds = array<i64: 16, 144>}, {pipeline_mode = #tpu.pipeline_mode<synchronous>, transform_indices = @transform_8, window_bounds = array<i64: 16, 1>}, {pipeline_mode = #tpu.pipeline_mode<synchronous>, transform_indices = @transform_9, window_bounds = array<i64: 16, 144>}, {pipeline_mode = #tpu.pipeline_mode<synchronous>, transform_indices = @transform_10, window_bounds = array<i64: 16, 1>}, {pipeline_mode = #tpu.pipeline_mode<synchronous>, transform_indices = @transform_11, window_bounds = array<i64: 8, 144>}, {pipeline_mode = #tpu.pipeline_mode<synchronous>, transform_indices = @transform_12, window_bounds = array<i64: 8, 1>}, {pipeline_mode = #tpu.pipeline_mode<synchronous>, transform_indices = @transform_13, window_bounds = array<i64: 4, 72>}, {pipeline_mode = #tpu.pipeline_mode<synchronous>, transform_indices = @transform_14, window_bounds = array<i64: 4, 1>}, {pipeline_mode = #tpu.pipeline_mode<synchronous>, transform_indices = @transform_15, window_bounds = array<i64: 3, 36>}, {pipeline_mode = #tpu.pipeline_mode<synchronous>, transform_indices = @transform_16, window_bounds = array<i64: 3, 1>}, {pipeline_mode = #tpu.pipeline_mode<synchronous>, transform_indices = @transform_17, window_bounds = array<i64: 1, 324>}, {pipeline_mode = #tpu.pipeline_mode<synchronous>, transform_indices = @transform_18, window_bounds = array<i64: 324, 100>}, {pipeline_mode = #tpu.pipeline_mode<synchronous>, transform_indices = @transform_19, window_bounds = array<i64: 100, 36>}, {pipeline_mode = #tpu.pipeline_mode<synchronous>, transform_indices = @transform_20, window_bounds = array<i64: 36, 16>}, {pipeline_mode = #tpu.pipeline_mode<synchronous>, transform_indices = @transform_21, window_bounds = array<i64: 16, 36>}, {pipeline_mode = #tpu.pipeline_mode<synchronous>, transform_indices = @transform_22, window_bounds = array<i64: 36, 100>}, {pipeline_mode = #tpu.pipeline_mode<synchronous>, transform_indices = @transform_23, window_bounds = array<i64: 100, 324>}, {transform_indices = @transform_24, window_bounds = array<i64: 1, 3, 256>}]} {
    %c0 = arith.constant 0 : index
    %c0_0 = arith.constant 0 : index
    %c0_1 = arith.constant 0 : index
    %0 = vector.load %arg1[%c0, %c0_0, %c0_1] : memref<1x1x256xf32, #tpu.memory_space<vmem>>, vector<1x1x256xf32>
    %1 = vector.shape_cast %0 : vector<1x1x256xf32> to vector<1x256xf32>
    %cst = arith.constant 0.000000e+00 : f32
    %2 = vector.broadcast %cst : f32 to vector<1x18xf32>
    %cst_2 = arith.constant 0.000000e+00 : f32
    %3 = vector.broadcast %cst_2 : f32 to vector<1x1xf32>
    %4 = vector.extract_strided_slice %1 {offsets = [0, 0], sizes = [1, 16], strides = [1, 1]} : vector<1x256xf32> to vector<1x16xf32>
    %5 = vector.extract_strided_slice %1 {offsets = [0, 16], sizes = [1, 16], strides = [1, 1]} : vector<1x256xf32> to vector<1x16xf32>
    %6 = vector.extract_strided_slice %1 {offsets = [0, 32], sizes = [1, 16], strides = [1, 1]} : vector<1x256xf32> to vector<1x16xf32>
    %7 = vector.extract_strided_slice %1 {offsets = [0, 48], sizes = [1, 16], strides = [1, 1]} : vector<1x256xf32> to vector<1x16xf32>
    %8 = vector.extract_strided_slice %1 {offsets = [0, 64], sizes = [1, 16], strides = [1, 1]} : vector<1x256xf32> to vector<1x16xf32>
    %9 = vector.extract_strided_slice %1 {offsets = [0, 80], sizes = [1, 16], strides = [1, 1]} : vector<1x256xf32> to vector<1x16xf32>
    %10 = vector.extract_strided_slice %1 {offsets = [0, 96], sizes = [1, 16], strides = [1, 1]} : vector<1x256xf32> to vector<1x16xf32>
    %11 = vector.extract_strided_slice %1 {offsets = [0, 112], sizes = [1, 16], strides = [1, 1]} : vector<1x256xf32> to vector<1x16xf32>
    %12 = vector.extract_strided_slice %1 {offsets = [0, 128], sizes = [1, 16], strides = [1, 1]} : vector<1x256xf32> to vector<1x16xf32>
    %13 = vector.extract_strided_slice %1 {offsets = [0, 144], sizes = [1, 16], strides = [1, 1]} : vector<1x256xf32> to vector<1x16xf32>
    %14 = vector.extract_strided_slice %1 {offsets = [0, 160], sizes = [1, 16], strides = [1, 1]} : vector<1x256xf32> to vector<1x16xf32>
    %15 = vector.extract_strided_slice %1 {offsets = [0, 176], sizes = [1, 16], strides = [1, 1]} : vector<1x256xf32> to vector<1x16xf32>
    %16 = vector.extract_strided_slice %1 {offsets = [0, 192], sizes = [1, 16], strides = [1, 1]} : vector<1x256xf32> to vector<1x16xf32>
    %17 = vector.extract_strided_slice %1 {offsets = [0, 208], sizes = [1, 16], strides = [1, 1]} : vector<1x256xf32> to vector<1x16xf32>
    %18 = vector.extract_strided_slice %1 {offsets = [0, 224], sizes = [1, 16], strides = [1, 1]} : vector<1x256xf32> to vector<1x16xf32>
    %19 = vector.extract_strided_slice %1 {offsets = [0, 240], sizes = [1, 16], strides = [1, 1]} : vector<1x256xf32> to vector<1x16xf32>
    %20 = tpu.concatenate %2, %3, %4, %3, %3, %5, %3, %3, %6, %3, %3, %7, %3, %3, %8, %3 in 1 : vector<1x18xf32>, vector<1x1xf32>, vector<1x16xf32>, vector<1x1xf32>, vector<1x1xf32>, vector<1x16xf32>, vector<1x1xf32>, vector<1x1xf32>, vector<1x16xf32>, vector<1x1xf32>, vector<1x1xf32>, vector<1x16xf32>, vector<1x1xf32>, vector<1x1xf32>, vector<1x16xf32>, vector<1x1xf32> -> vector<1x108xf32>
    %21 = tpu.concatenate %3, %9, %3, %3, %10, %3, %3, %11, %3, %3, %12, %3, %3, %13, %3, %3 in 1 : vector<1x1xf32>, vector<1x16xf32>, vector<1x1xf32>, vector<1x1xf32>, vector<1x16xf32>, vector<1x1xf32>, vector<1x1xf32>, vector<1x16xf32>, vector<1x1xf32>, vector<1x1xf32>, vector<1x16xf32>, vector<1x1xf32>, vector<1x1xf32>, vector<1x16xf32>, vector<1x1xf32>, vector<1x1xf32> -> vector<1x91xf32>
    %22 = tpu.concatenate %14, %3, %3, %15, %3, %3, %16, %3, %3, %17, %3, %3, %18, %3, %3, %19 in 1 : vector<1x16xf32>, vector<1x1xf32>, vector<1x1xf32>, vector<1x16xf32>, vector<1x1xf32>, vector<1x1xf32>, vector<1x16xf32>, vector<1x1xf32>, vector<1x1xf32>, vector<1x16xf32>, vector<1x1xf32>, vector<1x1xf32>, vector<1x16xf32>, vector<1x1xf32>, vector<1x1xf32>, vector<1x16xf32> -> vector<1x106xf32>
    %23 = tpu.concatenate %3, %2 in 1 : vector<1x1xf32>, vector<1x18xf32> -> vector<1x19xf32>
    %24 = tpu.concatenate %20, %21, %22, %23 in 1 : vector<1x108xf32>, vector<1x91xf32>, vector<1x106xf32>, vector<1x19xf32> -> vector<1x324xf32>
    %c0_3 = arith.constant 0 : index
    %c0_4 = arith.constant 0 : index
    %25 = vector.load %arg18[%c0_3, %c0_4] : memref<1x324xf32, #tpu.memory_space<vmem>>, vector<1x324xf32>
    %c0_5 = arith.constant 0 : index
    %c0_6 = arith.constant 0 : index
    %26 = vector.load %arg2[%c0_5, %c0_6] : memref<4x9xf32, #tpu.memory_space<vmem>>, vector<4x9xf32>
    %c0_7 = arith.constant 0 : index
    %c0_8 = arith.constant 0 : index
    %27 = vector.load %arg3[%c0_7, %c0_8] : memref<4x1xf32, #tpu.memory_space<vmem>>, vector<4x1xf32>
    %cst_9 = arith.constant 0.000000e+00 : f32
    %28 = vector.broadcast %cst_9 : f32 to vector<1x19xf32>
    %29 = tpu.concatenate %28, %24, %28 in 1 : vector<1x19xf32>, vector<1x324xf32>, vector<1x19xf32> -> vector<1x362xf32>
    %cst_10 = arith.constant 0.000000e+00 : f32
    %30 = vector.broadcast %cst_10 : f32 to vector<4x324xf32>
    %31 = vector.extract_strided_slice %29 {offsets = [0, 0], sizes = [1, 324], strides = [1, 1]} : vector<1x362xf32> to vector<1x324xf32>
    %32 = vector.extract_strided_slice %26 {offsets = [0, 0], sizes = [4, 1], strides = [1, 1]} : vector<4x9xf32> to vector<4x1xf32>
    %33 = vector.broadcast %32 : vector<4x1xf32> to vector<4x324xf32>
    %34 = vector.broadcast %31 : vector<1x324xf32> to vector<4x324xf32>
    %35 = arith.mulf %33, %34 : vector<4x324xf32>
    %36 = arith.addf %30, %35 : vector<4x324xf32>
    %37 = vector.extract_strided_slice %29 {offsets = [0, 1], sizes = [1, 324], strides = [1, 1]} : vector<1x362xf32> to vector<1x324xf32>
    %38 = vector.extract_strided_slice %26 {offsets = [0, 1], sizes = [4, 1], strides = [1, 1]} : vector<4x9xf32> to vector<4x1xf32>
    %39 = vector.broadcast %38 : vector<4x1xf32> to vector<4x324xf32>
    %40 = vector.broadcast %37 : vector<1x324xf32> to vector<4x324xf32>
    %41 = arith.mulf %39, %40 : vector<4x324xf32>
    %42 = arith.addf %36, %41 : vector<4x324xf32>
    %43 = vector.extract_strided_slice %29 {offsets = [0, 2], sizes = [1, 324], strides = [1, 1]} : vector<1x362xf32> to vector<1x324xf32>
    %44 = vector.extract_strided_slice %26 {offsets = [0, 2], sizes = [4, 1], strides = [1, 1]} : vector<4x9xf32> to vector<4x1xf32>
    %45 = vector.broadcast %44 : vector<4x1xf32> to vector<4x324xf32>
    %46 = vector.broadcast %43 : vector<1x324xf32> to vector<4x324xf32>
    %47 = arith.mulf %45, %46 : vector<4x324xf32>
    %48 = arith.addf %42, %47 : vector<4x324xf32>
    %49 = vector.extract_strided_slice %29 {offsets = [0, 18], sizes = [1, 324], strides = [1, 1]} : vector<1x362xf32> to vector<1x324xf32>
    %50 = vector.extract_strided_slice %26 {offsets = [0, 3], sizes = [4, 1], strides = [1, 1]} : vector<4x9xf32> to vector<4x1xf32>
    %51 = vector.broadcast %50 : vector<4x1xf32> to vector<4x324xf32>
    %52 = vector.broadcast %49 : vector<1x324xf32> to vector<4x324xf32>
    %53 = arith.mulf %51, %52 : vector<4x324xf32>
    %54 = arith.addf %48, %53 : vector<4x324xf32>
    %55 = vector.extract_strided_slice %29 {offsets = [0, 19], sizes = [1, 324], strides = [1, 1]} : vector<1x362xf32> to vector<1x324xf32>
    %56 = vector.extract_strided_slice %26 {offsets = [0, 4], sizes = [4, 1], strides = [1, 1]} : vector<4x9xf32> to vector<4x1xf32>
    %57 = vector.broadcast %56 : vector<4x1xf32> to vector<4x324xf32>
    %58 = vector.broadcast %55 : vector<1x324xf32> to vector<4x324xf32>
    %59 = arith.mulf %57, %58 : vector<4x324xf32>
    %60 = arith.addf %54, %59 : vector<4x324xf32>
    %61 = vector.extract_strided_slice %29 {offsets = [0, 20], sizes = [1, 324], strides = [1, 1]} : vector<1x362xf32> to vector<1x324xf32>
    %62 = vector.extract_strided_slice %26 {offsets = [0, 5], sizes = [4, 1], strides = [1, 1]} : vector<4x9xf32> to vector<4x1xf32>
    %63 = vector.broadcast %62 : vector<4x1xf32> to vector<4x324xf32>
    %64 = vector.broadcast %61 : vector<1x324xf32> to vector<4x324xf32>
    %65 = arith.mulf %63, %64 : vector<4x324xf32>
    %66 = arith.addf %60, %65 : vector<4x324xf32>
    %67 = vector.extract_strided_slice %29 {offsets = [0, 36], sizes = [1, 324], strides = [1, 1]} : vector<1x362xf32> to vector<1x324xf32>
    %68 = vector.extract_strided_slice %26 {offsets = [0, 6], sizes = [4, 1], strides = [1, 1]} : vector<4x9xf32> to vector<4x1xf32>
    %69 = vector.broadcast %68 : vector<4x1xf32> to vector<4x324xf32>
    %70 = vector.broadcast %67 : vector<1x324xf32> to vector<4x324xf32>
    %71 = arith.mulf %69, %70 : vector<4x324xf32>
    %72 = arith.addf %66, %71 : vector<4x324xf32>
    %73 = vector.extract_strided_slice %29 {offsets = [0, 37], sizes = [1, 324], strides = [1, 1]} : vector<1x362xf32> to vector<1x324xf32>
    %74 = vector.extract_strided_slice %26 {offsets = [0, 7], sizes = [4, 1], strides = [1, 1]} : vector<4x9xf32> to vector<4x1xf32>
    %75 = vector.broadcast %74 : vector<4x1xf32> to vector<4x324xf32>
    %76 = vector.broadcast %73 : vector<1x324xf32> to vector<4x324xf32>
    %77 = arith.mulf %75, %76 : vector<4x324xf32>
    %78 = arith.addf %72, %77 : vector<4x324xf32>
    %79 = vector.extract_strided_slice %29 {offsets = [0, 38], sizes = [1, 324], strides = [1, 1]} : vector<1x362xf32> to vector<1x324xf32>
    %80 = vector.extract_strided_slice %26 {offsets = [0, 8], sizes = [4, 1], strides = [1, 1]} : vector<4x9xf32> to vector<4x1xf32>
    %81 = vector.broadcast %80 : vector<4x1xf32> to vector<4x324xf32>
    %82 = vector.broadcast %79 : vector<1x324xf32> to vector<4x324xf32>
    %83 = arith.mulf %81, %82 : vector<4x324xf32>
    %84 = arith.addf %78, %83 : vector<4x324xf32>
    %85 = vector.broadcast %27 : vector<4x1xf32> to vector<4x324xf32>
    %86 = arith.addf %84, %85 : vector<4x324xf32>
    %cst_11 = arith.constant 0.000000e+00 : f32
    %87 = vector.broadcast %cst_11 : f32 to vector<4x324xf32>
    %88 = arith.cmpf oge, %86, %87 : vector<4x324xf32>
    %cst_12 = arith.constant 0.00999999977 : f32
    %89 = vector.broadcast %cst_12 : f32 to vector<4x324xf32>
    %90 = arith.mulf %89, %86 : vector<4x324xf32>
    %91 = arith.select %88, %86, %90 : vector<4x324xi1>, vector<4x324xf32>
    %92 = vector.broadcast %25 : vector<1x324xf32> to vector<4x324xf32>
    %93 = arith.mulf %91, %92 : vector<4x324xf32>
    %c0_13 = arith.constant 0 : index
    %c0_14 = arith.constant 0 : index
    %94 = vector.load %arg4[%c0_13, %c0_14] : memref<8x36xf32, #tpu.memory_space<vmem>>, vector<8x36xf32>
    %c0_15 = arith.constant 0 : index
    %c0_16 = arith.constant 0 : index
    %95 = vector.load %arg5[%c0_15, %c0_16] : memref<8x1xf32, #tpu.memory_space<vmem>>, vector<8x1xf32>
    %cst_17 = arith.constant 0.000000e+00 : f32
    %96 = vector.broadcast %cst_17 : f32 to vector<4x19xf32>
    %97 = tpu.concatenate %96, %93, %96 in 1 : vector<4x19xf32>, vector<4x324xf32>, vector<4x19xf32> -> vector<4x362xf32>
    %cst_18 = arith.constant 0.000000e+00 : f32
    %98 = vector.broadcast %cst_18 : f32 to vector<8x324xf32>
    %99 = vector.extract_strided_slice %97 {offsets = [0, 0], sizes = [4, 324], strides = [1, 1]} : vector<4x362xf32> to vector<4x324xf32>
    %100 = vector.extract_strided_slice %94 {offsets = [0, 0], sizes = [8, 4], strides = [1, 1]} : vector<8x36xf32> to vector<8x4xf32>
    %cst_19 = arith.constant dense<0.000000e+00> : vector<8x324xf32>
    %101 = tpu.matmul %100, %99, %cst_19 {dimension_numbers = #tpu.dot_dimension_numbers<[1], [0], [0], [1], [0, 0, 1, 1], [], []>} : vector<8x4xf32>, vector<4x324xf32>, vector<8x324xf32> -> vector<8x324xf32>
    %102 = arith.addf %98, %101 : vector<8x324xf32>
    %103 = vector.extract_strided_slice %97 {offsets = [0, 1], sizes = [4, 324], strides = [1, 1]} : vector<4x362xf32> to vector<4x324xf32>
    %104 = vector.extract_strided_slice %94 {offsets = [0, 4], sizes = [8, 4], strides = [1, 1]} : vector<8x36xf32> to vector<8x4xf32>
    %cst_20 = arith.constant dense<0.000000e+00> : vector<8x324xf32>
    %105 = tpu.matmul %104, %103, %cst_20 {dimension_numbers = #tpu.dot_dimension_numbers<[1], [0], [0], [1], [0, 0, 1, 1], [], []>} : vector<8x4xf32>, vector<4x324xf32>, vector<8x324xf32> -> vector<8x324xf32>
    %106 = arith.addf %102, %105 : vector<8x324xf32>
    %107 = vector.extract_strided_slice %97 {offsets = [0, 2], sizes = [4, 324], strides = [1, 1]} : vector<4x362xf32> to vector<4x324xf32>
    %108 = vector.extract_strided_slice %94 {offsets = [0, 8], sizes = [8, 4], strides = [1, 1]} : vector<8x36xf32> to vector<8x4xf32>
    %cst_21 = arith.constant dense<0.000000e+00> : vector<8x324xf32>
    %109 = tpu.matmul %108, %107, %cst_21 {dimension_numbers = #tpu.dot_dimension_numbers<[1], [0], [0], [1], [0, 0, 1, 1], [], []>} : vector<8x4xf32>, vector<4x324xf32>, vector<8x324xf32> -> vector<8x324xf32>
    %110 = arith.addf %106, %109 : vector<8x324xf32>
    %111 = vector.extract_strided_slice %97 {offsets = [0, 18], sizes = [4, 324], strides = [1, 1]} : vector<4x362xf32> to vector<4x324xf32>
    %112 = vector.extract_strided_slice %94 {offsets = [0, 12], sizes = [8, 4], strides = [1, 1]} : vector<8x36xf32> to vector<8x4xf32>
    %cst_22 = arith.constant dense<0.000000e+00> : vector<8x324xf32>
    %113 = tpu.matmul %112, %111, %cst_22 {dimension_numbers = #tpu.dot_dimension_numbers<[1], [0], [0], [1], [0, 0, 1, 1], [], []>} : vector<8x4xf32>, vector<4x324xf32>, vector<8x324xf32> -> vector<8x324xf32>
    %114 = arith.addf %110, %113 : vector<8x324xf32>
    %115 = vector.extract_strided_slice %97 {offsets = [0, 19], sizes = [4, 324], strides = [1, 1]} : vector<4x362xf32> to vector<4x324xf32>
    %116 = vector.extract_strided_slice %94 {offsets = [0, 16], sizes = [8, 4], strides = [1, 1]} : vector<8x36xf32> to vector<8x4xf32>
    %cst_23 = arith.constant dense<0.000000e+00> : vector<8x324xf32>
    %117 = tpu.matmul %116, %115, %cst_23 {dimension_numbers = #tpu.dot_dimension_numbers<[1], [0], [0], [1], [0, 0, 1, 1], [], []>} : vector<8x4xf32>, vector<4x324xf32>, vector<8x324xf32> -> vector<8x324xf32>
    %118 = arith.addf %114, %117 : vector<8x324xf32>
    %119 = vector.extract_strided_slice %97 {offsets = [0, 20], sizes = [4, 324], strides = [1, 1]} : vector<4x362xf32> to vector<4x324xf32>
    %120 = vector.extract_strided_slice %94 {offsets = [0, 20], sizes = [8, 4], strides = [1, 1]} : vector<8x36xf32> to vector<8x4xf32>
    %cst_24 = arith.constant dense<0.000000e+00> : vector<8x324xf32>
    %121 = tpu.matmul %120, %119, %cst_24 {dimension_numbers = #tpu.dot_dimension_numbers<[1], [0], [0], [1], [0, 0, 1, 1], [], []>} : vector<8x4xf32>, vector<4x324xf32>, vector<8x324xf32> -> vector<8x324xf32>
    %122 = arith.addf %118, %121 : vector<8x324xf32>
    %123 = vector.extract_strided_slice %97 {offsets = [0, 36], sizes = [4, 324], strides = [1, 1]} : vector<4x362xf32> to vector<4x324xf32>
    %124 = vector.extract_strided_slice %94 {offsets = [0, 24], sizes = [8, 4], strides = [1, 1]} : vector<8x36xf32> to vector<8x4xf32>
    %cst_25 = arith.constant dense<0.000000e+00> : vector<8x324xf32>
    %125 = tpu.matmul %124, %123, %cst_25 {dimension_numbers = #tpu.dot_dimension_numbers<[1], [0], [0], [1], [0, 0, 1, 1], [], []>} : vector<8x4xf32>, vector<4x324xf32>, vector<8x324xf32> -> vector<8x324xf32>
    %126 = arith.addf %122, %125 : vector<8x324xf32>
    %127 = vector.extract_strided_slice %97 {offsets = [0, 37], sizes = [4, 324], strides = [1, 1]} : vector<4x362xf32> to vector<4x324xf32>
    %128 = vector.extract_strided_slice %94 {offsets = [0, 28], sizes = [8, 4], strides = [1, 1]} : vector<8x36xf32> to vector<8x4xf32>
    %cst_26 = arith.constant dense<0.000000e+00> : vector<8x324xf32>
    %129 = tpu.matmul %128, %127, %cst_26 {dimension_numbers = #tpu.dot_dimension_numbers<[1], [0], [0], [1], [0, 0, 1, 1], [], []>} : vector<8x4xf32>, vector<4x324xf32>, vector<8x324xf32> -> vector<8x324xf32>
    %130 = arith.addf %126, %129 : vector<8x324xf32>
    %131 = vector.extract_strided_slice %97 {offsets = [0, 38], sizes = [4, 324], strides = [1, 1]} : vector<4x362xf32> to vector<4x324xf32>
    %132 = vector.extract_strided_slice %94 {offsets = [0, 32], sizes = [8, 4], strides = [1, 1]} : vector<8x36xf32> to vector<8x4xf32>
    %cst_27 = arith.constant dense<0.000000e+00> : vector<8x324xf32>
    %133 = tpu.matmul %132, %131, %cst_27 {dimension_numbers = #tpu.dot_dimension_numbers<[1], [0], [0], [1], [0, 0, 1, 1], [], []>} : vector<8x4xf32>, vector<4x324xf32>, vector<8x324xf32> -> vector<8x324xf32>
    %134 = arith.addf %130, %133 : vector<8x324xf32>
    %135 = vector.broadcast %95 : vector<8x1xf32> to vector<8x324xf32>
    %136 = arith.addf %134, %135 : vector<8x324xf32>
    %cst_28 = arith.constant 0.000000e+00 : f32
    %137 = vector.broadcast %cst_28 : f32 to vector<8x324xf32>
    %138 = arith.cmpf oge, %136, %137 : vector<8x324xf32>
    %cst_29 = arith.constant 0.00999999977 : f32
    %139 = vector.broadcast %cst_29 : f32 to vector<8x324xf32>
    %140 = arith.mulf %139, %136 : vector<8x324xf32>
    %141 = arith.select %138, %136, %140 : vector<8x324xi1>, vector<8x324xf32>
    %c0_30 = arith.constant 0 : index
    %c0_31 = arith.constant 0 : index
    %142 = vector.load %arg19[%c0_30, %c0_31] : memref<324x100xf32, #tpu.memory_space<vmem>>, vector<324x100xf32>
    %cst_32 = arith.constant dense<0.000000e+00> : vector<8x100xf32>
    %143 = tpu.matmul %141, %142, %cst_32 {dimension_numbers = #tpu.dot_dimension_numbers<[1], [0], [0], [1], [0, 0, 1, 1], [], []>} : vector<8x324xf32>, vector<324x100xf32>, vector<8x100xf32> -> vector<8x100xf32>
    %c0_33 = arith.constant 0 : index
    %c0_34 = arith.constant 0 : index
    %144 = vector.load %arg6[%c0_33, %c0_34] : memref<16x72xf32, #tpu.memory_space<vmem>>, vector<16x72xf32>
    %c0_35 = arith.constant 0 : index
    %c0_36 = arith.constant 0 : index
    %145 = vector.load %arg7[%c0_35, %c0_36] : memref<16x1xf32, #tpu.memory_space<vmem>>, vector<16x1xf32>
    %cst_37 = arith.constant 0.000000e+00 : f32
    %146 = vector.broadcast %cst_37 : f32 to vector<8x11xf32>
    %147 = tpu.concatenate %146, %143, %146 in 1 : vector<8x11xf32>, vector<8x100xf32>, vector<8x11xf32> -> vector<8x122xf32>
    %cst_38 = arith.constant 0.000000e+00 : f32
    %148 = vector.broadcast %cst_38 : f32 to vector<16x100xf32>
    %149 = vector.extract_strided_slice %147 {offsets = [0, 0], sizes = [8, 100], strides = [1, 1]} : vector<8x122xf32> to vector<8x100xf32>
    %150 = vector.extract_strided_slice %144 {offsets = [0, 0], sizes = [16, 8], strides = [1, 1]} : vector<16x72xf32> to vector<16x8xf32>
    %cst_39 = arith.constant dense<0.000000e+00> : vector<16x100xf32>
    %151 = tpu.matmul %150, %149, %cst_39 {dimension_numbers = #tpu.dot_dimension_numbers<[1], [0], [0], [1], [0, 0, 1, 1], [], []>} : vector<16x8xf32>, vector<8x100xf32>, vector<16x100xf32> -> vector<16x100xf32>
    %152 = arith.addf %148, %151 : vector<16x100xf32>
    %153 = vector.extract_strided_slice %147 {offsets = [0, 1], sizes = [8, 100], strides = [1, 1]} : vector<8x122xf32> to vector<8x100xf32>
    %154 = vector.extract_strided_slice %144 {offsets = [0, 8], sizes = [16, 8], strides = [1, 1]} : vector<16x72xf32> to vector<16x8xf32>
    %cst_40 = arith.constant dense<0.000000e+00> : vector<16x100xf32>
    %155 = tpu.matmul %154, %153, %cst_40 {dimension_numbers = #tpu.dot_dimension_numbers<[1], [0], [0], [1], [0, 0, 1, 1], [], []>} : vector<16x8xf32>, vector<8x100xf32>, vector<16x100xf32> -> vector<16x100xf32>
    %156 = arith.addf %152, %155 : vector<16x100xf32>
    %157 = vector.extract_strided_slice %147 {offsets = [0, 2], sizes = [8, 100], strides = [1, 1]} : vector<8x122xf32> to vector<8x100xf32>
    %158 = vector.extract_strided_slice %144 {offsets = [0, 16], sizes = [16, 8], strides = [1, 1]} : vector<16x72xf32> to vector<16x8xf32>
    %cst_41 = arith.constant dense<0.000000e+00> : vector<16x100xf32>
    %159 = tpu.matmul %158, %157, %cst_41 {dimension_numbers = #tpu.dot_dimension_numbers<[1], [0], [0], [1], [0, 0, 1, 1], [], []>} : vector<16x8xf32>, vector<8x100xf32>, vector<16x100xf32> -> vector<16x100xf32>
    %160 = arith.addf %156, %159 : vector<16x100xf32>
    %161 = vector.extract_strided_slice %147 {offsets = [0, 10], sizes = [8, 100], strides = [1, 1]} : vector<8x122xf32> to vector<8x100xf32>
    %162 = vector.extract_strided_slice %144 {offsets = [0, 24], sizes = [16, 8], strides = [1, 1]} : vector<16x72xf32> to vector<16x8xf32>
    %cst_42 = arith.constant dense<0.000000e+00> : vector<16x100xf32>
    %163 = tpu.matmul %162, %161, %cst_42 {dimension_numbers = #tpu.dot_dimension_numbers<[1], [0], [0], [1], [0, 0, 1, 1], [], []>} : vector<16x8xf32>, vector<8x100xf32>, vector<16x100xf32> -> vector<16x100xf32>
    %164 = arith.addf %160, %163 : vector<16x100xf32>
    %165 = vector.extract_strided_slice %147 {offsets = [0, 11], sizes = [8, 100], strides = [1, 1]} : vector<8x122xf32> to vector<8x100xf32>
    %166 = vector.extract_strided_slice %144 {offsets = [0, 32], sizes = [16, 8], strides = [1, 1]} : vector<16x72xf32> to vector<16x8xf32>
    %cst_43 = arith.constant dense<0.000000e+00> : vector<16x100xf32>
    %167 = tpu.matmul %166, %165, %cst_43 {dimension_numbers = #tpu.dot_dimension_numbers<[1], [0], [0], [1], [0, 0, 1, 1], [], []>} : vector<16x8xf32>, vector<8x100xf32>, vector<16x100xf32> -> vector<16x100xf32>
    %168 = arith.addf %164, %167 : vector<16x100xf32>
    %169 = vector.extract_strided_slice %147 {offsets = [0, 12], sizes = [8, 100], strides = [1, 1]} : vector<8x122xf32> to vector<8x100xf32>
    %170 = vector.extract_strided_slice %144 {offsets = [0, 40], sizes = [16, 8], strides = [1, 1]} : vector<16x72xf32> to vector<16x8xf32>
    %cst_44 = arith.constant dense<0.000000e+00> : vector<16x100xf32>
    %171 = tpu.matmul %170, %169, %cst_44 {dimension_numbers = #tpu.dot_dimension_numbers<[1], [0], [0], [1], [0, 0, 1, 1], [], []>} : vector<16x8xf32>, vector<8x100xf32>, vector<16x100xf32> -> vector<16x100xf32>
    %172 = arith.addf %168, %171 : vector<16x100xf32>
    %173 = vector.extract_strided_slice %147 {offsets = [0, 20], sizes = [8, 100], strides = [1, 1]} : vector<8x122xf32> to vector<8x100xf32>
    %174 = vector.extract_strided_slice %144 {offsets = [0, 48], sizes = [16, 8], strides = [1, 1]} : vector<16x72xf32> to vector<16x8xf32>
    %cst_45 = arith.constant dense<0.000000e+00> : vector<16x100xf32>
    %175 = tpu.matmul %174, %173, %cst_45 {dimension_numbers = #tpu.dot_dimension_numbers<[1], [0], [0], [1], [0, 0, 1, 1], [], []>} : vector<16x8xf32>, vector<8x100xf32>, vector<16x100xf32> -> vector<16x100xf32>
    %176 = arith.addf %172, %175 : vector<16x100xf32>
    %177 = vector.extract_strided_slice %147 {offsets = [0, 21], sizes = [8, 100], strides = [1, 1]} : vector<8x122xf32> to vector<8x100xf32>
    %178 = vector.extract_strided_slice %144 {offsets = [0, 56], sizes = [16, 8], strides = [1, 1]} : vector<16x72xf32> to vector<16x8xf32>
    %cst_46 = arith.constant dense<0.000000e+00> : vector<16x100xf32>
    %179 = tpu.matmul %178, %177, %cst_46 {dimension_numbers = #tpu.dot_dimension_numbers<[1], [0], [0], [1], [0, 0, 1, 1], [], []>} : vector<16x8xf32>, vector<8x100xf32>, vector<16x100xf32> -> vector<16x100xf32>
    %180 = arith.addf %176, %179 : vector<16x100xf32>
    %181 = vector.extract_strided_slice %147 {offsets = [0, 22], sizes = [8, 100], strides = [1, 1]} : vector<8x122xf32> to vector<8x100xf32>
    %182 = vector.extract_strided_slice %144 {offsets = [0, 64], sizes = [16, 8], strides = [1, 1]} : vector<16x72xf32> to vector<16x8xf32>
    %cst_47 = arith.constant dense<0.000000e+00> : vector<16x100xf32>
    %183 = tpu.matmul %182, %181, %cst_47 {dimension_numbers = #tpu.dot_dimension_numbers<[1], [0], [0], [1], [0, 0, 1, 1], [], []>} : vector<16x8xf32>, vector<8x100xf32>, vector<16x100xf32> -> vector<16x100xf32>
    %184 = arith.addf %180, %183 : vector<16x100xf32>
    %185 = vector.broadcast %145 : vector<16x1xf32> to vector<16x100xf32>
    %186 = arith.addf %184, %185 : vector<16x100xf32>
    %cst_48 = arith.constant 0.000000e+00 : f32
    %187 = vector.broadcast %cst_48 : f32 to vector<16x100xf32>
    %188 = arith.cmpf oge, %186, %187 : vector<16x100xf32>
    %cst_49 = arith.constant 0.00999999977 : f32
    %189 = vector.broadcast %cst_49 : f32 to vector<16x100xf32>
    %190 = arith.mulf %189, %186 : vector<16x100xf32>
    %191 = arith.select %188, %186, %190 : vector<16x100xi1>, vector<16x100xf32>
    %c0_50 = arith.constant 0 : index
    %c0_51 = arith.constant 0 : index
    %192 = vector.load %arg20[%c0_50, %c0_51] : memref<100x36xf32, #tpu.memory_space<vmem>>, vector<100x36xf32>
    %cst_52 = arith.constant dense<0.000000e+00> : vector<16x36xf32>
    %193 = tpu.matmul %191, %192, %cst_52 {dimension_numbers = #tpu.dot_dimension_numbers<[1], [0], [0], [1], [0, 0, 1, 1], [], []>} : vector<16x100xf32>, vector<100x36xf32>, vector<16x36xf32> -> vector<16x36xf32>
    %c0_53 = arith.constant 0 : index
    %c0_54 = arith.constant 0 : index
    %194 = vector.load %arg8[%c0_53, %c0_54] : memref<16x144xf32, #tpu.memory_space<vmem>>, vector<16x144xf32>
    %c0_55 = arith.constant 0 : index
    %c0_56 = arith.constant 0 : index
    %195 = vector.load %arg9[%c0_55, %c0_56] : memref<16x1xf32, #tpu.memory_space<vmem>>, vector<16x1xf32>
    %cst_57 = arith.constant 0.000000e+00 : f32
    %196 = vector.broadcast %cst_57 : f32 to vector<16x7xf32>
    %197 = tpu.concatenate %196, %193, %196 in 1 : vector<16x7xf32>, vector<16x36xf32>, vector<16x7xf32> -> vector<16x50xf32>
    %cst_58 = arith.constant 0.000000e+00 : f32
    %198 = vector.broadcast %cst_58 : f32 to vector<16x36xf32>
    %199 = vector.extract_strided_slice %197 {offsets = [0, 0], sizes = [16, 36], strides = [1, 1]} : vector<16x50xf32> to vector<16x36xf32>
    %200 = vector.extract_strided_slice %194 {offsets = [0, 0], sizes = [16, 16], strides = [1, 1]} : vector<16x144xf32> to vector<16x16xf32>
    %cst_59 = arith.constant dense<0.000000e+00> : vector<16x36xf32>
    %201 = tpu.matmul %200, %199, %cst_59 {dimension_numbers = #tpu.dot_dimension_numbers<[1], [0], [0], [1], [0, 0, 1, 1], [], []>} : vector<16x16xf32>, vector<16x36xf32>, vector<16x36xf32> -> vector<16x36xf32>
    %202 = arith.addf %198, %201 : vector<16x36xf32>
    %203 = vector.extract_strided_slice %197 {offsets = [0, 1], sizes = [16, 36], strides = [1, 1]} : vector<16x50xf32> to vector<16x36xf32>
    %204 = vector.extract_strided_slice %194 {offsets = [0, 16], sizes = [16, 16], strides = [1, 1]} : vector<16x144xf32> to vector<16x16xf32>
    %cst_60 = arith.constant dense<0.000000e+00> : vector<16x36xf32>
    %205 = tpu.matmul %204, %203, %cst_60 {dimension_numbers = #tpu.dot_dimension_numbers<[1], [0], [0], [1], [0, 0, 1, 1], [], []>} : vector<16x16xf32>, vector<16x36xf32>, vector<16x36xf32> -> vector<16x36xf32>
    %206 = arith.addf %202, %205 : vector<16x36xf32>
    %207 = vector.extract_strided_slice %197 {offsets = [0, 2], sizes = [16, 36], strides = [1, 1]} : vector<16x50xf32> to vector<16x36xf32>
    %208 = vector.extract_strided_slice %194 {offsets = [0, 32], sizes = [16, 16], strides = [1, 1]} : vector<16x144xf32> to vector<16x16xf32>
    %cst_61 = arith.constant dense<0.000000e+00> : vector<16x36xf32>
    %209 = tpu.matmul %208, %207, %cst_61 {dimension_numbers = #tpu.dot_dimension_numbers<[1], [0], [0], [1], [0, 0, 1, 1], [], []>} : vector<16x16xf32>, vector<16x36xf32>, vector<16x36xf32> -> vector<16x36xf32>
    %210 = arith.addf %206, %209 : vector<16x36xf32>
    %211 = vector.extract_strided_slice %197 {offsets = [0, 6], sizes = [16, 36], strides = [1, 1]} : vector<16x50xf32> to vector<16x36xf32>
    %212 = vector.extract_strided_slice %194 {offsets = [0, 48], sizes = [16, 16], strides = [1, 1]} : vector<16x144xf32> to vector<16x16xf32>
    %cst_62 = arith.constant dense<0.000000e+00> : vector<16x36xf32>
    %213 = tpu.matmul %212, %211, %cst_62 {dimension_numbers = #tpu.dot_dimension_numbers<[1], [0], [0], [1], [0, 0, 1, 1], [], []>} : vector<16x16xf32>, vector<16x36xf32>, vector<16x36xf32> -> vector<16x36xf32>
    %214 = arith.addf %210, %213 : vector<16x36xf32>
    %215 = vector.extract_strided_slice %197 {offsets = [0, 7], sizes = [16, 36], strides = [1, 1]} : vector<16x50xf32> to vector<16x36xf32>
    %216 = vector.extract_strided_slice %194 {offsets = [0, 64], sizes = [16, 16], strides = [1, 1]} : vector<16x144xf32> to vector<16x16xf32>
    %cst_63 = arith.constant dense<0.000000e+00> : vector<16x36xf32>
    %217 = tpu.matmul %216, %215, %cst_63 {dimension_numbers = #tpu.dot_dimension_numbers<[1], [0], [0], [1], [0, 0, 1, 1], [], []>} : vector<16x16xf32>, vector<16x36xf32>, vector<16x36xf32> -> vector<16x36xf32>
    %218 = arith.addf %214, %217 : vector<16x36xf32>
    %219 = vector.extract_strided_slice %197 {offsets = [0, 8], sizes = [16, 36], strides = [1, 1]} : vector<16x50xf32> to vector<16x36xf32>
    %220 = vector.extract_strided_slice %194 {offsets = [0, 80], sizes = [16, 16], strides = [1, 1]} : vector<16x144xf32> to vector<16x16xf32>
    %cst_64 = arith.constant dense<0.000000e+00> : vector<16x36xf32>
    %221 = tpu.matmul %220, %219, %cst_64 {dimension_numbers = #tpu.dot_dimension_numbers<[1], [0], [0], [1], [0, 0, 1, 1], [], []>} : vector<16x16xf32>, vector<16x36xf32>, vector<16x36xf32> -> vector<16x36xf32>
    %222 = arith.addf %218, %221 : vector<16x36xf32>
    %223 = vector.extract_strided_slice %197 {offsets = [0, 12], sizes = [16, 36], strides = [1, 1]} : vector<16x50xf32> to vector<16x36xf32>
    %224 = vector.extract_strided_slice %194 {offsets = [0, 96], sizes = [16, 16], strides = [1, 1]} : vector<16x144xf32> to vector<16x16xf32>
    %cst_65 = arith.constant dense<0.000000e+00> : vector<16x36xf32>
    %225 = tpu.matmul %224, %223, %cst_65 {dimension_numbers = #tpu.dot_dimension_numbers<[1], [0], [0], [1], [0, 0, 1, 1], [], []>} : vector<16x16xf32>, vector<16x36xf32>, vector<16x36xf32> -> vector<16x36xf32>
    %226 = arith.addf %222, %225 : vector<16x36xf32>
    %227 = vector.extract_strided_slice %197 {offsets = [0, 13], sizes = [16, 36], strides = [1, 1]} : vector<16x50xf32> to vector<16x36xf32>
    %228 = vector.extract_strided_slice %194 {offsets = [0, 112], sizes = [16, 16], strides = [1, 1]} : vector<16x144xf32> to vector<16x16xf32>
    %cst_66 = arith.constant dense<0.000000e+00> : vector<16x36xf32>
    %229 = tpu.matmul %228, %227, %cst_66 {dimension_numbers = #tpu.dot_dimension_numbers<[1], [0], [0], [1], [0, 0, 1, 1], [], []>} : vector<16x16xf32>, vector<16x36xf32>, vector<16x36xf32> -> vector<16x36xf32>
    %230 = arith.addf %226, %229 : vector<16x36xf32>
    %231 = vector.extract_strided_slice %197 {offsets = [0, 14], sizes = [16, 36], strides = [1, 1]} : vector<16x50xf32> to vector<16x36xf32>
    %232 = vector.extract_strided_slice %194 {offsets = [0, 128], sizes = [16, 16], strides = [1, 1]} : vector<16x144xf32> to vector<16x16xf32>
    %cst_67 = arith.constant dense<0.000000e+00> : vector<16x36xf32>
    %233 = tpu.matmul %232, %231, %cst_67 {dimension_numbers = #tpu.dot_dimension_numbers<[1], [0], [0], [1], [0, 0, 1, 1], [], []>} : vector<16x16xf32>, vector<16x36xf32>, vector<16x36xf32> -> vector<16x36xf32>
    %234 = arith.addf %230, %233 : vector<16x36xf32>
    %235 = vector.broadcast %195 : vector<16x1xf32> to vector<16x36xf32>
    %236 = arith.addf %234, %235 : vector<16x36xf32>
    %cst_68 = arith.constant 0.000000e+00 : f32
    %237 = vector.broadcast %cst_68 : f32 to vector<16x36xf32>
    %238 = arith.cmpf oge, %236, %237 : vector<16x36xf32>
    %cst_69 = arith.constant 0.00999999977 : f32
    %239 = vector.broadcast %cst_69 : f32 to vector<16x36xf32>
    %240 = arith.mulf %239, %236 : vector<16x36xf32>
    %241 = arith.select %238, %236, %240 : vector<16x36xi1>, vector<16x36xf32>
    %c0_70 = arith.constant 0 : index
    %c0_71 = arith.constant 0 : index
    %242 = vector.load %arg21[%c0_70, %c0_71] : memref<36x16xf32, #tpu.memory_space<vmem>>, vector<36x16xf32>
    %cst_72 = arith.constant dense<0.000000e+00> : vector<16x16xf32>
    %243 = tpu.matmul %241, %242, %cst_72 {dimension_numbers = #tpu.dot_dimension_numbers<[1], [0], [0], [1], [0, 0, 1, 1], [], []>} : vector<16x36xf32>, vector<36x16xf32>, vector<16x16xf32> -> vector<16x16xf32>
    %c0_73 = arith.constant 0 : index
    %c0_74 = arith.constant 0 : index
    %244 = vector.load %arg22[%c0_73, %c0_74] : memref<16x36xf32, #tpu.memory_space<vmem>>, vector<16x36xf32>
    %cst_75 = arith.constant dense<0.000000e+00> : vector<16x36xf32>
    %245 = tpu.matmul %243, %244, %cst_75 {dimension_numbers = #tpu.dot_dimension_numbers<[1], [0], [0], [1], [0, 0, 1, 1], [], []>} : vector<16x16xf32>, vector<16x36xf32>, vector<16x36xf32> -> vector<16x36xf32>
    %c0_76 = arith.constant 0 : index
    %c0_77 = arith.constant 0 : index
    %246 = vector.load %arg10[%c0_76, %c0_77] : memref<16x144xf32, #tpu.memory_space<vmem>>, vector<16x144xf32>
    %c0_78 = arith.constant 0 : index
    %c0_79 = arith.constant 0 : index
    %247 = vector.load %arg11[%c0_78, %c0_79] : memref<16x1xf32, #tpu.memory_space<vmem>>, vector<16x1xf32>
    %cst_80 = arith.constant 0.000000e+00 : f32
    %248 = vector.broadcast %cst_80 : f32 to vector<16x7xf32>
    %249 = tpu.concatenate %248, %245, %248 in 1 : vector<16x7xf32>, vector<16x36xf32>, vector<16x7xf32> -> vector<16x50xf32>
    %cst_81 = arith.constant 0.000000e+00 : f32
    %250 = vector.broadcast %cst_81 : f32 to vector<16x36xf32>
    %251 = vector.extract_strided_slice %249 {offsets = [0, 0], sizes = [16, 36], strides = [1, 1]} : vector<16x50xf32> to vector<16x36xf32>
    %252 = vector.extract_strided_slice %246 {offsets = [0, 0], sizes = [16, 16], strides = [1, 1]} : vector<16x144xf32> to vector<16x16xf32>
    %cst_82 = arith.constant dense<0.000000e+00> : vector<16x36xf32>
    %253 = tpu.matmul %252, %251, %cst_82 {dimension_numbers = #tpu.dot_dimension_numbers<[1], [0], [0], [1], [0, 0, 1, 1], [], []>} : vector<16x16xf32>, vector<16x36xf32>, vector<16x36xf32> -> vector<16x36xf32>
    %254 = arith.addf %250, %253 : vector<16x36xf32>
    %255 = vector.extract_strided_slice %249 {offsets = [0, 1], sizes = [16, 36], strides = [1, 1]} : vector<16x50xf32> to vector<16x36xf32>
    %256 = vector.extract_strided_slice %246 {offsets = [0, 16], sizes = [16, 16], strides = [1, 1]} : vector<16x144xf32> to vector<16x16xf32>
    %cst_83 = arith.constant dense<0.000000e+00> : vector<16x36xf32>
    %257 = tpu.matmul %256, %255, %cst_83 {dimension_numbers = #tpu.dot_dimension_numbers<[1], [0], [0], [1], [0, 0, 1, 1], [], []>} : vector<16x16xf32>, vector<16x36xf32>, vector<16x36xf32> -> vector<16x36xf32>
    %258 = arith.addf %254, %257 : vector<16x36xf32>
    %259 = vector.extract_strided_slice %249 {offsets = [0, 2], sizes = [16, 36], strides = [1, 1]} : vector<16x50xf32> to vector<16x36xf32>
    %260 = vector.extract_strided_slice %246 {offsets = [0, 32], sizes = [16, 16], strides = [1, 1]} : vector<16x144xf32> to vector<16x16xf32>
    %cst_84 = arith.constant dense<0.000000e+00> : vector<16x36xf32>
    %261 = tpu.matmul %260, %259, %cst_84 {dimension_numbers = #tpu.dot_dimension_numbers<[1], [0], [0], [1], [0, 0, 1, 1], [], []>} : vector<16x16xf32>, vector<16x36xf32>, vector<16x36xf32> -> vector<16x36xf32>
    %262 = arith.addf %258, %261 : vector<16x36xf32>
    %263 = vector.extract_strided_slice %249 {offsets = [0, 6], sizes = [16, 36], strides = [1, 1]} : vector<16x50xf32> to vector<16x36xf32>
    %264 = vector.extract_strided_slice %246 {offsets = [0, 48], sizes = [16, 16], strides = [1, 1]} : vector<16x144xf32> to vector<16x16xf32>
    %cst_85 = arith.constant dense<0.000000e+00> : vector<16x36xf32>
    %265 = tpu.matmul %264, %263, %cst_85 {dimension_numbers = #tpu.dot_dimension_numbers<[1], [0], [0], [1], [0, 0, 1, 1], [], []>} : vector<16x16xf32>, vector<16x36xf32>, vector<16x36xf32> -> vector<16x36xf32>
    %266 = arith.addf %262, %265 : vector<16x36xf32>
    %267 = vector.extract_strided_slice %249 {offsets = [0, 7], sizes = [16, 36], strides = [1, 1]} : vector<16x50xf32> to vector<16x36xf32>
    %268 = vector.extract_strided_slice %246 {offsets = [0, 64], sizes = [16, 16], strides = [1, 1]} : vector<16x144xf32> to vector<16x16xf32>
    %cst_86 = arith.constant dense<0.000000e+00> : vector<16x36xf32>
    %269 = tpu.matmul %268, %267, %cst_86 {dimension_numbers = #tpu.dot_dimension_numbers<[1], [0], [0], [1], [0, 0, 1, 1], [], []>} : vector<16x16xf32>, vector<16x36xf32>, vector<16x36xf32> -> vector<16x36xf32>
    %270 = arith.addf %266, %269 : vector<16x36xf32>
    %271 = vector.extract_strided_slice %249 {offsets = [0, 8], sizes = [16, 36], strides = [1, 1]} : vector<16x50xf32> to vector<16x36xf32>
    %272 = vector.extract_strided_slice %246 {offsets = [0, 80], sizes = [16, 16], strides = [1, 1]} : vector<16x144xf32> to vector<16x16xf32>
    %cst_87 = arith.constant dense<0.000000e+00> : vector<16x36xf32>
    %273 = tpu.matmul %272, %271, %cst_87 {dimension_numbers = #tpu.dot_dimension_numbers<[1], [0], [0], [1], [0, 0, 1, 1], [], []>} : vector<16x16xf32>, vector<16x36xf32>, vector<16x36xf32> -> vector<16x36xf32>
    %274 = arith.addf %270, %273 : vector<16x36xf32>
    %275 = vector.extract_strided_slice %249 {offsets = [0, 12], sizes = [16, 36], strides = [1, 1]} : vector<16x50xf32> to vector<16x36xf32>
    %276 = vector.extract_strided_slice %246 {offsets = [0, 96], sizes = [16, 16], strides = [1, 1]} : vector<16x144xf32> to vector<16x16xf32>
    %cst_88 = arith.constant dense<0.000000e+00> : vector<16x36xf32>
    %277 = tpu.matmul %276, %275, %cst_88 {dimension_numbers = #tpu.dot_dimension_numbers<[1], [0], [0], [1], [0, 0, 1, 1], [], []>} : vector<16x16xf32>, vector<16x36xf32>, vector<16x36xf32> -> vector<16x36xf32>
    %278 = arith.addf %274, %277 : vector<16x36xf32>
    %279 = vector.extract_strided_slice %249 {offsets = [0, 13], sizes = [16, 36], strides = [1, 1]} : vector<16x50xf32> to vector<16x36xf32>
    %280 = vector.extract_strided_slice %246 {offsets = [0, 112], sizes = [16, 16], strides = [1, 1]} : vector<16x144xf32> to vector<16x16xf32>
    %cst_89 = arith.constant dense<0.000000e+00> : vector<16x36xf32>
    %281 = tpu.matmul %280, %279, %cst_89 {dimension_numbers = #tpu.dot_dimension_numbers<[1], [0], [0], [1], [0, 0, 1, 1], [], []>} : vector<16x16xf32>, vector<16x36xf32>, vector<16x36xf32> -> vector<16x36xf32>
    %282 = arith.addf %278, %281 : vector<16x36xf32>
    %283 = vector.extract_strided_slice %249 {offsets = [0, 14], sizes = [16, 36], strides = [1, 1]} : vector<16x50xf32> to vector<16x36xf32>
    %284 = vector.extract_strided_slice %246 {offsets = [0, 128], sizes = [16, 16], strides = [1, 1]} : vector<16x144xf32> to vector<16x16xf32>
    %cst_90 = arith.constant dense<0.000000e+00> : vector<16x36xf32>
    %285 = tpu.matmul %284, %283, %cst_90 {dimension_numbers = #tpu.dot_dimension_numbers<[1], [0], [0], [1], [0, 0, 1, 1], [], []>} : vector<16x16xf32>, vector<16x36xf32>, vector<16x36xf32> -> vector<16x36xf32>
    %286 = arith.addf %282, %285 : vector<16x36xf32>
    %287 = vector.broadcast %247 : vector<16x1xf32> to vector<16x36xf32>
    %288 = arith.addf %286, %287 : vector<16x36xf32>
    %cst_91 = arith.constant 0.000000e+00 : f32
    %289 = vector.broadcast %cst_91 : f32 to vector<16x36xf32>
    %290 = arith.cmpf oge, %288, %289 : vector<16x36xf32>
    %cst_92 = arith.constant 0.00999999977 : f32
    %291 = vector.broadcast %cst_92 : f32 to vector<16x36xf32>
    %292 = arith.mulf %291, %288 : vector<16x36xf32>
    %293 = arith.select %290, %288, %292 : vector<16x36xi1>, vector<16x36xf32>
    %c0_93 = arith.constant 0 : index
    %c0_94 = arith.constant 0 : index
    %294 = vector.load %arg23[%c0_93, %c0_94] : memref<36x100xf32, #tpu.memory_space<vmem>>, vector<36x100xf32>
    %cst_95 = arith.constant dense<0.000000e+00> : vector<16x100xf32>
    %295 = tpu.matmul %293, %294, %cst_95 {dimension_numbers = #tpu.dot_dimension_numbers<[1], [0], [0], [1], [0, 0, 1, 1], [], []>} : vector<16x36xf32>, vector<36x100xf32>, vector<16x100xf32> -> vector<16x100xf32>
    %c0_96 = arith.constant 0 : index
    %c0_97 = arith.constant 0 : index
    %296 = vector.load %arg12[%c0_96, %c0_97] : memref<8x144xf32, #tpu.memory_space<vmem>>, vector<8x144xf32>
    %c0_98 = arith.constant 0 : index
    %c0_99 = arith.constant 0 : index
    %297 = vector.load %arg13[%c0_98, %c0_99] : memref<8x1xf32, #tpu.memory_space<vmem>>, vector<8x1xf32>
    %cst_100 = arith.constant 0.000000e+00 : f32
    %298 = vector.broadcast %cst_100 : f32 to vector<16x11xf32>
    %299 = tpu.concatenate %298, %295, %298 in 1 : vector<16x11xf32>, vector<16x100xf32>, vector<16x11xf32> -> vector<16x122xf32>
    %cst_101 = arith.constant 0.000000e+00 : f32
    %300 = vector.broadcast %cst_101 : f32 to vector<8x100xf32>
    %301 = vector.extract_strided_slice %299 {offsets = [0, 0], sizes = [16, 100], strides = [1, 1]} : vector<16x122xf32> to vector<16x100xf32>
    %302 = vector.extract_strided_slice %296 {offsets = [0, 0], sizes = [8, 16], strides = [1, 1]} : vector<8x144xf32> to vector<8x16xf32>
    %cst_102 = arith.constant dense<0.000000e+00> : vector<8x100xf32>
    %303 = tpu.matmul %302, %301, %cst_102 {dimension_numbers = #tpu.dot_dimension_numbers<[1], [0], [0], [1], [0, 0, 1, 1], [], []>} : vector<8x16xf32>, vector<16x100xf32>, vector<8x100xf32> -> vector<8x100xf32>
    %304 = arith.addf %300, %303 : vector<8x100xf32>
    %305 = vector.extract_strided_slice %299 {offsets = [0, 1], sizes = [16, 100], strides = [1, 1]} : vector<16x122xf32> to vector<16x100xf32>
    %306 = vector.extract_strided_slice %296 {offsets = [0, 16], sizes = [8, 16], strides = [1, 1]} : vector<8x144xf32> to vector<8x16xf32>
    %cst_103 = arith.constant dense<0.000000e+00> : vector<8x100xf32>
    %307 = tpu.matmul %306, %305, %cst_103 {dimension_numbers = #tpu.dot_dimension_numbers<[1], [0], [0], [1], [0, 0, 1, 1], [], []>} : vector<8x16xf32>, vector<16x100xf32>, vector<8x100xf32> -> vector<8x100xf32>
    %308 = arith.addf %304, %307 : vector<8x100xf32>
    %309 = vector.extract_strided_slice %299 {offsets = [0, 2], sizes = [16, 100], strides = [1, 1]} : vector<16x122xf32> to vector<16x100xf32>
    %310 = vector.extract_strided_slice %296 {offsets = [0, 32], sizes = [8, 16], strides = [1, 1]} : vector<8x144xf32> to vector<8x16xf32>
    %cst_104 = arith.constant dense<0.000000e+00> : vector<8x100xf32>
    %311 = tpu.matmul %310, %309, %cst_104 {dimension_numbers = #tpu.dot_dimension_numbers<[1], [0], [0], [1], [0, 0, 1, 1], [], []>} : vector<8x16xf32>, vector<16x100xf32>, vector<8x100xf32> -> vector<8x100xf32>
    %312 = arith.addf %308, %311 : vector<8x100xf32>
    %313 = vector.extract_strided_slice %299 {offsets = [0, 10], sizes = [16, 100], strides = [1, 1]} : vector<16x122xf32> to vector<16x100xf32>
    %314 = vector.extract_strided_slice %296 {offsets = [0, 48], sizes = [8, 16], strides = [1, 1]} : vector<8x144xf32> to vector<8x16xf32>
    %cst_105 = arith.constant dense<0.000000e+00> : vector<8x100xf32>
    %315 = tpu.matmul %314, %313, %cst_105 {dimension_numbers = #tpu.dot_dimension_numbers<[1], [0], [0], [1], [0, 0, 1, 1], [], []>} : vector<8x16xf32>, vector<16x100xf32>, vector<8x100xf32> -> vector<8x100xf32>
    %316 = arith.addf %312, %315 : vector<8x100xf32>
    %317 = vector.extract_strided_slice %299 {offsets = [0, 11], sizes = [16, 100], strides = [1, 1]} : vector<16x122xf32> to vector<16x100xf32>
    %318 = vector.extract_strided_slice %296 {offsets = [0, 64], sizes = [8, 16], strides = [1, 1]} : vector<8x144xf32> to vector<8x16xf32>
    %cst_106 = arith.constant dense<0.000000e+00> : vector<8x100xf32>
    %319 = tpu.matmul %318, %317, %cst_106 {dimension_numbers = #tpu.dot_dimension_numbers<[1], [0], [0], [1], [0, 0, 1, 1], [], []>} : vector<8x16xf32>, vector<16x100xf32>, vector<8x100xf32> -> vector<8x100xf32>
    %320 = arith.addf %316, %319 : vector<8x100xf32>
    %321 = vector.extract_strided_slice %299 {offsets = [0, 12], sizes = [16, 100], strides = [1, 1]} : vector<16x122xf32> to vector<16x100xf32>
    %322 = vector.extract_strided_slice %296 {offsets = [0, 80], sizes = [8, 16], strides = [1, 1]} : vector<8x144xf32> to vector<8x16xf32>
    %cst_107 = arith.constant dense<0.000000e+00> : vector<8x100xf32>
    %323 = tpu.matmul %322, %321, %cst_107 {dimension_numbers = #tpu.dot_dimension_numbers<[1], [0], [0], [1], [0, 0, 1, 1], [], []>} : vector<8x16xf32>, vector<16x100xf32>, vector<8x100xf32> -> vector<8x100xf32>
    %324 = arith.addf %320, %323 : vector<8x100xf32>
    %325 = vector.extract_strided_slice %299 {offsets = [0, 20], sizes = [16, 100], strides = [1, 1]} : vector<16x122xf32> to vector<16x100xf32>
    %326 = vector.extract_strided_slice %296 {offsets = [0, 96], sizes = [8, 16], strides = [1, 1]} : vector<8x144xf32> to vector<8x16xf32>
    %cst_108 = arith.constant dense<0.000000e+00> : vector<8x100xf32>
    %327 = tpu.matmul %326, %325, %cst_108 {dimension_numbers = #tpu.dot_dimension_numbers<[1], [0], [0], [1], [0, 0, 1, 1], [], []>} : vector<8x16xf32>, vector<16x100xf32>, vector<8x100xf32> -> vector<8x100xf32>
    %328 = arith.addf %324, %327 : vector<8x100xf32>
    %329 = vector.extract_strided_slice %299 {offsets = [0, 21], sizes = [16, 100], strides = [1, 1]} : vector<16x122xf32> to vector<16x100xf32>
    %330 = vector.extract_strided_slice %296 {offsets = [0, 112], sizes = [8, 16], strides = [1, 1]} : vector<8x144xf32> to vector<8x16xf32>
    %cst_109 = arith.constant dense<0.000000e+00> : vector<8x100xf32>
    %331 = tpu.matmul %330, %329, %cst_109 {dimension_numbers = #tpu.dot_dimension_numbers<[1], [0], [0], [1], [0, 0, 1, 1], [], []>} : vector<8x16xf32>, vector<16x100xf32>, vector<8x100xf32> -> vector<8x100xf32>
    %332 = arith.addf %328, %331 : vector<8x100xf32>
    %333 = vector.extract_strided_slice %299 {offsets = [0, 22], sizes = [16, 100], strides = [1, 1]} : vector<16x122xf32> to vector<16x100xf32>
    %334 = vector.extract_strided_slice %296 {offsets = [0, 128], sizes = [8, 16], strides = [1, 1]} : vector<8x144xf32> to vector<8x16xf32>
    %cst_110 = arith.constant dense<0.000000e+00> : vector<8x100xf32>
    %335 = tpu.matmul %334, %333, %cst_110 {dimension_numbers = #tpu.dot_dimension_numbers<[1], [0], [0], [1], [0, 0, 1, 1], [], []>} : vector<8x16xf32>, vector<16x100xf32>, vector<8x100xf32> -> vector<8x100xf32>
    %336 = arith.addf %332, %335 : vector<8x100xf32>
    %337 = vector.broadcast %297 : vector<8x1xf32> to vector<8x100xf32>
    %338 = arith.addf %336, %337 : vector<8x100xf32>
    %cst_111 = arith.constant 0.000000e+00 : f32
    %339 = vector.broadcast %cst_111 : f32 to vector<8x100xf32>
    %340 = arith.cmpf oge, %338, %339 : vector<8x100xf32>
    %cst_112 = arith.constant 0.00999999977 : f32
    %341 = vector.broadcast %cst_112 : f32 to vector<8x100xf32>
    %342 = arith.mulf %341, %338 : vector<8x100xf32>
    %343 = arith.select %340, %338, %342 : vector<8x100xi1>, vector<8x100xf32>
    %c0_113 = arith.constant 0 : index
    %c0_114 = arith.constant 0 : index
    %344 = vector.load %arg24[%c0_113, %c0_114] : memref<100x324xf32, #tpu.memory_space<vmem>>, vector<100x324xf32>
    %cst_115 = arith.constant dense<0.000000e+00> : vector<8x324xf32>
    %345 = tpu.matmul %343, %344, %cst_115 {dimension_numbers = #tpu.dot_dimension_numbers<[1], [0], [0], [1], [0, 0, 1, 1], [], []>} : vector<8x100xf32>, vector<100x324xf32>, vector<8x324xf32> -> vector<8x324xf32>
    %c0_116 = arith.constant 0 : index
    %c0_117 = arith.constant 0 : index
    %346 = vector.load %arg14[%c0_116, %c0_117] : memref<4x72xf32, #tpu.memory_space<vmem>>, vector<4x72xf32>
    %c0_118 = arith.constant 0 : index
    %c0_119 = arith.constant 0 : index
    %347 = vector.load %arg15[%c0_118, %c0_119] : memref<4x1xf32, #tpu.memory_space<vmem>>, vector<4x1xf32>
    %cst_120 = arith.constant 0.000000e+00 : f32
    %348 = vector.broadcast %cst_120 : f32 to vector<8x19xf32>
    %349 = tpu.concatenate %348, %345, %348 in 1 : vector<8x19xf32>, vector<8x324xf32>, vector<8x19xf32> -> vector<8x362xf32>
    %cst_121 = arith.constant 0.000000e+00 : f32
    %350 = vector.broadcast %cst_121 : f32 to vector<4x324xf32>
    %351 = vector.extract_strided_slice %349 {offsets = [0, 0], sizes = [8, 324], strides = [1, 1]} : vector<8x362xf32> to vector<8x324xf32>
    %352 = vector.extract_strided_slice %346 {offsets = [0, 0], sizes = [4, 8], strides = [1, 1]} : vector<4x72xf32> to vector<4x8xf32>
    %cst_122 = arith.constant dense<0.000000e+00> : vector<4x324xf32>
    %353 = tpu.matmul %352, %351, %cst_122 {dimension_numbers = #tpu.dot_dimension_numbers<[1], [0], [0], [1], [0, 0, 1, 1], [], []>} : vector<4x8xf32>, vector<8x324xf32>, vector<4x324xf32> -> vector<4x324xf32>
    %354 = arith.addf %350, %353 : vector<4x324xf32>
    %355 = vector.extract_strided_slice %349 {offsets = [0, 1], sizes = [8, 324], strides = [1, 1]} : vector<8x362xf32> to vector<8x324xf32>
    %356 = vector.extract_strided_slice %346 {offsets = [0, 8], sizes = [4, 8], strides = [1, 1]} : vector<4x72xf32> to vector<4x8xf32>
    %cst_123 = arith.constant dense<0.000000e+00> : vector<4x324xf32>
    %357 = tpu.matmul %356, %355, %cst_123 {dimension_numbers = #tpu.dot_dimension_numbers<[1], [0], [0], [1], [0, 0, 1, 1], [], []>} : vector<4x8xf32>, vector<8x324xf32>, vector<4x324xf32> -> vector<4x324xf32>
    %358 = arith.addf %354, %357 : vector<4x324xf32>
    %359 = vector.extract_strided_slice %349 {offsets = [0, 2], sizes = [8, 324], strides = [1, 1]} : vector<8x362xf32> to vector<8x324xf32>
    %360 = vector.extract_strided_slice %346 {offsets = [0, 16], sizes = [4, 8], strides = [1, 1]} : vector<4x72xf32> to vector<4x8xf32>
    %cst_124 = arith.constant dense<0.000000e+00> : vector<4x324xf32>
    %361 = tpu.matmul %360, %359, %cst_124 {dimension_numbers = #tpu.dot_dimension_numbers<[1], [0], [0], [1], [0, 0, 1, 1], [], []>} : vector<4x8xf32>, vector<8x324xf32>, vector<4x324xf32> -> vector<4x324xf32>
    %362 = arith.addf %358, %361 : vector<4x324xf32>
    %363 = vector.extract_strided_slice %349 {offsets = [0, 18], sizes = [8, 324], strides = [1, 1]} : vector<8x362xf32> to vector<8x324xf32>
    %364 = vector.extract_strided_slice %346 {offsets = [0, 24], sizes = [4, 8], strides = [1, 1]} : vector<4x72xf32> to vector<4x8xf32>
    %cst_125 = arith.constant dense<0.000000e+00> : vector<4x324xf32>
    %365 = tpu.matmul %364, %363, %cst_125 {dimension_numbers = #tpu.dot_dimension_numbers<[1], [0], [0], [1], [0, 0, 1, 1], [], []>} : vector<4x8xf32>, vector<8x324xf32>, vector<4x324xf32> -> vector<4x324xf32>
    %366 = arith.addf %362, %365 : vector<4x324xf32>
    %367 = vector.extract_strided_slice %349 {offsets = [0, 19], sizes = [8, 324], strides = [1, 1]} : vector<8x362xf32> to vector<8x324xf32>
    %368 = vector.extract_strided_slice %346 {offsets = [0, 32], sizes = [4, 8], strides = [1, 1]} : vector<4x72xf32> to vector<4x8xf32>
    %cst_126 = arith.constant dense<0.000000e+00> : vector<4x324xf32>
    %369 = tpu.matmul %368, %367, %cst_126 {dimension_numbers = #tpu.dot_dimension_numbers<[1], [0], [0], [1], [0, 0, 1, 1], [], []>} : vector<4x8xf32>, vector<8x324xf32>, vector<4x324xf32> -> vector<4x324xf32>
    %370 = arith.addf %366, %369 : vector<4x324xf32>
    %371 = vector.extract_strided_slice %349 {offsets = [0, 20], sizes = [8, 324], strides = [1, 1]} : vector<8x362xf32> to vector<8x324xf32>
    %372 = vector.extract_strided_slice %346 {offsets = [0, 40], sizes = [4, 8], strides = [1, 1]} : vector<4x72xf32> to vector<4x8xf32>
    %cst_127 = arith.constant dense<0.000000e+00> : vector<4x324xf32>
    %373 = tpu.matmul %372, %371, %cst_127 {dimension_numbers = #tpu.dot_dimension_numbers<[1], [0], [0], [1], [0, 0, 1, 1], [], []>} : vector<4x8xf32>, vector<8x324xf32>, vector<4x324xf32> -> vector<4x324xf32>
    %374 = arith.addf %370, %373 : vector<4x324xf32>
    %375 = vector.extract_strided_slice %349 {offsets = [0, 36], sizes = [8, 324], strides = [1, 1]} : vector<8x362xf32> to vector<8x324xf32>
    %376 = vector.extract_strided_slice %346 {offsets = [0, 48], sizes = [4, 8], strides = [1, 1]} : vector<4x72xf32> to vector<4x8xf32>
    %cst_128 = arith.constant dense<0.000000e+00> : vector<4x324xf32>
    %377 = tpu.matmul %376, %375, %cst_128 {dimension_numbers = #tpu.dot_dimension_numbers<[1], [0], [0], [1], [0, 0, 1, 1], [], []>} : vector<4x8xf32>, vector<8x324xf32>, vector<4x324xf32> -> vector<4x324xf32>
    %378 = arith.addf %374, %377 : vector<4x324xf32>
    %379 = vector.extract_strided_slice %349 {offsets = [0, 37], sizes = [8, 324], strides = [1, 1]} : vector<8x362xf32> to vector<8x324xf32>
    %380 = vector.extract_strided_slice %346 {offsets = [0, 56], sizes = [4, 8], strides = [1, 1]} : vector<4x72xf32> to vector<4x8xf32>
    %cst_129 = arith.constant dense<0.000000e+00> : vector<4x324xf32>
    %381 = tpu.matmul %380, %379, %cst_129 {dimension_numbers = #tpu.dot_dimension_numbers<[1], [0], [0], [1], [0, 0, 1, 1], [], []>} : vector<4x8xf32>, vector<8x324xf32>, vector<4x324xf32> -> vector<4x324xf32>
    %382 = arith.addf %378, %381 : vector<4x324xf32>
    %383 = vector.extract_strided_slice %349 {offsets = [0, 38], sizes = [8, 324], strides = [1, 1]} : vector<8x362xf32> to vector<8x324xf32>
    %384 = vector.extract_strided_slice %346 {offsets = [0, 64], sizes = [4, 8], strides = [1, 1]} : vector<4x72xf32> to vector<4x8xf32>
    %cst_130 = arith.constant dense<0.000000e+00> : vector<4x324xf32>
    %385 = tpu.matmul %384, %383, %cst_130 {dimension_numbers = #tpu.dot_dimension_numbers<[1], [0], [0], [1], [0, 0, 1, 1], [], []>} : vector<4x8xf32>, vector<8x324xf32>, vector<4x324xf32> -> vector<4x324xf32>
    %386 = arith.addf %382, %385 : vector<4x324xf32>
    %387 = vector.broadcast %347 : vector<4x1xf32> to vector<4x324xf32>
    %388 = arith.addf %386, %387 : vector<4x324xf32>
    %cst_131 = arith.constant 0.000000e+00 : f32
    %389 = vector.broadcast %cst_131 : f32 to vector<4x324xf32>
    %390 = arith.cmpf oge, %388, %389 : vector<4x324xf32>
    %cst_132 = arith.constant 0.00999999977 : f32
    %391 = vector.broadcast %cst_132 : f32 to vector<4x324xf32>
    %392 = arith.mulf %391, %388 : vector<4x324xf32>
    %393 = arith.select %390, %388, %392 : vector<4x324xi1>, vector<4x324xf32>
    %394 = vector.broadcast %25 : vector<1x324xf32> to vector<4x324xf32>
    %395 = arith.mulf %393, %394 : vector<4x324xf32>
    %c0_133 = arith.constant 0 : index
    %c0_134 = arith.constant 0 : index
    %396 = vector.load %arg16[%c0_133, %c0_134] : memref<3x36xf32, #tpu.memory_space<vmem>>, vector<3x36xf32>
    %c0_135 = arith.constant 0 : index
    %c0_136 = arith.constant 0 : index
    %397 = vector.load %arg17[%c0_135, %c0_136] : memref<3x1xf32, #tpu.memory_space<vmem>>, vector<3x1xf32>
    %cst_137 = arith.constant 0.000000e+00 : f32
    %398 = vector.broadcast %cst_137 : f32 to vector<4x19xf32>
    %399 = tpu.concatenate %398, %395, %398 in 1 : vector<4x19xf32>, vector<4x324xf32>, vector<4x19xf32> -> vector<4x362xf32>
    %cst_138 = arith.constant 0.000000e+00 : f32
    %400 = vector.broadcast %cst_138 : f32 to vector<3x324xf32>
    %401 = vector.extract_strided_slice %399 {offsets = [0, 0], sizes = [4, 324], strides = [1, 1]} : vector<4x362xf32> to vector<4x324xf32>
    %402 = vector.extract_strided_slice %396 {offsets = [0, 0], sizes = [3, 4], strides = [1, 1]} : vector<3x36xf32> to vector<3x4xf32>
    %cst_139 = arith.constant dense<0.000000e+00> : vector<3x324xf32>
    %403 = tpu.matmul %402, %401, %cst_139 {dimension_numbers = #tpu.dot_dimension_numbers<[1], [0], [0], [1], [0, 0, 1, 1], [], []>} : vector<3x4xf32>, vector<4x324xf32>, vector<3x324xf32> -> vector<3x324xf32>
    %404 = arith.addf %400, %403 : vector<3x324xf32>
    %405 = vector.extract_strided_slice %399 {offsets = [0, 1], sizes = [4, 324], strides = [1, 1]} : vector<4x362xf32> to vector<4x324xf32>
    %406 = vector.extract_strided_slice %396 {offsets = [0, 4], sizes = [3, 4], strides = [1, 1]} : vector<3x36xf32> to vector<3x4xf32>
    %cst_140 = arith.constant dense<0.000000e+00> : vector<3x324xf32>
    %407 = tpu.matmul %406, %405, %cst_140 {dimension_numbers = #tpu.dot_dimension_numbers<[1], [0], [0], [1], [0, 0, 1, 1], [], []>} : vector<3x4xf32>, vector<4x324xf32>, vector<3x324xf32> -> vector<3x324xf32>
    %408 = arith.addf %404, %407 : vector<3x324xf32>
    %409 = vector.extract_strided_slice %399 {offsets = [0, 2], sizes = [4, 324], strides = [1, 1]} : vector<4x362xf32> to vector<4x324xf32>
    %410 = vector.extract_strided_slice %396 {offsets = [0, 8], sizes = [3, 4], strides = [1, 1]} : vector<3x36xf32> to vector<3x4xf32>
    %cst_141 = arith.constant dense<0.000000e+00> : vector<3x324xf32>
    %411 = tpu.matmul %410, %409, %cst_141 {dimension_numbers = #tpu.dot_dimension_numbers<[1], [0], [0], [1], [0, 0, 1, 1], [], []>} : vector<3x4xf32>, vector<4x324xf32>, vector<3x324xf32> -> vector<3x324xf32>
    %412 = arith.addf %408, %411 : vector<3x324xf32>
    %413 = vector.extract_strided_slice %399 {offsets = [0, 18], sizes = [4, 324], strides = [1, 1]} : vector<4x362xf32> to vector<4x324xf32>
    %414 = vector.extract_strided_slice %396 {offsets = [0, 12], sizes = [3, 4], strides = [1, 1]} : vector<3x36xf32> to vector<3x4xf32>
    %cst_142 = arith.constant dense<0.000000e+00> : vector<3x324xf32>
    %415 = tpu.matmul %414, %413, %cst_142 {dimension_numbers = #tpu.dot_dimension_numbers<[1], [0], [0], [1], [0, 0, 1, 1], [], []>} : vector<3x4xf32>, vector<4x324xf32>, vector<3x324xf32> -> vector<3x324xf32>
    %416 = arith.addf %412, %415 : vector<3x324xf32>
    %417 = vector.extract_strided_slice %399 {offsets = [0, 19], sizes = [4, 324], strides = [1, 1]} : vector<4x362xf32> to vector<4x324xf32>
    %418 = vector.extract_strided_slice %396 {offsets = [0, 16], sizes = [3, 4], strides = [1, 1]} : vector<3x36xf32> to vector<3x4xf32>
    %cst_143 = arith.constant dense<0.000000e+00> : vector<3x324xf32>
    %419 = tpu.matmul %418, %417, %cst_143 {dimension_numbers = #tpu.dot_dimension_numbers<[1], [0], [0], [1], [0, 0, 1, 1], [], []>} : vector<3x4xf32>, vector<4x324xf32>, vector<3x324xf32> -> vector<3x324xf32>
    %420 = arith.addf %416, %419 : vector<3x324xf32>
    %421 = vector.extract_strided_slice %399 {offsets = [0, 20], sizes = [4, 324], strides = [1, 1]} : vector<4x362xf32> to vector<4x324xf32>
    %422 = vector.extract_strided_slice %396 {offsets = [0, 20], sizes = [3, 4], strides = [1, 1]} : vector<3x36xf32> to vector<3x4xf32>
    %cst_144 = arith.constant dense<0.000000e+00> : vector<3x324xf32>
    %423 = tpu.matmul %422, %421, %cst_144 {dimension_numbers = #tpu.dot_dimension_numbers<[1], [0], [0], [1], [0, 0, 1, 1], [], []>} : vector<3x4xf32>, vector<4x324xf32>, vector<3x324xf32> -> vector<3x324xf32>
    %424 = arith.addf %420, %423 : vector<3x324xf32>
    %425 = vector.extract_strided_slice %399 {offsets = [0, 36], sizes = [4, 324], strides = [1, 1]} : vector<4x362xf32> to vector<4x324xf32>
    %426 = vector.extract_strided_slice %396 {offsets = [0, 24], sizes = [3, 4], strides = [1, 1]} : vector<3x36xf32> to vector<3x4xf32>
    %cst_145 = arith.constant dense<0.000000e+00> : vector<3x324xf32>
    %427 = tpu.matmul %426, %425, %cst_145 {dimension_numbers = #tpu.dot_dimension_numbers<[1], [0], [0], [1], [0, 0, 1, 1], [], []>} : vector<3x4xf32>, vector<4x324xf32>, vector<3x324xf32> -> vector<3x324xf32>
    %428 = arith.addf %424, %427 : vector<3x324xf32>
    %429 = vector.extract_strided_slice %399 {offsets = [0, 37], sizes = [4, 324], strides = [1, 1]} : vector<4x362xf32> to vector<4x324xf32>
    %430 = vector.extract_strided_slice %396 {offsets = [0, 28], sizes = [3, 4], strides = [1, 1]} : vector<3x36xf32> to vector<3x4xf32>
    %cst_146 = arith.constant dense<0.000000e+00> : vector<3x324xf32>
    %431 = tpu.matmul %430, %429, %cst_146 {dimension_numbers = #tpu.dot_dimension_numbers<[1], [0], [0], [1], [0, 0, 1, 1], [], []>} : vector<3x4xf32>, vector<4x324xf32>, vector<3x324xf32> -> vector<3x324xf32>
    %432 = arith.addf %428, %431 : vector<3x324xf32>
    %433 = vector.extract_strided_slice %399 {offsets = [0, 38], sizes = [4, 324], strides = [1, 1]} : vector<4x362xf32> to vector<4x324xf32>
    %434 = vector.extract_strided_slice %396 {offsets = [0, 32], sizes = [3, 4], strides = [1, 1]} : vector<3x36xf32> to vector<3x4xf32>
    %cst_147 = arith.constant dense<0.000000e+00> : vector<3x324xf32>
    %435 = tpu.matmul %434, %433, %cst_147 {dimension_numbers = #tpu.dot_dimension_numbers<[1], [0], [0], [1], [0, 0, 1, 1], [], []>} : vector<3x4xf32>, vector<4x324xf32>, vector<3x324xf32> -> vector<3x324xf32>
    %436 = arith.addf %432, %435 : vector<3x324xf32>
    %437 = vector.broadcast %397 : vector<3x1xf32> to vector<3x324xf32>
    %438 = arith.addf %436, %437 : vector<3x324xf32>
    %cst_148 = arith.constant 0.000000e+00 : f32
    %439 = vector.broadcast %cst_148 : f32 to vector<3x324xf32>
    %440 = arith.subf %439, %438 : vector<3x324xf32>
    %441 = math.exp %440 : vector<3x324xf32>
    %cst_149 = arith.constant 1.000000e+00 : f32
    %442 = vector.broadcast %cst_149 : f32 to vector<3x324xf32>
    %443 = arith.addf %442, %441 : vector<3x324xf32>
    %cst_150 = arith.constant 1.000000e+00 : f32
    %444 = vector.broadcast %cst_150 : f32 to vector<3x324xf32>
    %445 = arith.divf %444, %443 : vector<3x324xf32>
    %446 = vector.extract_strided_slice %445 {offsets = [0, 19], sizes = [3, 16], strides = [1, 1]} : vector<3x324xf32> to vector<3x16xf32>
    %447 = vector.extract_strided_slice %445 {offsets = [0, 37], sizes = [3, 16], strides = [1, 1]} : vector<3x324xf32> to vector<3x16xf32>
    %448 = vector.extract_strided_slice %445 {offsets = [0, 55], sizes = [3, 16], strides = [1, 1]} : vector<3x324xf32> to vector<3x16xf32>
    %449 = vector.extract_strided_slice %445 {offsets = [0, 73], sizes = [3, 16], strides = [1, 1]} : vector<3x324xf32> to vector<3x16xf32>
    %450 = vector.extract_strided_slice %445 {offsets = [0, 91], sizes = [3, 16], strides = [1, 1]} : vector<3x324xf32> to vector<3x16xf32>
    %451 = vector.extract_strided_slice %445 {offsets = [0, 109], sizes = [3, 16], strides = [1, 1]} : vector<3x324xf32> to vector<3x16xf32>
    %452 = vector.extract_strided_slice %445 {offsets = [0, 127], sizes = [3, 16], strides = [1, 1]} : vector<3x324xf32> to vector<3x16xf32>
    %453 = vector.extract_strided_slice %445 {offsets = [0, 145], sizes = [3, 16], strides = [1, 1]} : vector<3x324xf32> to vector<3x16xf32>
    %454 = vector.extract_strided_slice %445 {offsets = [0, 163], sizes = [3, 16], strides = [1, 1]} : vector<3x324xf32> to vector<3x16xf32>
    %455 = vector.extract_strided_slice %445 {offsets = [0, 181], sizes = [3, 16], strides = [1, 1]} : vector<3x324xf32> to vector<3x16xf32>
    %456 = vector.extract_strided_slice %445 {offsets = [0, 199], sizes = [3, 16], strides = [1, 1]} : vector<3x324xf32> to vector<3x16xf32>
    %457 = vector.extract_strided_slice %445 {offsets = [0, 217], sizes = [3, 16], strides = [1, 1]} : vector<3x324xf32> to vector<3x16xf32>
    %458 = vector.extract_strided_slice %445 {offsets = [0, 235], sizes = [3, 16], strides = [1, 1]} : vector<3x324xf32> to vector<3x16xf32>
    %459 = vector.extract_strided_slice %445 {offsets = [0, 253], sizes = [3, 16], strides = [1, 1]} : vector<3x324xf32> to vector<3x16xf32>
    %460 = vector.extract_strided_slice %445 {offsets = [0, 271], sizes = [3, 16], strides = [1, 1]} : vector<3x324xf32> to vector<3x16xf32>
    %461 = vector.extract_strided_slice %445 {offsets = [0, 289], sizes = [3, 16], strides = [1, 1]} : vector<3x324xf32> to vector<3x16xf32>
    %462 = tpu.concatenate %446, %447, %448, %449, %450, %451, %452, %453, %454, %455, %456, %457, %458, %459, %460, %461 in 1 : vector<3x16xf32>, vector<3x16xf32>, vector<3x16xf32>, vector<3x16xf32>, vector<3x16xf32>, vector<3x16xf32>, vector<3x16xf32>, vector<3x16xf32>, vector<3x16xf32>, vector<3x16xf32>, vector<3x16xf32>, vector<3x16xf32>, vector<3x16xf32>, vector<3x16xf32>, vector<3x16xf32>, vector<3x16xf32> -> vector<3x256xf32>
    %463 = vector.shape_cast %462 : vector<3x256xf32> to vector<1x3x256xf32>
    %c0_151 = arith.constant 0 : index
    %c0_152 = arith.constant 0 : index
    %c0_153 = arith.constant 0 : index
    %464 = vector.load %arg25[%c0_151, %c0_152, %c0_153] : memref<1x3x256xf32, #tpu.memory_space<vmem>>, vector<1x3x256xf32>
    tpu.vector_store %arg25[%c0_151, %c0_152, %c0_153], %463 {strides = array<i32>} : memref<1x3x256xf32, #tpu.memory_space<vmem>>, vector<1x3x256xf32>,
    return
  }
  func.func @transform_0(%arg0: i32) -> (i32, i32, i32) {
    %c0_i32 = arith.constant 0 : i32
    %c0_i32_0 = arith.constant 0 : i32
    %c0_i32_1 = arith.constant 0 : i32
    return %arg0, %c0_i32, %c0_i32_0 : i32, i32, i32
  }
  func.func @transform_1(%arg0: i32) -> (i32, i32) {
    %c0_i32 = arith.constant 0 : i32
    %c0_i32_0 = arith.constant 0 : i32
    %c0_i32_1 = arith.constant 0 : i32
    return %c0_i32, %c0_i32_0 : i32, i32
  }
  func.func @transform_2(%arg0: i32) -> (i32, i32) {
    %c0_i32 = arith.constant 0 : i32
    %c0_i32_0 = arith.constant 0 : i32
    %c0_i32_1 = arith.constant 0 : i32
    return %c0_i32, %c0_i32_0 : i32, i32
  }
  func.func @transform_3(%arg0: i32) -> (i32, i32) {
    %c0_i32 = arith.constant 0 : i32
    %c0_i32_0 = arith.constant 0 : i32
    %c0_i32_1 = arith.constant 0 : i32
    return %c0_i32, %c0_i32_0 : i32, i32
  }
  func.func @transform_4(%arg0: i32) -> (i32, i32) {
    %c0_i32 = arith.constant 0 : i32
    %c0_i32_0 = arith.constant 0 : i32
    %c0_i32_1 = arith.constant 0 : i32
    return %c0_i32, %c0_i32_0 : i32, i32
  }
  func.func @transform_5(%arg0: i32) -> (i32, i32) {
    %c0_i32 = arith.constant 0 : i32
    %c0_i32_0 = arith.constant 0 : i32
    %c0_i32_1 = arith.constant 0 : i32
    return %c0_i32, %c0_i32_0 : i32, i32
  }
  func.func @transform_6(%arg0: i32) -> (i32, i32) {
    %c0_i32 = arith.constant 0 : i32
    %c0_i32_0 = arith.constant 0 : i32
    %c0_i32_1 = arith.constant 0 : i32
    return %c0_i32, %c0_i32_0 : i32, i32
  }
  func.func @transform_7(%arg0: i32) -> (i32, i32) {
    %c0_i32 = arith.constant 0 : i32
    %c0_i32_0 = arith.constant 0 : i32
    %c0_i32_1 = arith.constant 0 : i32
    return %c0_i32, %c0_i32_0 : i32, i32
  }
  func.func @transform_8(%arg0: i32) -> (i32, i32) {
    %c0_i32 = arith.constant 0 : i32
    %c0_i32_0 = arith.constant 0 : i32
    %c0_i32_1 = arith.constant 0 : i32
    return %c0_i32, %c0_i32_0 : i32, i32
  }
  func.func @transform_9(%arg0: i32) -> (i32, i32) {
    %c0_i32 = arith.constant 0 : i32
    %c0_i32_0 = arith.constant 0 : i32
    %c0_i32_1 = arith.constant 0 : i32
    return %c0_i32, %c0_i32_0 : i32, i32
  }
  func.func @transform_10(%arg0: i32) -> (i32, i32) {
    %c0_i32 = arith.constant 0 : i32
    %c0_i32_0 = arith.constant 0 : i32
    %c0_i32_1 = arith.constant 0 : i32
    return %c0_i32, %c0_i32_0 : i32, i32
  }
  func.func @transform_11(%arg0: i32) -> (i32, i32) {
    %c0_i32 = arith.constant 0 : i32
    %c0_i32_0 = arith.constant 0 : i32
    %c0_i32_1 = arith.constant 0 : i32
    return %c0_i32, %c0_i32_0 : i32, i32
  }
  func.func @transform_12(%arg0: i32) -> (i32, i32) {
    %c0_i32 = arith.constant 0 : i32
    %c0_i32_0 = arith.constant 0 : i32
    %c0_i32_1 = arith.constant 0 : i32
    return %c0_i32, %c0_i32_0 : i32, i32
  }
  func.func @transform_13(%arg0: i32) -> (i32, i32) {
    %c0_i32 = arith.constant 0 : i32
    %c0_i32_0 = arith.constant 0 : i32
    %c0_i32_1 = arith.constant 0 : i32
    return %c0_i32, %c0_i32_0 : i32, i32
  }
  func.func @transform_14(%arg0: i32) -> (i32, i32) {
    %c0_i32 = arith.constant 0 : i32
    %c0_i32_0 = arith.constant 0 : i32
    %c0_i32_1 = arith.constant 0 : i32
    return %c0_i32, %c0_i32_0 : i32, i32
  }
  func.func @transform_15(%arg0: i32) -> (i32, i32) {
    %c0_i32 = arith.constant 0 : i32
    %c0_i32_0 = arith.constant 0 : i32
    %c0_i32_1 = arith.constant 0 : i32
    return %c0_i32, %c0_i32_0 : i32, i32
  }
  func.func @transform_16(%arg0: i32) -> (i32, i32) {
    %c0_i32 = arith.constant 0 : i32
    %c0_i32_0 = arith.constant 0 : i32
    %c0_i32_1 = arith.constant 0 : i32
    return %c0_i32, %c0_i32_0 : i32, i32
  }
  func.func @transform_17(%arg0: i32) -> (i32, i32) {
    %c0_i32 = arith.constant 0 : i32
    %c0_i32_0 = arith.constant 0 : i32
    %c0_i32_1 = arith.constant 0 : i32
    return %c0_i32, %c0_i32_0 : i32, i32
  }
  func.func @transform_18(%arg0: i32) -> (i32, i32) {
    %c0_i32 = arith.constant 0 : i32
    %c0_i32_0 = arith.constant 0 : i32
    %c0_i32_1 = arith.constant 0 : i32
    return %c0_i32, %c0_i32_0 : i32, i32
  }
  func.func @transform_19(%arg0: i32) -> (i32, i32) {
    %c0_i32 = arith.constant 0 : i32
    %c0_i32_0 = arith.constant 0 : i32
    %c0_i32_1 = arith.constant 0 : i32
    return %c0_i32, %c0_i32_0 : i32, i32
  }
  func.func @transform_20(%arg0: i32) -> (i32, i32) {
    %c0_i32 = arith.constant 0 : i32
    %c0_i32_0 = arith.constant 0 : i32
    %c0_i32_1 = arith.constant 0 : i32
    return %c0_i32, %c0_i32_0 : i32, i32
  }
  func.func @transform_21(%arg0: i32) -> (i32, i32) {
    %c0_i32 = arith.constant 0 : i32
    %c0_i32_0 = arith.constant 0 : i32
    %c0_i32_1 = arith.constant 0 : i32
    return %c0_i32, %c0_i32_0 : i32, i32
  }
  func.func @transform_22(%arg0: i32) -> (i32, i32) {
    %c0_i32 = arith.constant 0 : i32
    %c0_i32_0 = arith.constant 0 : i32
    %c0_i32_1 = arith.constant 0 : i32
    return %c0_i32, %c0_i32_0 : i32, i32
  }
  func.func @transform_23(%arg0: i32) -> (i32, i32) {
    %c0_i32 = arith.constant 0 : i32
    %c0_i32_0 = arith.constant 0 : i32
    %c0_i32_1 = arith.constant 0 : i32
    return %c0_i32, %c0_i32_0 : i32, i32
  }
  func.func @transform_24(%arg0: i32) -> (i32, i32, i32) {
    %c0_i32 = arith.constant 0 : i32
    %c0_i32_0 = arith.constant 0 : i32
    %c0_i32_1 = arith.constant 0 : i32
    return %arg0, %c0_i32, %c0_i32_0 : i32, i32, i32
  }
}

</mosaic_0001>

<bundles_post_ra>
// kernel: forward.1
= control target key start
LH: loop header
LB: loop body
LE: loop exit
PB: predicated region body
PF: predicated region fallthrough
CT: control target
= control target key end

     0   :  { %s7352_s0 = inlined_call_operand.vmem [shape: f32[2,1,256], index: 0, kind: input, shape index: {}]   ;;  %s7353_s1 = inlined_call_operand.vmem [shape: f32[4,9], index: 1, kind: input, shape index: {}]   ;;  %s7354_s2 = inlined_call_operand.vmem [shape: f32[4,1], index: 2, kind: input, shape index: {}]   ;;  %s7355_s3 = inlined_call_operand.vmem [shape: f32[8,36], index: 3, kind: input, shape index: {}]   ;;  %s7356_s4 = inlined_call_operand.vmem [shape: f32[8,1], index: 4, kind: input, shape index: {}]   ;;  %s7357_s5 = inlined_call_operand.vmem [shape: f32[16,72], index: 5, kind: input, shape index: {}]   ;;  %s7358_s6 = inlined_call_operand.vmem [shape: f32[16,1], index: 6, kind: input, shape index: {}]   ;;  %s7359_s7 = inlined_call_operand.vmem [shape: f32[16,144], index: 7, kind: input, shape index: {}]   ;;  %s7360_s8 = inlined_call_operand.vmem [shape: f32[16,1], index: 8, kind: input, shape index: {}]   ;;  %s7361_s9 = inlined_call_operand.hbm [shape: f32[16,144], index: 9, kind: input, shape index: {}]   ;;  %s7362_s10 = inlined_call_operand.vmem [shape: f32[16,1], index: 10, kind: input, shape index: {}]   ;;  %s7363_s11 = inlined_call_operand.hbm [shape: f32[8,144], index: 11, kind: input, shape index: {}]   ;;  %s7364_s12 = inlined_call_operand.vmem [shape: f32[8,1], index: 12, kind: input, shape index: {}]   ;;  %s7365_s13 = inlined_call_operand.vmem [shape: f32[4,72], index: 13, kind: input, shape index: {}]   ;;  %s7366_s14 = inlined_call_operand.vmem [shape: f32[4,1], index: 14, kind: input, shape index: {}]   ;;  %s7367_s15 = inlined_call_operand.vmem [shape: f32[3,36], index: 15, kind: input, shape index: {}]   ;;  %s7368_s16 = inlined_call_operand.vmem [shape: f32[3,1], index: 16, kind: input, shape index: {}]   ;;  %s7369_s17 = inlined_call_operand.vmem [shape: f32[1,324], index: 17, kind: input, shape index: {}]   ;;  %s7370_s18 = inlined_call_operand.hbm [shape: f32[324,100], index: 18, kind: input, shape index: {}]   ;;  %s7371_s19 = inlined_call_operand.hbm [shape: f32[100,36], index: 19, kind: input, shape index: {}]   ;;  %s7372_s20 = inlined_call_operand.hbm [shape: f32[36,16], index: 20, kind: input, shape index: {}]   ;;  %s7373_s21 = inlined_call_operand.vmem [shape: f32[16,36], index: 21, kind: input, shape index: {}]   ;;  %s7374_s22 = inlined_call_operand.vmem [shape: f32[36,100], index: 22, kind: input, shape index: {}]   ;;  %s7375_s23 = inlined_call_operand.hbm [shape: f32[100,324], index: 23, kind: input, shape index: {}]   ;;  %s7376_s24 = inlined_call_operand.vmem [shape: f32[2,3,256], index: 24, kind: output, shape index: {}]  }
   0x1   :  { %7439 = sst [smem:[#allocation17_spill]] %s7352_s0 }
   0x2   :  { %7440 = sst [smem:[#allocation18_spill]] %s7353_s1 }
   0x3   :  { %7441 = sst [smem:[#allocation19_spill]] %s7354_s2 }
   0x4   :  { %7442 = sst [smem:[#allocation20_spill]] %s7355_s3 }
   0x5   :  { %7443 = sst [smem:[#allocation21_spill]] %s7356_s4 }
   0x6   :  { %7444 = sst [smem:[#allocation22_spill]] %s7357_s5 }
   0x7   :  { %7445 = sst [smem:[#allocation23_spill]] %s7358_s6 }
   0x8   :  { %7446 = sst [smem:[#allocation24_spill]] %s7359_s7 }
   0x9   :  { %7447 = sst [smem:[#allocation25_spill]] %s7360_s8 }
   0xa   :  { %7448 = sst [smem:[#allocation26_spill]] %s7361_s9 }
   0xb   :  { %7449 = sst [smem:[#allocation27_spill]] %s7362_s10 }
   0xc   :  { %7450 = sst [smem:[#allocation28_spill]] %s7363_s11 }
   0xd   :  { %7451 = sst [smem:[#allocation29_spill]] %s7364_s12 }
   0xe   :  { %7452 = sst [smem:[#allocation30_spill]] %s7365_s13 }
   0xf   :  { %7453 = sst [smem:[#allocation31_spill]] %s7368_s16 }
  0x10   :  { %7454 = sst [smem:[#allocation32_spill]] %s7371_s19 }
  0x11   :  { %7455 = sst [smem:[#allocation33_spill]] %s7376_s24 }
  0x12   :  { %29 = vsyncpa [#allocation3], 0 }
  0x13   :  { %30 = vsyncpa [#allocation5], 0 }
  0x14   :  { %31 = vsyncpa [#allocation8], 0 }
  0x15   :  { %32 = vsyncpa [#allocation11], 0  ;;  %s6449_s5 = smov 0  }
  0x16 LB: > { %7456 = sst [smem:[#allocation16_spill]] %s6242_s5  ;;  %s6458_s6 = sadd.s32 4294967295, %s6242_s5   ;;  %s6242_s5 = sphi %s6449_s5, %s38_s5  }
  0x17   : > { %s7457_s11 = sld [smem:[#allocation28_spill]]  ;;  %p5466_p0 = scmp.ge.s32.totalorder %s6242_s5, 1 }
  0x18   : > { %p578_p1 = scmp.lt.s32.totalorder %s6242_s5, 3  ;;  %p5757_p2 = scmp.eq.s32.totalorder %s6458_s6, 0 }
  0x19   : > { %s6244_s29 = smov [#allocation4]   ;;  %s7459_s19 = sld [smem:[#allocation32_spill]] }
  0x1a   : > { %p6463_p3 = pnand %p5466_p0, %p578_p1  ;;  %s633_s0 = sshll.u32 %s6244_s29, 4  ;;  %s634_s0 = int_to_ptr.vmem [resolvable:$true] %s633_s0 }
  0x1b   : > { %s6245_s8 = smov [#allocation7]   ;;  %s7461_s9 = sld [smem:[#allocation26_spill]] }
  0x1c   : > { %p5738_p4 = pneg %p6463_p3  ;;  %s676_s4 = sshll.u32 %s6245_s8, 4  ;;  %s677_s4 = int_to_ptr.vmem [resolvable:$true] %s676_s4 }
  0x1d   : > { %s631_s28 = sshll.u32 %s7457_s11, 4  ;;  %s6246_s29 = smov 128   ;;  %s632_s28 = int_to_ptr.hbm [resolvable:$true] %s631_s28 }
  0x1e   : > { %p6474_p5 = pnand %p5757_p2, %p5738_p4  ;;  %s6247_s7 = smov 8  }
  0x1f   : > { %s674_s3 = sshll.u32 %s7459_s19, 4  ;;  %s6248_s30 = smov [#allocation2]   ;;  %s675_s3 = int_to_ptr.hbm [resolvable:$true] %s674_s3 }
  0x20   : > { %5744 = dma.hbm_to_vmem [thread:$0]  (!%p6474_p5), %s632_s28, 256, %s634_s0, [#allocation5]  }
  0x21   : > { %s613_s27 = sshll.u32 %s7461_s9, 4  ;;  %s615_s11 = sshll.u32 %s6248_s30, 4  ;;  %s614_s27 = int_to_ptr.hbm [resolvable:$true] %s613_s27  ;;  %s616_s11 = int_to_ptr.vmem [resolvable:$true] %s615_s11 }
  0x22   : > { %5750 = dma.hbm_to_vmem [thread:$0]  (!%p6474_p5), %s675_s3, 1664, %s677_s4, [#allocation8], %s6246_s29, %s6246_s29, %s6247_s7  }
  0x23   : > { %s6249_s19 = smov 256   ;;  %s6250_s5 = smov 16  }
  0x24   : > { %5741 = dma.hbm_to_vmem [thread:$0]  (!%p6474_p5), %s614_s27, 512, %s616_s11, [#allocation3], %s6249_s19, %s6249_s19, %s6250_s5  }
  0x25   : > { %s660_s26 = sshll.u32 %s7370_s18, 4  ;;  %s6251_s28 = smov [#allocation6]   ;;  %s661_s26 = int_to_ptr.hbm [resolvable:$true] %s660_s26 }
  0x26   : > { %s662_s0 = sshll.u32 %s6251_s28, 4  ;;  %s688_s4 = sshll.u32 %s7372_s20, 4  ;;  %s663_s0 = int_to_ptr.vmem [resolvable:$true] %s662_s0  ;;  %s689_s4 = int_to_ptr.hbm [resolvable:$true] %s688_s4 }
  0x27   : > { %5747 = dma.hbm_to_vmem [thread:$0]  (!%p6474_p5), %s661_s26, 5248, %s663_s0, [#allocation5], %s6246_s29, %s6246_s29, %s6247_s7  }
  0x28   : > { %s6252_s30 = smov [#allocation9]   ;;  %s708_s19 = sshll.u32 %s7375_s23, 4  ;;  %s709_s19 = int_to_ptr.hbm [resolvable:$true] %s708_s19 }
  0x29   : > { %s690_s24 = sshll.u32 %s6252_s30, 4  ;;  %s6253_s5 = smov [#allocation10]   ;;  %s691_s24 = int_to_ptr.vmem [resolvable:$true] %s690_s24 }
  0x2a   : > { %5753 = dma.hbm_to_vmem [thread:$0]  (!%p6474_p5), %s689_s4, 640, %s691_s24, [#allocation8], %s6246_s29, %s6246_s29, %s6247_s7  }
  0x2b   : > { %s710_s27 = sshll.u32 %s6253_s5, 4  ;;  %s6254_s8 = smov 384   ;;  %s711_s27 = int_to_ptr.vmem [resolvable:$true] %s710_s27 }
  0x2c   : > { %s6255_s1 = smov 24   ;;  %733 = sbr.rel (%p6463_p3) target bundleno = 4537 (0x11b9), region = 116 }
  0x2d   : > { %5756 = dma.hbm_to_vmem [thread:$0]  (!%p6474_p5), %s709_s19, 4992, %s711_s27, [#allocation11], %s6254_s8, %s6254_s8, %s6255_s1  }
  0x31   : > { %6225 = dma.done.wait (%p5757_p2), [#allocation3], 512  }
  0x32   : > { %6227 = vsyncadd (%p5757_p2), [#allocation3], 4294966784 }
  0x33   : > { %6229 = dma.done.wait (%p5757_p2), [#allocation5], 5504  }
  0x34   : > { %6231 = vsyncadd (%p5757_p2), [#allocation5], 4294961792 }
  0x35   : > { %6233 = dma.done.wait (%p5757_p2), [#allocation8], 2304  }
  0x36   : > { %6235 = vsyncadd (%p5757_p2), [#allocation8], 4294964992 }
  0x37   : > { %6237 = dma.done.wait (%p5757_p2), [#allocation11], 4992  }
  0x38   : > { %6239 = vsyncadd (%p5757_p2), [#allocation11], 4294962304  ;;  %p824_p6 = scmp.lt.s32.totalorder %s6458_s6, 1  ;;  %s7462_s2 = sld [smem:[#allocation17_spill]]  ;;  %v6272_v3 = vmov 0.0   ;;  %v6273_v5 = vmov 2  }
  0x39   : > { %s6256_s29 = smov 98   ;;  %s6257_s7 = smov 49   ;;  %5858 = vset.pattern.permute.xlu2 %v6273_v5  ;;  %vm895_vm0 = vcmask 7168   ;;  %vm897_vm1 = vcmask 138240   ;;  %vm899_vm2 = vcmask 146432   ;;  %vm851_vm3 = vcmask 154624  }
  0x3a   : > { %s7554_s6 = smov (!%p824_p6, %s6458_s6), 1  ;;  %s7386_s26 = smov 100   ;;  %vm931_vm4 = vcmask 130048   ;;  %vm853_vm5 = vcmask 285696   ;;  %vm855_vm6 = vcmask 293888   ;;  %vm935_vm7 = vcmask 277504  }
  0x3b   : > { %s5481_s9 = sshll.u32 %s7554_s6, 1  ;;  %s6259_s28 = smov 51   ;;  %vm857_vm8 = vcmask 302080   ;;  %vm859_vm9 = vcmask 433152   ;;  %vm939_vm10 = vcmask 424960   ;;  %v6274_v22 = vmov 1  }
  0x3c   : > { %s7428_s0 = smov 96   ;;  %s6261_s3 = smov 53   ;;  %5857 = vset.pattern.permute.xlu1 %v6274_v22  ;;  %vm861_vm11 = vcmask 441344   ;;  %vm863_vm12 = vcmask 449536   ;;  %vm943_vm13 = vcmask 572416   ;;  %vm865_vm14 = vcmask 580608  }
  0x3d   : > { %s6262_s4 = smov 55   ;;  %s6263_s30 = smov 102   ;;  %vm867_vm15 = vcmask 588800   ;;  %v6277_v56 = vmov 5   ;;  %v6278_v57 = vmov 7   ;;  %v6279_v58 = vmov 4  }
  0x3e   : > { %s827_s25 = scalar_lea.vmem %s7462_s2, %s5481_s9  ;;  %s7398_s11 = smov 104   ;;  %v6280_v59 = vmov 3   ;;  %v6281_v60 = vmov 0   ;;  %v6282_v61 = vmov 6   ;;  %v6283_v62 = vmov 8  }
  0x3f   : > { %v833_v0 = vld [vmem:[%s827_s25] sm:$0x3]  ;;  %s7382_s19 = smov 106   ;;  %s6266_s5 = smov 57   ;;  %5859 = vset.pattern.permute.xlu0 %v6280_v59 }
  0x40   : > { %v888_v1 = vperm.slane %v833_v0, 1  ;;  %v835_v2 = vperm.slane %v833_v0, 0  ;;  %s7400_s27 = smov 19   ;;  %s6268_s8 = smov 21  }
  0x41   : > { %s6269_s1 = smov 23   ;;  %s6270_s9 = smov 25  }
  0x42   : > { %916 = vrot.lane.b32.xlu1 %v888_v1, %s6256_s29  ;;  %879 = vrot.lane.b32.xlu0 %v835_v2, %s6257_s7  ;;  %s6271_s16 = smov 27   ;;  %s6275_s24 = smov 71  }
  0x43   : > { %919 = vrot.lane.b32.xlu2 %v888_v1, %s7386_s26  ;;  %s7402_s2 = smov 108   ;;  %s7433_s25 = smov 116  }
  0x44   : > { %s7426_s29 = smov 120   ;;  %s7476_s10 = sld [smem:[#allocation27_spill]] }
  0x45   : > { %s7488_s12 = sld [smem:[#allocation29_spill]] }
  0x46   : > { %s7490_s13 = sld [smem:[#allocation30_spill]] }
  0x4a   : > { %882 = vrot.lane.b32.xlu1 %v835_v2, %s6259_s28  ;;  %913 = vrot.lane.b32.xlu0 %v888_v1, %s7428_s0  ;;  %s7417_s28 = smov 126  }
  0x4b   : > { %885 = vrot.lane.b32.xlu2 %v835_v2, %s6261_s3  ;;  %s7415_s3 = smov 127  }
  0x52   : > { %889 = vrot.lane.b32.xlu1 %v888_v1, %s6262_s4  ;;  %922 = vrot.lane.b32.xlu0 %v888_v1, %s6263_s30  ;;  %s7396_s4 = smov 110   ;;  %s7394_s30 = smov 109  }
  0x53   : > { %925 = vrot.lane.b32.xlu2 %v888_v1, %s7398_s11 }
  0x5a   : > { %928 = vrot.lane.b32.xlu1 %v888_v1, %s7382_s19  ;;  %892 = vrot.lane.b32.xlu0 %v888_v1, %s6266_s5  ;;  %s7392_s5 = smov 92   ;;  %s7430_s19 = smov 112  }
  0x5b   : > { %836 = vrot.lane.b32.xlu2 %v835_v2, %s7400_s27 }
  0x62   : > { %839 = vrot.lane.b32.xlu0 %v835_v2, %s6268_s8  ;;  %842 = vrot.lane.b32.xlu1 %v835_v2, %s6269_s1  ;;  %s7390_s8 = smov 91   ;;  %s7388_s1 = smov 90  }
  0x63   : > { %845 = vrot.lane.b32.xlu2 %v835_v2, %s6270_s9  ;;  %s7404_s9 = smov 88  }
  0x6a   : > { %848 = vrot.lane.b32.xlu0 %v835_v2, %s6271_s16  ;;  %s7465_s16 = sld [smem:[#allocation20_spill]] }
  0x72   : > { %960 = vrot.lane.b32.xlu0 %v6272_v3, %s6257_s7  ;;  %s7463_s7 = sld [smem:[#allocation18_spill]] }
  0x78   : > { %v969_v51 = vld [vmem:[%s7463_s7] sm:$0xf]  ;;  %s7409_s7 = smov 107  }
  0x7a   : > { %1053 = vperm.xlu0 %5859, %v969_v51  }
  0x82   : > { %5864 = vset.pattern.permute.xlu0 %v6283_v62 }
  0x83   : > { %1176 = vperm.xlu0 %5864, %v969_v51  }
  0x8b   : > { %5866 = vset.pattern.permute.xlu0 %v6281_v60 }
  0x9d   : > { %v920_v4 = vpop.permute.xlu2 %919 }
  0xa5   : > { %v886_v10 = vpop.permute.xlu2 %885 }
  0xad   : > { %v926_v27 = vpop.permute.xlu2 %925 }
  0xb4   : > { %v917_v6 = vpop.permute.xlu1 %916  ;;  %v880_v7 = vpop.permute.xlu0 %879 }
  0xb5   : > { %v896_v8 = vsel %vm895_vm0, 0.0, %v880_v7  ;;  %vm947_vm0 = vcmask 719872   ;;  %v837_v39 = vpop.permute.xlu2 %836 }
  0xb6   : > { %v898_v9 = vsel %vm897_vm1, %v896_v8, 0.0  ;;  %v852_v44 = vsel %vm851_vm3, 0.0, %v837_v39 }
  0xb7   : > { %v900_v11 = vsel %vm899_vm2, %v898_v9, 0.0  ;;  %v854_v49 = vsel %vm853_vm5, %v852_v44, 0.0 }
  0xb8   : > { %v856_v50 = vsel %vm855_vm6, %v854_v49, 0.0 }
  0xbc   : > { %v883_v12 = vpop.permute.xlu1 %882  ;;  %v914_v13 = vpop.permute.xlu0 %913 }
  0xbd   : > { %v901_v14 = vsel %vm851_vm3, %v900_v11, %v883_v12  ;;  %v932_v15 = vsel %vm931_vm4, %v914_v13, 0.0  ;;  %v846_v0 = vpop.permute.xlu2 %845 }
  0xbe   : > { %v902_v16 = vsel %vm853_vm5, %v901_v14, 0.0  ;;  %v933_v17 = vsel %vm897_vm1, %v932_v15, 0.0  ;;  %vm871_vm1 = vcmask 728064  }
  0xbf   : > { %v903_v18 = vsel %vm855_vm6, %v902_v16, 0.0  ;;  %v934_v19 = vsel %vm899_vm2, %v933_v17, %v917_v6  ;;  %vm869_vm2 = vcmask 596992  }
  0xc0   : > { %v936_v20 = vsel %vm935_vm7, %v934_v19, 0.0  ;;  %v904_v21 = vsel %vm857_vm8, %v903_v18, %v886_v10  ;;  %vm7385_vm7 = vcmask 736256  }
  0xc1   : > { %v937_v23 = vsel %vm853_vm5, %v936_v20, 0.0  ;;  %v905_v24 = vsel %vm859_vm9, %v904_v21, 0.0  ;;  %vm966_vm5 = vcmask 400384  }
  0xc2   : > { %v938_v25 = vsel %vm855_vm6, %v937_v23, %v920_v4  ;;  %v906_v31 = vsel %vm861_vm11, %v905_v24, 0.0 }
  0xc3   : > { %v940_v26 = vsel %vm939_vm10, %v938_v25, 0.0  ;;  %vm7425_vm10 = vcmask 883712  }
  0xc4   : > { %v890_v28 = vpop.permute.xlu1 %889  ;;  %v941_v29 = vsel %vm859_vm9, %v940_v26, 0.0  ;;  %v923_v30 = vpop.permute.xlu0 %922 }
  0xc5   : > { %v942_v32 = vsel %vm861_vm11, %v941_v29, %v923_v30  ;;  %v907_v33 = vsel %vm863_vm12, %v906_v31, %v890_v28 }
  0xc6   : > { %v944_v34 = vsel %vm943_vm13, %v942_v32, 0.0  ;;  %v908_v37 = vsel %vm865_vm14, %v907_v33, 0.0  ;;  %vm1043_vm13 = vcmask 1031168  }
  0xc7   : > { %v945_v35 = vsel %vm865_vm14, %v944_v34, 0.0  ;;  %v909_v40 = vsel %vm867_vm15, %v908_v37, 0.0 }
  0xc8   : > { %v946_v36 = vsel %vm867_vm15, %v945_v35, %v926_v27 }
  0xc9   : > { %v948_v38 = vsel %vm947_vm0, %v946_v36, 0.0  ;;  %vm7406_vm0 = vcmask 752640  }
  0xca   : > { %v949_v41 = vsel %vm871_vm1, %v948_v38, 0.0 }
  0xcc   : > { %v929_v42 = vpop.permute.xlu1 %928  ;;  %v893_v43 = vpop.permute.xlu0 %892 }
  0xcd   : > { %v910_v45 = vsel %vm869_vm2, %v909_v40, %v893_v43  ;;  %v950_v46 = vsel %vm7385_vm7, %v949_v41, %v929_v42 }
  0xce   : > { %956 = vrot.lane.b32.xlu2 %v950_v46, %s6275_s24  ;;  %v911_v47 = vsel %vm871_vm1, %v910_v45, 0.0  ;;  %s7464_s24 = sld [smem:[#allocation19_spill]] }
  0xcf   : > { %v912_v48 = vsel %vm7385_vm7, %v911_v47, 0.0 }
  0xd0   : > { %952 = vrot.lane.b32.xlu1 %v912_v48, %s7402_s2 }
  0xd4   : > { %v840_v52 = vpop.permute.xlu0 %839  ;;  %v843_v4 = vpop.permute.xlu1 %842 }
  0xd5   : > { %v858_v53 = vsel %vm857_vm8, %v856_v50, %v840_v52  ;;  %vm7407_vm8 = vcmask 744448  }
  0xd6   : > { %1028 = vperm.xlu2 %5858, %v969_v51   ;;  %v860_v54 = vsel %vm859_vm9, %v858_v53, 0.0  ;;  %vm877_vm9 = vcmask 875520  }
  0xd7   : > { %v862_v55 = vsel %vm861_vm11, %v860_v54, 0.0  ;;  %vm986_vm11 = vcmask 711680  }
  0xd8   : > { %1003 = vperm.xlu1 %5857, %v969_v51   ;;  %v864_v5 = vsel %vm863_vm12, %v862_v55, %v843_v4  ;;  %vm1018_vm12 = vcmask 1039360  }
  0xd9   : > { %v866_v6 = vsel %vm865_vm14, %v864_v5, 0.0 }
  0xda   : > { %v868_v7 = vsel %vm867_vm15, %v866_v6, 0.0  ;;  %vm7424_vm15 = vcmask 891904  }
  0xdb   : > { %v870_v8 = vsel %vm869_vm2, %v868_v7, %v846_v0 }
  0xdc   : > { %v849_v63 = vpop.permute.xlu0 %848  ;;  %v872_v9 = vsel %vm871_vm1, %v870_v8, 0.0 }
  0xdd   : > { %v874_v10 = vsel %vm7385_vm7, %v872_v9, 0.0 }
  0xde   : > { %5861 = vset.pattern.permute.xlu2 %v6277_v56  ;;  %v876_v11 = vsel %vm7407_vm8, %v874_v10, %v849_v63  ;;  %v970_v56 = vld [vmem:[%s7464_s24] sm:$0xf]  ;;  %s7387_s24 = smov 124  }
  0xdf   : > { %1103 = vperm.xlu2 %5861, %v969_v51   ;;  %v878_v13 = vsel %vm877_vm9, %v876_v11, 0.0  ;;  %vm1259_vm9 = vcmask 1043456  }
  0xe0   : > { %5860 = vset.pattern.permute.xlu1 %v6279_v58 }
  0xe1   : > { %1078 = vperm.xlu1 %5860, %v969_v51  }
  0xe4   : > { %v961_v1 = vpop.permute.xlu0 %960 }
  0xe7   : > { %5863 = vset.pattern.permute.xlu2 %v6278_v57 }
  0xe8   : > { %1152 = vperm.xlu2 %5863, %v969_v51  }
  0xe9   : > { %5862 = vset.pattern.permute.xlu1 %v6282_v61 }
  0xea   : > { %1127 = vperm.xlu1 %5862, %v969_v51  }
  0xec   : > { %v1054_v20 = vpop.permute.xlu0 %1053 }
  0xf0   : > { %5907 = vset.pattern.permute.xlu2 %v6281_v60 }
  0xf2   : > { %5865 = vset.pattern.permute.xlu1 %v6281_v60 }
  0xf3   : > { %990 = vperm.xlu1 %5865, %v969_v51  }
  0xf5   : > { %v6584_v23 = vpop.permute.xlu0 %1176 }
 0x128   : > { %v957_v2 = vpop.permute.xlu2 %956 }
 0x129   : > { %v967_v3 = vsel %vm966_vm5, %v957_v2, %v961_v1 }
 0x12a   : > { %978 = vrot.lane.b32.xlu2 %v967_v3, %s7400_s27 }
 0x130   : > { %v1029_v18 = vpop.permute.xlu2 %1028 }
 0x139   : > { %v1104_v21 = vpop.permute.xlu2 %1103 }
 0x142   : > { %v953_v12 = vpop.permute.xlu1 %952  ;;  %v1153_v24 = vpop.permute.xlu2 %1152 }
 0x143   : > { %v965_v14 = vsel %vm865_vm14, %v953_v12, %v957_v2  ;;  %v964_v15 = vsel %vm7425_vm10, %v878_v13, %v953_v12  ;;  %vm1068_vm14 = vcmask 900096  }
 0x144   : > { %976 = vrot.lane.b32.xlu1 %v965_v14, %s7400_s27  ;;  %974 = vrot.lane.b32.xlu0 %v964_v15, %s7400_s27 }
 0x14a   : > { %v1004_v16 = vpop.permute.xlu1 %1003 }
 0x153   : > { %v1079_v17 = vpop.permute.xlu1 %1078 }
 0x15c   : > { %v1128_v19 = vpop.permute.xlu1 %1127 }
 0x165   : > { %v6582_v22 = vpop.permute.xlu1 %990 }
 0x184   : > { %v979_v27 = vpop.permute.xlu2 %978 }
 0x1b6   : > { %v977_v25 = vpop.permute.xlu1 %976  ;;  %v975_v26 = vpop.permute.xlu0 %974 }
 0x1b7   : > { %v980_v28 = vsel %vm851_vm3, %v975_v26, %v977_v25  ;;  %v985_v29 = vsel %vm851_vm3, 0.0, %v975_v26  ;;  %v981_v30 = vsel %vm851_vm3, %v977_v25, %v979_v27 }
 0x1b8   : > { %v6589_v31 = vperm.slane %v985_v29, 0  ;;  %v6591_v32 = vperm.slane %v980_v28, 0  ;;  %v987_v36 = vsel %vm986_vm11, %v981_v30, 0.0 }
 0x1b9   : > { %v6600_v37 = vperm.slane %v987_v36, 0 }
 0x1ba   : > { %v1031_v33 = vmul.f32 %v1029_v18, %v6589_v31  ;;  %v1006_v34 = vmul.f32 %v1004_v16, %v6589_v31  ;;  %v1007_v35 = vmul.f32 %v1004_v16, %v6591_v32  ;;  %v1056_v38 = vmul.f32 %v1054_v20, %v6589_v31 }
 0x1bb   : > { %v1008_v39 = vmul.f32 %v1004_v16, %v6600_v37  ;;  %v1032_v40 = vmul.f32 %v1029_v18, %v6591_v32  ;;  %v1081_v41 = vmul.f32 %v1079_v17, %v6589_v31  ;;  %v1033_v42 = vmul.f32 %v1029_v18, %v6600_v37 }
 0x1bc   : > { %1037 = vrot.lane.b32.xlu0 %v1031_v33, %s7417_s28  ;;  %1012 = vrot.lane.b32.xlu2 %v1006_v34, %s7415_s3  ;;  %v1057_v43 = vmul.f32 %v1054_v20, %v6591_v32  ;;  %v1106_v44 = vmul.f32 %v1104_v21, %v6589_v31  ;;  %v1058_v45 = vmul.f32 %v1054_v20, %v6600_v37 }
 0x1bd   : > { %1014 = vrot.lane.b32.xlu1 %v1007_v35, %s7415_s3  ;;  %v1082_v46 = vmul.f32 %v1079_v17, %v6591_v32  ;;  %v1130_v47 = vmul.f32 %v1128_v19, %v6589_v31  ;;  %v1083_v48 = vmul.f32 %v1079_v17, %v6600_v37  ;;  %v1107_v49 = vmul.f32 %v1104_v21, %v6591_v32 }
 0x1be   : > { %v1155_v50 = vmul.f32 %v1153_v24, %v6589_v31  ;;  %v1108_v51 = vmul.f32 %v1104_v21, %v6600_v37  ;;  %v1131_v52 = vmul.f32 %v1128_v19, %v6591_v32  ;;  %v1179_v53 = vmul.f32 %v6584_v23, %v6589_v31 }
 0x1bf   : > { %v1132_v54 = vmul.f32 %v1128_v19, %v6600_v37  ;;  %v1156_v55 = vmul.f32 %v1153_v24, %v6591_v32  ;;  %v1157_v57 = vmul.f32 %v1153_v24, %v6600_v37  ;;  %v1180_v58 = vmul.f32 %v6584_v23, %v6591_v32 }
 0x1c0   : > { %v1181_v59 = vmul.f32 %v6584_v23, %v6600_v37  ;;  %v996_v17 = vmul.f32 %v6589_v31, %v6582_v22  ;;  %v997_v18 = vmul.f32 %v6591_v32, %v6582_v22  ;;  %v998_v19 = vmul.f32 %v6600_v37, %v6582_v22 }
 0x1c4   : > { %1062 = vrot.lane.b32.xlu0 %v1056_v38, %s7396_s4  ;;  %1016 = vrot.lane.b32.xlu2 %v1008_v39, %s7415_s3 }
 0x1c5   : > { %1039 = vrot.lane.b32.xlu1 %v1032_v40, %s7417_s28 }
 0x1cc   : > { %1087 = vrot.lane.b32.xlu0 %v1081_v41, %s7394_s30  ;;  %1041 = vrot.lane.b32.xlu2 %v1033_v42, %s7417_s28 }
 0x1cd   : > { %1064 = vrot.lane.b32.xlu1 %v1057_v43, %s7396_s4 }
 0x1d4   : > { %1112 = vrot.lane.b32.xlu0 %v1106_v44, %s7402_s2  ;;  %1066 = vrot.lane.b32.xlu2 %v1058_v45, %s7396_s4 }
 0x1d5   : > { %1089 = vrot.lane.b32.xlu1 %v1082_v46, %s7394_s30 }
 0x1dc   : > { %1136 = vrot.lane.b32.xlu0 %v1130_v47, %s7392_s5  ;;  %1091 = vrot.lane.b32.xlu2 %v1083_v48, %s7394_s30 }
 0x1dd   : > { %1114 = vrot.lane.b32.xlu1 %v1107_v49, %s7402_s2 }
 0x1e4   : > { %1161 = vrot.lane.b32.xlu0 %v1155_v50, %s7390_s8  ;;  %1116 = vrot.lane.b32.xlu2 %v1108_v51, %s7402_s2 }
 0x1e5   : > { %1138 = vrot.lane.b32.xlu1 %v1131_v52, %s7392_s5 }
 0x1ec   : > { %1185 = vrot.lane.b32.xlu0 %v1179_v53, %s7388_s1  ;;  %1140 = vrot.lane.b32.xlu2 %v1132_v54, %s7392_s5 }
 0x1ed   : > { %1163 = vrot.lane.b32.xlu1 %v1156_v55, %s7390_s8 }
 0x1f4   : > { %1201 = vperm.xlu0 %5866, %v970_v56   ;;  %1165 = vrot.lane.b32.xlu2 %v1157_v57, %s7390_s8 }
 0x1f5   : > { %1187 = vrot.lane.b32.xlu1 %v1180_v58, %s7388_s1 }
 0x1fc   : > { %1189 = vrot.lane.b32.xlu2 %v1181_v59, %s7388_s1 }
 0x216   : > { %v1013_v60 = vpop.permute.xlu2 %1012 }
 0x21e   : > { %v1017_v61 = vpop.permute.xlu2 %1016 }
 0x21f   : > { %v1026_v25 = vadd.f32 %v1017_v61, %v998_v19 }
 0x226   : > { %v1042_v62 = vpop.permute.xlu2 %1041 }
 0x227   : > { %v1051_v31 = vadd.f32 %v1042_v62, %v1026_v25 }
 0x22e   : > { %v1038_v63 = vpop.permute.xlu0 %1037  ;;  %v1067_v1 = vpop.permute.xlu2 %1066 }
 0x22f   : > { %v1015_v0 = vpop.permute.xlu1 %1014  ;;  %v1076_v37 = vadd.f32 %v1067_v1, %v1051_v31 }
 0x230   : > { %v1019_v15 = vsel %vm1018_vm12, %v1013_v60, %v1015_v0  ;;  %v1020_v16 = vsel %vm1018_vm12, %v1015_v0, %v1017_v61 }
 0x231   : > { %v1024_v23 = vadd.f32 %v1019_v15, %v996_v17  ;;  %v1025_v24 = vadd.f32 %v1020_v16, %v997_v18  ;;  %v6692_v16 = vld [vmem:[%s7465_s16] sm:$0xff]  ;;  %s7466_s16 = sld [smem:[#allocation21_spill]] }
 0x232   : > { %1475 = vrot.lane.b32.xlu0 %v6692_v16, %s7433_s25 }
 0x236   : > { %v1063_v2 = vpop.permute.xlu0 %1062  ;;  %v1092_v5 = vpop.permute.xlu2 %1091 }
 0x237   : > { %v1040_v3 = vpop.permute.xlu1 %1039  ;;  %v1101_v42 = vadd.f32 %v1092_v5, %v1076_v37  ;;  %v1227_v25 = vld [vmem:[%s7466_s16] sm:$0xff]  ;;  %s7467_s16 = sld [smem:[#allocation22_spill]] }
 0x238   : > { %v1044_v20 = vsel %vm1043_vm13, %v1038_v63, %v1040_v3  ;;  %v1045_v21 = vsel %vm1043_vm13, %v1040_v3, %v1042_v62 }
 0x239   : > { %v1049_v28 = vadd.f32 %v1044_v20, %v1024_v23  ;;  %v1050_v29 = vadd.f32 %v1045_v21, %v1025_v24 }
 0x23e   : > { %v1088_v4 = vpop.permute.xlu0 %1087  ;;  %v1117_v9 = vpop.permute.xlu2 %1116 }
 0x23f   : > { %v1065_v6 = vpop.permute.xlu1 %1064  ;;  %v1125_v47 = vadd.f32 %v1117_v9, %v1101_v42 }
 0x240   : > { %v1069_v26 = vsel %vm1068_vm14, %v1063_v2, %v1065_v6  ;;  %v1070_v27 = vsel %vm1068_vm14, %v1065_v6, %v1067_v1  ;;  %v6675_v2 = vld [vmem:[%s7369_s17] sm:$0x7] }
 0x241   : > { %v1074_v33 = vadd.f32 %v1069_v26, %v1049_v28  ;;  %v1075_v34 = vadd.f32 %v1070_v27, %v1050_v29 }
 0x246   : > { %v1113_v7 = vpop.permute.xlu0 %1112  ;;  %v1141_v12 = vpop.permute.xlu2 %1140 }
 0x247   : > { %v1090_v8 = vpop.permute.xlu1 %1089  ;;  %v1150_v52 = vadd.f32 %v1141_v12, %v1125_v47 }
 0x248   : > { %v1094_v32 = vsel %vm7424_vm15, %v1088_v4, %v1090_v8  ;;  %v1095_v22 = vsel %vm7424_vm15, %v1090_v8, %v1092_v5  ;;  %v1217_v4 = vperm.slane %v6675_v2, 0  ;;  %v1218_v5 = vperm.slane %v6675_v2, 1 }
 0x249   : > { %v1099_v40 = vadd.f32 %v1094_v32, %v1074_v33  ;;  %v1100_v41 = vadd.f32 %v1095_v22, %v1075_v34 }
 0x24e   : > { %v1137_v10 = vpop.permute.xlu0 %1136  ;;  %v1166_v30 = vpop.permute.xlu2 %1165 }
 0x24f   : > { %v1115_v11 = vpop.permute.xlu1 %1114  ;;  %v1174_v57 = vadd.f32 %v1166_v30, %v1150_v52 }
 0x250   : > { %v1118_v38 = vsel %vm7425_vm10, %v1113_v7, %v1115_v11  ;;  %v1119_v39 = vsel %vm7425_vm10, %v1115_v11, %v1117_v9 }
 0x251   : > { %v1123_v45 = vadd.f32 %v1118_v38, %v1099_v40  ;;  %v1124_v46 = vadd.f32 %v1119_v39, %v1100_v41 }
 0x256   : > { %v1162_v13 = vpop.permute.xlu0 %1161  ;;  %v1190_v53 = vpop.permute.xlu2 %1189 }
 0x257   : > { %v1139_v14 = vpop.permute.xlu1 %1138  ;;  %v1198_v63 = vadd.f32 %v1190_v53, %v1174_v57 }
 0x258   : > { %v1143_v43 = vsel %vm7406_vm0, %v1137_v10, %v1139_v14  ;;  %v1144_v44 = vsel %vm7406_vm0, %v1139_v14, %v1141_v12 }
 0x259   : > { %v1148_v50 = vadd.f32 %v1143_v43, %v1123_v45  ;;  %v1149_v51 = vadd.f32 %v1144_v44, %v1124_v46 }
 0x25e   : > { %v1186_v35 = vpop.permute.xlu0 %1185 }
 0x25f   : > { %v1164_v36 = vpop.permute.xlu1 %1163 }
 0x260   : > { %v1167_v48 = vsel %vm7407_vm8, %v1162_v13, %v1164_v36  ;;  %v1168_v49 = vsel %vm7407_vm8, %v1164_v36, %v1166_v30  ;;  %v1219_v13 = vperm.slane %v6675_v2, 2 }
 0x261   : > { %v1172_v54 = vadd.f32 %v1167_v48, %v1148_v50  ;;  %v1173_v55 = vadd.f32 %v1168_v49, %v1149_v51 }
 0x266   : > { %v1202_v60 = vpop.permute.xlu0 %1201 }
 0x267   : > { %v1188_v56 = vpop.permute.xlu1 %1187  ;;  %v1206_v3 = vadd.f32 %v1202_v60, %v1198_v63 }
 0x268   : > { %v1191_v58 = vsel %vm7385_vm7, %v1186_v35, %v1188_v56  ;;  %v1192_v59 = vsel %vm7385_vm7, %v1188_v56, %v1190_v53 }
 0x269   : > { %v1196_v61 = vadd.f32 %v1191_v58, %v1172_v54  ;;  %v1197_v62 = vadd.f32 %v1192_v59, %v1173_v55  ;;  %v1212_v12 = vmul.f32 0.01, %v1206_v3  ;;  %vm1209_vm5 = vcmp.ge.f32.partialorder %v1206_v3, 0.0 }
 0x26b   : > { %v1204_v0 = vadd.f32 %v1202_v60, %v1196_v61  ;;  %v1205_v1 = vadd.f32 %v1202_v60, %v1197_v62  ;;  %v1215_v14 = vsel %vm1209_vm5, %v1206_v3, %v1212_v12  ;;  %v1993_v12 = vld [vmem:[#allocation6 + $0x78] sm:$0xff] }
 0x26c   : > { %v1225_v15 = vmul.f32 %v1219_v13, %v1215_v14  ;;  %v1992_v14 = vld [vmem:[#allocation6 + $0x70] sm:$0xff] }
 0x26d   : > { %vm1207_vm1 = vcmp.ge.f32.partialorder %v1204_v0, 0.0  ;;  %v1210_v6 = vmul.f32 0.01, %v1204_v0  ;;  %vm1208_vm2 = vcmp.ge.f32.partialorder %v1205_v1, 0.0  ;;  %v1211_v7 = vmul.f32 0.01, %v1205_v1 }
 0x26f   : > { %v1213_v8 = vsel %vm1207_vm1, %v1204_v0, %v1210_v6  ;;  %v1214_v9 = vsel %vm1208_vm2, %v1205_v1, %v1211_v7  ;;  %vm7384_vm1 = vcmask 31744  }
 0x270   : > { %v1223_v10 = vmul.f32 %v1217_v4, %v1213_v8  ;;  %v1224_v11 = vmul.f32 %v1218_v5, %v1214_v9 }
 0x272   : > { %1231 = vrot.lane.b32.xlu1 %v1223_v10, %s7400_s27  ;;  %1233 = vrot.lane.b32.xlu2 %v1224_v11, %s7400_s27 }
 0x27a   : > { %1235 = vrot.lane.b32.xlu1 %v1225_v15, %s7400_s27  ;;  %1394 = vrot.lane.b32.xlu2 %v6692_v16, %s7426_s29  ;;  %v1991_v15 = vld [vmem:[#allocation6 + $0x68] sm:$0xff]  ;;  %s6308_s27 = smov 115  }
 0x282   : > { %1244 = vrot.lane.b32.xlu1 %v6692_v16, %s7387_s24  ;;  %s7405_s24 = smov 117  }
 0x28a   : > { %1556 = vrot.lane.b32.xlu1 %v6692_v16, %s7430_s19 }
 0x2a4   : > { %v6744_v30 = vpop.permute.xlu0 %1475 }
 0x2cc   : > { %v1234_v19 = vpop.permute.xlu2 %1233 }
 0x2d4   : > { %v1395_v26 = vpop.permute.xlu2 %1394 }
 0x2e4   : > { %v1232_v17 = vpop.permute.xlu1 %1231 }
 0x2e5   : > { %v1241_v18 = vsel %vm851_vm3, 0.0, %v1232_v17  ;;  %v1237_v20 = vsel %vm851_vm3, %v1232_v17, %v1234_v19 }
 0x2e6   : > { %1477 = vrot.lane.b32.xlu1 %v1241_v18, %s7396_s4  ;;  %1396 = vrot.lane.b32.xlu0 %v1241_v18, %s7417_s28 }
 0x2e7   : > { %5490 = vmatpush.msk.msra.mxu3 %vm1259_vm9, %v1241_v18  ;;  %1248 = vrot.lane.b32.xlu2 %v1241_v18, %s7415_s3 }
 0x2e8   : > { %5491 = vmatmul.msk.f32.vlgmr.msra.gmra.mxu3 %vm7384_vm1, %v6692_v16 }
 0x2ec   : > { %v1236_v21 = vpop.permute.xlu1 %1235 }
 0x2ed   : > { %v1238_v23 = vsel %vm851_vm3, %v1234_v19, %v1236_v21  ;;  %v1989_v19 = vld [vmem:[#allocation6 + $0x58] sm:$0xff]  ;;  %v1988_v21 = vld [vmem:[#allocation6 + $0x50] sm:$0xff] }
 0x2ee   : > { %1639 = vrot.lane.b32.xlu0 %v1241_v18, %s7402_s2  ;;  %1398 = vrot.lane.b32.xlu1 %v1237_v20, %s7417_s28  ;;  %v1242_v24 = vsel %vm986_vm11, %v1238_v23, 0.0  ;;  %v2008_v23 = vld [vmem:[#allocation6 + $0xf0] sm:$0xff] }
 0x2ef   : > { %1558 = vrot.lane.b32.xlu2 %v1241_v18, %s7394_s30 }
 0x2f4   : > { %v1245_v28 = vpop.permute.xlu1 %1244 }
 0x2f6   : > { %1479 = vrot.lane.b32.xlu1 %v1237_v20, %s7396_s4  ;;  %1250 = vrot.lane.b32.xlu0 %v1237_v20, %s7415_s3 }
 0x2f7   : > { %1252 = vrot.lane.b32.xlu2 %v1242_v24, %s7415_s3 }
 0x2fc   : > { %v6746_v31 = vpop.permute.xlu1 %1556 }
 0x2fe   : > { %1641 = vrot.lane.b32.xlu1 %v1237_v20, %s7402_s2  ;;  %1560 = vrot.lane.b32.xlu0 %v1237_v20, %s7394_s30 }
 0x2ff   : > { %1722 = vrot.lane.b32.xlu2 %v1237_v20, %s7392_s5 }
 0x306   : > { %1720 = vrot.lane.b32.xlu1 %v1241_v18, %s7392_s5  ;;  %1400 = vrot.lane.b32.xlu0 %v1242_v24, %s7417_s28 }
 0x307   : > { %1481 = vrot.lane.b32.xlu2 %v1242_v24, %s7396_s4  ;;  %s7435_s4 = smov 80  }
 0x30e   : > { %1799 = vrot.lane.b32.xlu1 %v6692_v16, %s7386_s26  ;;  %1637 = vrot.lane.b32.xlu0 %v6692_v16, %s7402_s2  ;;  %s7412_s26 = smov 11  }
 0x30f   : > { %1562 = vrot.lane.b32.xlu2 %v1242_v24, %s7394_s30  ;;  %s7436_s30 = smov 64  }
 0x316   : > { %1724 = vrot.lane.b32.xlu1 %v1242_v24, %s7392_s5  ;;  %1718 = vrot.lane.b32.xlu0 %v6692_v16, %s7398_s11  ;;  %s7468_s5 = smov 106  }
 0x317   : > { %1643 = vrot.lane.b32.xlu2 %v1242_v24, %s7402_s2 }
 0x31e   : > { %1884 = vrot.lane.b32.xlu1 %v1237_v20, %s7388_s1  ;;  %1805 = vrot.lane.b32.xlu0 %v1242_v24, %s7390_s8 }
 0x31f   : > { %1803 = vrot.lane.b32.xlu2 %v1237_v20, %s7390_s8 }
 0x326   : > { %1963 = vperm.xlu1 %5865, %v1227_v25   ;;  %1882 = vrot.lane.b32.xlu0 %v1241_v18, %s7388_s1  ;;  %v2007_v25 = vld [vmem:[#allocation6 + $0xe8] sm:$0xff] }
 0x327   : > { %1801 = vrot.lane.b32.xlu2 %v1241_v18, %s7390_s8  ;;  %s7408_s8 = smov 72  }
 0x32e   : > { %1886 = vrot.lane.b32.xlu0 %v1242_v24, %s7388_s1  ;;  %s7411_s1 = smov 118  }
 0x32f   : > { %1880 = vrot.lane.b32.xlu2 %v6692_v16, %s7428_s0 }
 0x341   : > { %v1249_v27 = vpop.permute.xlu2 %1248 }
 0x349   : > { %v1559_v29 = vpop.permute.xlu2 %1558 }
 0x351   : > { %v1253_v32 = vpop.permute.xlu2 %1252 }
 0x352   : > { %5488 = vmatpush.msk.msra.mxu2 %vm1259_vm9, %v1253_v32 }
 0x353   : > { %5489 = vmatmul.msk.f32.vlgmr.msra.gmra.mxu2 %vm7384_vm1, %v1245_v28 }
 0x358   : > { %v1397_v22 = vpop.permute.xlu0 %1396  ;;  %v1478_v33 = vpop.permute.xlu1 %1477 }
 0x359   : > { %v1723_v34 = vpop.permute.xlu2 %1722 }
 0x360   : > { %v1640_v35 = vpop.permute.xlu0 %1639  ;;  %v1399_v36 = vpop.permute.xlu1 %1398 }
 0x361   : > { %v1482_v37 = vpop.permute.xlu2 %1481  ;;  %v1402_v38 = vsel %vm1043_vm13, %v1397_v22, %v1399_v36  ;;  %v1984_v22 = vld [vmem:[#allocation6 + $0x30] sm:$0xff] }
 0x362   : > { %5496 = vmatpush.msk.msrb.mxu2 %vm1259_vm9, %v1402_v38 }
 0x363   : > { %5497 = vmatmul.msk.f32.vlgmr.msrb.gmra.mxu2 %vm7384_vm1, %v1395_v26 }
 0x368   : > { %v1480_v39 = vpop.permute.xlu1 %1479  ;;  %v1251_v40 = vpop.permute.xlu0 %1250 }
 0x369   : > { %v1484_v41 = vsel %vm1068_vm14, %v1480_v39, %v1482_v37  ;;  %v1563_v42 = vpop.permute.xlu2 %1562  ;;  %v1254_v43 = vsel %vm1018_vm12, %v1249_v27, %v1251_v40  ;;  %v1255_v44 = vsel %vm1018_vm12, %v1251_v40, %v1253_v32  ;;  %v1483_v45 = vsel %vm1068_vm14, %v1478_v33, %v1480_v39  ;;  %v1986_v27 = vld [vmem:[#allocation6 + $0x40] sm:$0xff]  ;;  %v2005_v32 = vld [vmem:[#allocation6 + $0xd8] sm:$0xff]  ;;  %v2004_v33 = vld [vmem:[#allocation6 + $0xd0] sm:$0xff] }
 0x36a   : > { %5484 = vmatpush.msk.msra.mxu0 %vm1259_vm9, %v1254_v43  ;;  %5486 = vmatpush.msk.msra.mxu1 %vm1259_vm9, %v1255_v44  ;;  %v1982_v40 = vld [vmem:[#allocation6 + $0x20] sm:$0xff]  ;;  %v2001_v43 = vld [vmem:[#allocation6 + $0xb8] sm:$0xff]  ;;  %v1980_v44 = vld [vmem:[#allocation6 + $0x10] sm:$0xff] }
 0x36b   : > { %5504 = vmatpush.msk.msra.mxu2 %vm1259_vm9, %v1484_v41  ;;  %5485 = vmatmul.msk.f32.vlgmr.msra.gmra.mxu0 %vm7384_vm1, %v1245_v28  ;;  %v2002_v41 = vld [vmem:[#allocation6 + $0xc0] sm:$0xff] }
 0x36c   : > { %5487 = vmatmul.msk.f32.vlgmr.msra.gmra.mxu1 %vm7384_vm1, %v1245_v28  ;;  %5492 = vmatpush.msk.msrb.mxu0 %vm1259_vm9, %v1237_v20  ;;  %v2009_v20 = vld [vmem:[#allocation6 + $0xf8] sm:$0xff]  ;;  %v2006_v28 = vld [vmem:[#allocation6 + $0xe0] sm:$0xff] }
 0x36d   : > { %5494 = vmatpush.msk.msrb.mxu1 %vm1259_vm9, %v1242_v24  ;;  %5505 = vmatmul.msk.f32.vlgmr.msra.gmra.mxu2 %vm7384_vm1, %v6744_v30  ;;  %v1987_v24 = vld [vmem:[#allocation6 + $0x48] sm:$0xff] }
 0x36e   : > { %5512 = vmatpush.msk.msrb.mxu2 %vm1259_vm9, %v1563_v42 }
 0x36f   : > { %5502 = vmatpush.msk.msra.mxu1 %vm1259_vm9, %v1483_v45  ;;  %v2000_v45 = vld [vmem:[#allocation6 + $0xb0] sm:$0xff] }
 0x370   : > { %v1642_v46 = vpop.permute.xlu1 %1641  ;;  %v1561_v47 = vpop.permute.xlu0 %1560 }
 0x371   : > { %v1644_v48 = vpop.permute.xlu2 %1643  ;;  %v1565_v49 = vsel %vm7424_vm15, %v1561_v47, %v1563_v42  ;;  %v1564_v52 = vsel %vm7424_vm15, %v1559_v29, %v1561_v47  ;;  %v1645_v57 = vsel %vm7425_vm10, %v1640_v35, %v1642_v46  ;;  %v2003_v35 = vld [vmem:[#allocation6 + $0xc8] sm:$0xff]  ;;  %v1981_v42 = vld [vmem:[#allocation6 + $0x18] sm:$0xff] }
 0x372   : > { %v1646_v56 = vsel %vm7425_vm10, %v1642_v46, %v1644_v48  ;;  %v2018_v46 = vld [vmem:[#allocation6 + $0x140] sm:$0xf] }
 0x373   : > { %5493 = vmatmul.msk.f32.vlgmr.msrb.gmra.mxu0 %vm7384_vm1, %v6692_v16 }
 0x374   : > { %5495 = vmatmul.msk.f32.vlgmr.msrb.gmra.mxu1 %vm7384_vm1, %v6692_v16  ;;  %v1990_v16 = vld [vmem:[#allocation6 + $0x60] sm:$0xff] }
 0x375   : > { %5510 = vmatpush.msk.msrb.mxu1 %vm1259_vm9, %v1565_v49  ;;  %5513 = vmatmul.msk.f32.vlgmr.msrb.gmra.mxu2 %vm7384_vm1, %v6746_v31  ;;  %v1999_v49 = vld [vmem:[#allocation6 + $0xa8] sm:$0xff] }
 0x378   : > { %v1721_v50 = vpop.permute.xlu1 %1720  ;;  %v1401_v51 = vpop.permute.xlu0 %1400 }
 0x379   : > { %v1726_v53 = vsel %vm7406_vm0, %v1721_v50, %v1723_v34  ;;  %v1804_v54 = vpop.permute.xlu2 %1803  ;;  %5500 = vmatpush.msk.msra.mxu0 %vm1259_vm9, %v1401_v51  ;;  %v1403_v55 = vsel %vm1043_vm13, %v1399_v36, %v1401_v51  ;;  %v1351_v36 = vpop.f32.mrf.mxu3  ;;  %v2017_v50 = vld [vmem:[#allocation6 + $0x138] sm:$0xff]  ;;  %v1978_v51 = vld [vmem:[#allocation6] sm:$0xff] }
 0x37a   : > { %5498 = vmatpush.msk.msrb.mxu3 %vm1259_vm9, %v1403_v55  ;;  %5520 = vmatpush.msk.msra.mxu2 %vm1259_vm9, %v1726_v53 }
 0x37b   : > { %5508 = vmatpush.msk.msrb.mxu0 %vm1259_vm9, %v1564_v52  ;;  %5499 = vmatmul.msk.f32.vlgmr.msrb.gmra.mxu3 %vm7384_vm1, %v1395_v26  ;;  %v1998_v52 = vld [vmem:[#allocation6 + $0xa0] sm:$0xff] }
 0x37c   : > { %5501 = vmatmul.msk.f32.vlgmr.msra.gmra.mxu0 %vm7384_vm1, %v1395_v26  ;;  %5503 = vmatmul.msk.f32.vlgmr.msra.gmra.mxu1 %vm7384_vm1, %v6744_v30 }
 0x37d   : > { %5506 = vmatpush.msk.msra.mxu3 %vm1259_vm9, %v1482_v37  ;;  %5516 = vmatpush.msk.msra.mxu0 %vm1259_vm9, %v1646_v56  ;;  %v2016_v56 = vld [vmem:[#allocation6 + $0x130] sm:$0xff] }
 0x37e   : > { %5518 = vmatpush.msk.msra.mxu1 %vm1259_vm9, %v1644_v48  ;;  %v1979_v48 = vld [vmem:[#allocation6 + $0x8] sm:$0xff] }
 0x37f   : > { %5514 = vmatpush.msk.msrb.mxu3 %vm1259_vm9, %v1645_v57  ;;  %v1997_v57 = vld [vmem:[#allocation6 + $0x98] sm:$0xff] }
 0x380   : > { %v1800_v58 = vpop.permute.xlu1 %1799  ;;  %v1638_v59 = vpop.permute.xlu0 %1637 }
 0x381   : > { %v1802_v60 = vpop.permute.xlu2 %1801 }
 0x382   : > { %v1807_v61 = vsel %vm7407_vm8, %v1802_v60, %v1804_v54  ;;  %v2014_v60 = vld [vmem:[#allocation6 + $0x120] sm:$0xff] }
 0x383   : > { %5507 = vmatmul.msk.f32.vlgmr.msra.gmra.mxu3 %vm7384_vm1, %v6744_v30 }
 0x384   : > { %5509 = vmatmul.msk.f32.vlgmr.msrb.gmra.mxu0 %vm7384_vm1, %v6746_v31  ;;  %5511 = vmatmul.msk.f32.vlgmr.msrb.gmra.mxu1 %vm7384_vm1, %v6746_v31  ;;  %v1985_v31 = vld [vmem:[#allocation6 + $0x38] sm:$0xff] }
 0x385   : > { %5526 = vmatpush.msk.msrb.mxu1 %vm1259_vm9, %v1807_v61 }
 0x388   : > { %v1725_v62 = vpop.permute.xlu1 %1724  ;;  %v1719_v63 = vpop.permute.xlu0 %1718 }
 0x389   : > { %v1727_v0 = vsel %vm7406_vm0, %v1723_v34, %v1725_v62  ;;  %5521 = vmatmul.msk.f32.vlgmr.msra.gmra.mxu2 %vm7384_vm1, %v1719_v63  ;;  %5524 = vmatpush.msk.msrb.mxu0 %vm1259_vm9, %v1725_v62  ;;  %v1881_v9 = vpop.permute.xlu2 %1880  ;;  %v1983_v34 = vld [vmem:[#allocation6 + $0x28] sm:$0xff]  ;;  %vm2446_vm0 = vcmask 818176  }
 0x38a   : > { %5522 = vmatpush.msk.msra.mxu3 %vm1259_vm9, %v1727_v0  ;;  %v1995_v0 = vld [vmem:[#allocation6 + $0x88] sm:$0xff] }
 0x38b   : > { %5515 = vmatmul.msk.f32.vlgmr.msrb.gmra.mxu3 %vm7384_vm1, %v1638_v59 }
 0x38c   : > { %5517 = vmatmul.msk.f32.vlgmr.msra.gmra.mxu0 %vm7384_vm1, %v1638_v59  ;;  %5519 = vmatmul.msk.f32.vlgmr.msra.gmra.mxu1 %vm7384_vm1, %v1638_v59  ;;  %v1996_v59 = vld [vmem:[#allocation6 + $0x90] sm:$0xff] }
 0x390   : > { %v1806_v1 = vpop.permute.xlu0 %1805  ;;  %v1885_v6 = vpop.permute.xlu1 %1884 }
 0x391   : > { %v1808_v3 = vsel %vm7407_vm8, %v1804_v54, %v1806_v1  ;;  %5530 = vmatpush.msk.msrb.mxu3 %vm1259_vm9, %v1806_v1 }
 0x392   : > { %5528 = vmatpush.msk.msrb.mxu2 %vm1259_vm9, %v1808_v3  ;;  %v2013_v3 = vld [vmem:[#allocation6 + $0x118] sm:$0xff] }
 0x393   : > { %5523 = vmatmul.msk.f32.vlgmr.msra.gmra.mxu3 %vm7384_vm1, %v1719_v63  ;;  %5529 = vmatmul.msk.f32.vlgmr.msrb.gmra.mxu2 %vm7384_vm1, %v1800_v58 }
 0x394   : > { %5525 = vmatmul.msk.f32.vlgmr.msrb.gmra.mxu0 %vm7384_vm1, %v1719_v63  ;;  %5527 = vmatmul.msk.f32.vlgmr.msrb.gmra.mxu1 %vm7384_vm1, %v1800_v58 }
 0x395   : > { %2026 = vmatpush.msra.mxu3 %v1993_v12 }
 0x397   : > { %2027 = vmatpush.msra.mxu3 %v1992_v14 }
 0x398   : > { %v1883_v7 = vpop.permute.xlu0 %1882 }
 0x399   : > { %v1888_v8 = vsel %vm7385_vm7, %v1883_v7, %v1885_v6  ;;  %2028 = vmatpush.msra.mxu3 %v1991_v15  ;;  %v2012_v7 = vld [vmem:[#allocation6 + $0x110] sm:$0xff] }
 0x39a   : > { %5532 = vmatpush.msk.msra.mxu0 %vm1259_vm9, %v1888_v8 }
 0x39b   : > { %5531 = vmatmul.msk.f32.vlgmr.msrb.gmra.mxu3 %vm7384_vm1, %v1800_v58  ;;  %v2015_v58 = vld [vmem:[#allocation6 + $0x128] sm:$0xff] }
 0x39c   : > { %5533 = vmatmul.msk.f32.vlgmr.msra.gmra.mxu0 %vm7384_vm1, %v1881_v9  ;;  %2029 = vmatpush.msra.mxu3 %v1990_v16  ;;  %v2010_v16 = vld [vmem:[#allocation6 + $0x100] sm:$0xff] }
 0x39d   : > { %2046 = vmatpush.msrb.mxu0 %v2009_v20 }
 0x39e   : > { %2030 = vmatpush.msra.mxu3 %v1989_v19 }
 0x39f   : > { %2047 = vmatpush.msrb.mxu0 %v2008_v23 }
 0x3a0   : > { %v1887_v10 = vpop.permute.xlu0 %1886  ;;  %2031 = vmatpush.msra.mxu3 %v1988_v21 }
 0x3a1   : > { %v1889_v11 = vsel %vm7385_vm7, %v1885_v6, %v1887_v10  ;;  %5536 = vmatpush.msk.msra.mxu2 %vm1259_vm9, %v1887_v10  ;;  %2048 = vmatpush.msrb.mxu0 %v2007_v25  ;;  %v1994_v6 = vld [vmem:[#allocation6 + $0x80] sm:$0xff]  ;;  %v2011_v10 = vld [vmem:[#allocation6 + $0x108] sm:$0xff]  ;;  %vm2019_vm7 = vcmask 556032  }
 0x3a2   : > { %5534 = vmatpush.msk.msra.mxu1 %vm1259_vm9, %v1889_v11  ;;  %5537 = vmatmul.msk.f32.vlgmr.msra.gmra.mxu2 %vm7384_vm1, %v1881_v9 }
 0x3a3   : > { %5535 = vmatmul.msk.f32.vlgmr.msra.gmra.mxu1 %vm7384_vm1, %v1881_v9  ;;  %2032 = vmatpush.msra.mxu3 %v1987_v24 }
 0x3a4   : > { %2049 = vmatpush.msrb.mxu0 %v2006_v28  ;;  %5538 = vmatpush.msk.msrb.mxu1 %vm1259_vm9, %v2018_v46 }
 0x3a5   : > { %2033 = vmatpush.msra.mxu3 %v1986_v27 }
 0x3a6   : > { %2050 = vmatpush.msrb.mxu0 %v2005_v32  ;;  %2074 = vmatpush.msrb.mxu1 %v2017_v50 }
 0x3a7   : > { %2034 = vmatpush.msra.mxu3 %v1985_v31 }
 0x3a8   : > { %2051 = vmatpush.msrb.mxu0 %v2004_v33  ;;  %2075 = vmatpush.msrb.mxu1 %v2016_v56 }
 0x3a9   : > { %2035 = vmatpush.msra.mxu3 %v1984_v22 }
 0x3aa   : > { %2052 = vmatpush.msrb.mxu0 %v2003_v35  ;;  %2076 = vmatpush.msrb.mxu1 %v2015_v58  ;;  %v1964_v35 = vpop.permute.xlu1 %1963 }
 0x3ab   : > { %2036 = vmatpush.msra.mxu3 %v1983_v34 }
 0x3ac   : > { %2053 = vmatpush.msrb.mxu0 %v2002_v41  ;;  %2077 = vmatpush.msrb.mxu1 %v2014_v60 }
 0x3ad   : > { %2037 = vmatpush.msra.mxu3 %v1982_v40 }
 0x3ae   : > { %2054 = vmatpush.msrb.mxu0 %v2001_v43  ;;  %2078 = vmatpush.msrb.mxu1 %v2013_v3 }
 0x3af   : > { %2038 = vmatpush.msra.mxu3 %v1981_v42 }
 0x3b0   : > { %2055 = vmatpush.msrb.mxu0 %v2000_v45  ;;  %2079 = vmatpush.msrb.mxu1 %v2012_v7 }
 0x3b1   : > { %2039 = vmatpush.msra.mxu3 %v1980_v44 }
 0x3b2   : > { %2056 = vmatpush.msrb.mxu0 %v1999_v49  ;;  %2080 = vmatpush.msrb.mxu1 %v2011_v10 }
 0x3b3   : > { %2040 = vmatpush.msra.mxu3 %v1979_v48 }
 0x3b4   : > { %2057 = vmatpush.msrb.mxu0 %v1998_v52  ;;  %2081 = vmatpush.msrb.mxu1 %v2010_v16 }
 0x3b5   : > { %2041 = vmatpush.msra.mxu3 %v1978_v51 }
 0x3b6   : > { %2058 = vmatpush.msrb.mxu0 %v1997_v57 }
 0x3b8   : > { %2059 = vmatpush.msrb.mxu0 %v1996_v59 }
 0x3ba   : > { %2060 = vmatpush.msrb.mxu0 %v1995_v0 }
 0x3bc   : > { %2061 = vmatpush.msrb.mxu0 %v1994_v6 }
 0x3d6   : > { %v6828_v26 = vpop.f32.mrf.mxu2 }
 0x3e6   : > { %v1429_v37 = vpop.f32.mrf.mxu2 }
 0x3e8   : > { %v6824_v17 = vpop.f32.mrf.mxu0 }
 0x3e9   : > { %v6826_v18 = vpop.f32.mrf.mxu1  ;;  %v1352_v61 = vadd.f32 %v1351_v36, %v6824_v17 }
 0x3eb   : > { %v1472_v1 = vadd.f32 %v1429_v37, %v1352_v61  ;;  %v6858_v61 = vld [vmem:[%s7467_s16 + $0x8] sm:$0xff] }
 0x3f0   : > { %v6830_v29 = vpop.f32.mrf.mxu0  ;;  %v1530_v53 = vpop.f32.mrf.mxu2 }
 0x3f1   : > { %v6832_v30 = vpop.f32.mrf.mxu1  ;;  %v1372_v11 = vadd.f32 %v6830_v29, %v6826_v18 }
 0x3f2   : > { %v1392_v24 = vadd.f32 %v6832_v30, %v6828_v26 }
 0x3f8   : > { %v1631_v8 = vpop.f32.mrf.mxu2 }
 0x3f9   : > { %v6834_v38 = vpop.f32.mrf.mxu0  ;;  %v1510_v39 = vpop.f32.mrf.mxu1 }
 0x3fa   : > { %v1553_v9 = vadd.f32 %v1510_v39, %v1472_v1  ;;  %v1474_v27 = vadd.f32 %v6834_v38, %v1392_v24 }
 0x3fe   : > { %v1449_v47 = vpop.f32.mrf.mxu3 }
 0x3ff   : > { %v1473_v17 = vadd.f32 %v1449_v47, %v1372_v11 }
 0x401   : > { %v1591_v54 = vpop.f32.mrf.mxu0  ;;  %v1611_v55 = vpop.f32.mrf.mxu1  ;;  %v1554_v21 = vadd.f32 %v1530_v53, %v1473_v17 }
 0x402   : > { %v1634_v14 = vadd.f32 %v1591_v54, %v1553_v9 }
 0x403   : > { %v1635_v28 = vadd.f32 %v1611_v55, %v1554_v21  ;;  %v6846_v55 = vld [vmem:[%s7467_s16] sm:$0xff]  ;;  %s7514_s16 = smov 100  }
 0x404   : > { %2100 = vrot.lane.b32.xlu1 %v6846_v55, %s7426_s29  ;;  %2163 = vrot.lane.b32.xlu0 %v6846_v55, %s7430_s19 }
 0x406   : > { %v1550_v62 = vpop.f32.mrf.mxu3 }
 0x407   : > { %v1555_v31 = vadd.f32 %v1550_v62, %v1474_v27 }
 0x409   : > { %v1692_v63 = vpop.f32.mrf.mxu0  ;;  %v1712_v12 = vpop.f32.mrf.mxu1  ;;  %v1636_v37 = vadd.f32 %v1631_v8, %v1555_v31 }
 0x40a   : > { %v1716_v22 = vadd.f32 %v1692_v63, %v1635_v28 }
 0x40b   : > { %v1717_v26 = vadd.f32 %v1712_v12, %v1636_v37 }
 0x40c   : > { %v1753_v23 = vpop.f32.mrf.mxu2  ;;  %2199 = vrot.lane.b32.xlu1 %v6846_v55, %s7398_s11 }
 0x40e   : > { %v1672_v15 = vpop.f32.mrf.mxu3 }
 0x40f   : > { %v1715_v19 = vadd.f32 %v1672_v15, %v1634_v14 }
 0x411   : > { %v1793_v20 = vpop.f32.mrf.mxu0  ;;  %v1796_v25 = vadd.f32 %v1753_v23, %v1715_v19  ;;  %v1834_v18 = vpop.f32.mrf.mxu1 }
 0x412   : > { %v1798_v45 = vadd.f32 %v1793_v20, %v1717_v26 }
 0x413   : > { %v1877_v32 = vadd.f32 %v1834_v18, %v1796_v25 }
 0x416   : > { %v1773_v29 = vpop.f32.mrf.mxu3  ;;  %v1854_v40 = vpop.f32.mrf.mxu2 }
 0x417   : > { %v1797_v36 = vadd.f32 %v1773_v29, %v1716_v22 }
 0x419   : > { %v1915_v33 = vpop.f32.mrf.mxu0  ;;  %v1878_v42 = vadd.f32 %v1854_v40, %v1797_v36  ;;  %v2442_v36 = vld [vmem:[#allocation7 + $0x48] sm:$0xff]  ;;  %v2440_v40 = vld [vmem:[#allocation7 + $0x38] sm:$0xff] }
 0x41a   : > { %v1958_v34 = vadd.f32 %v1915_v33, %v1877_v32  ;;  %v2445_v33 = vld [vmem:[#allocation7 + $0x60] sm:$0xf] }
 0x41c   : > { %v1966_v39 = vadd.f32 %v1964_v35, %v1958_v34  ;;  %v2444_v34 = vld [vmem:[#allocation7 + $0x58] sm:$0xff] }
 0x41e   : > { %vm1969_vm2 = vcmp.ge.f32.partialorder %v1966_v39, 0.0  ;;  %v1972_v41 = vmul.f32 0.01, %v1966_v39  ;;  %v1874_v38 = vpop.f32.mrf.mxu3 }
 0x41f   : > { %v1879_v47 = vadd.f32 %v1874_v38, %v1798_v45  ;;  %v2435_v38 = vld [vmem:[#allocation7 + $0x10] sm:$0xff] }
 0x420   : > { %v1935_v30 = vpop.f32.mrf.mxu1  ;;  %v1975_v43 = vsel %vm1969_vm2, %v1966_v39, %v1972_v41  ;;  %vm2108_vm2 = vcmask 64512   ;;  %v2441_v39 = vld [vmem:[#allocation7 + $0x40] sm:$0xff]  ;;  %v2439_v41 = vld [vmem:[#allocation7 + $0x30] sm:$0xff] }
 0x421   : > { %v1959_v44 = vadd.f32 %v1935_v30, %v1878_v42  ;;  %2042 = vmatmul.f32.vlgmr.msra.gmra.mxu3 %v1975_v43  ;;  %v2438_v42 = vld [vmem:[#allocation7 + $0x28] sm:$0xff]  ;;  %v2437_v30 = vld [vmem:[#allocation7 + $0x20] sm:$0xff]  ;;  %v2436_v43 = vld [vmem:[#allocation7 + $0x18] sm:$0xff] }
 0x423   : > { %v1967_v46 = vadd.f32 %v1964_v35, %v1959_v44  ;;  %v2434_v44 = vld [vmem:[#allocation7 + $0x8] sm:$0xff] }
 0x425   : > { %v1955_v48 = vpop.f32.mrf.mxu2  ;;  %vm1970_vm5 = vcmp.ge.f32.partialorder %v1967_v46, 0.0  ;;  %v1973_v49 = vmul.f32 0.01, %v1967_v46 }
 0x426   : > { %v1960_v50 = vadd.f32 %v1955_v48, %v1879_v47  ;;  %v2433_v48 = vld [vmem:[#allocation7] sm:$0xff] }
 0x427   : > { %v1976_v51 = vsel %vm1970_vm5, %v1967_v46, %v1973_v49 }
 0x428   : > { %v1968_v52 = vadd.f32 %v1964_v35, %v1960_v50  ;;  %2062 = vmatmul.f32.vlgmr.msrb.gmra.mxu0 %v1976_v51  ;;  %v2443_v35 = vld [vmem:[#allocation7 + $0x50] sm:$0xff] }
 0x42a   : > { %v1974_v53 = vmul.f32 0.01, %v1968_v52  ;;  %vm1971_vm1 = vcmp.ge.f32.partialorder %v1968_v52, 0.0 }
 0x42c   : > { %v1977_v54 = vsel %vm1971_vm1, %v1968_v52, %v1974_v53  ;;  %vm2096_vm1 = vcmask 908288  }
 0x42d   : > { %5539 = vmatmul.msk.f32.vlgmr.msrb.gmra.mxu1 %vm2019_vm7, %v1977_v54  ;;  %vm2094_vm7 = vcmask 89088  }
 0x476   : > { %v2164_v9 = vpop.permute.xlu0 %2163  ;;  %v2101_v11 = vpop.permute.xlu1 %2100 }
 0x47e   : > { %v2200_v12 = vpop.permute.xlu1 %2199 }
 0x4a4   : > { %v2043_v57 = vpop.f32.mrf.mxu3 }
 0x4a5   : > { %v2063_v56 = vpop.f32.mrf.mxu0 }
 0x4a6   : > { %v2064_v58 = vadd.f32 %v2063_v56, %v2043_v57 }
 0x4aa   : > { %v2083_v59 = vpop.f32.mrf.mxu1 }
 0x4ab   : > { %v2084_v60 = vadd.f32 %v2083_v59, %v2064_v58 }
 0x4ad   : > { %2091 = vrot.lane.b32.xlu2 %v2084_v60, %s7412_s26  ;;  %s6309_s26 = smov 122  }
 0x4b5   : > { %2102 = vrot.lane.b32.xlu2 %v6858_v61, %s7426_s29 }
 0x4bd   : > { %2201 = vrot.lane.b32.xlu2 %v6858_v61, %s7398_s11  ;;  %s7432_s11 = smov 32  }
 0x4c5   : > { %2165 = vrot.lane.b32.xlu2 %v6858_v61, %s7430_s19 }
 0x507   : > { %v2092_v62 = vpop.permute.xlu2 %2091 }
 0x508   : > { %v2095_v63 = vsel %vm2094_vm7, 0.0, %v2092_v62 }
 0x509   : > { %v2097_v0 = vsel %vm2096_vm1, %v2095_v63, 0.0 }
 0x50a   : > { %2239 = vrot.lane.b32.xlu1 %v2097_v0, %s7405_s24  ;;  %2167 = vrot.lane.b32.xlu2 %v2097_v0, %s7417_s28  ;;  %s7470_s24 = sld [smem:[#allocation24_spill]] }
 0x50b   : > { %2105 = vrot.lane.b32.xlu0 %v2097_v0, %s7415_s3 }
 0x50f   : > { %v2103_v6 = vpop.permute.xlu2 %2102 }
 0x512   : > { %2275 = vrot.lane.b32.xlu1 %v2097_v0, %s7433_s25  ;;  %2237 = vrot.lane.b32.xlu2 %v6858_v61, %s7428_s0 }
 0x513   : > { %2235 = vrot.lane.b32.xlu0 %v6846_v55, %s7428_s0 }
 0x517   : > { %v2202_v7 = vpop.permute.xlu2 %2201 }
 0x51a   : > { %2347 = vrot.lane.b32.xlu1 %v2097_v0, %s7409_s7  ;;  %2273 = vrot.lane.b32.xlu2 %v6858_v61, %s7404_s9  ;;  %s7423_s7 = smov 121  }
 0x51b   : > { %2203 = vrot.lane.b32.xlu0 %v2097_v0, %s7411_s1  ;;  %s7414_s1 = smov 114  }
 0x51f   : > { %v2166_v8 = vpop.permute.xlu2 %2165 }
 0x522   : > { %2311 = vrot.lane.b32.xlu1 %v2097_v0, %s7402_s2  ;;  %2345 = vrot.lane.b32.xlu2 %v6858_v61, %s7408_s8  ;;  %s7469_s2 = sld [smem:[#allocation23_spill]] }
 0x523   : > { %2271 = vrot.lane.b32.xlu0 %v6846_v55, %s7404_s9  ;;  %s7419_s9 = smov 48  }
 0x528   : > { %v2089_v1 = vld [vmem:[%s7469_s2 + $0x8] sm:$0xff]  ;;  %v2088_v3 = vld [vmem:[%s7469_s2] sm:$0xff]  ;;  %s7498_s2 = smov 91  }
 0x52a   : > { %2383 = vrot.lane.b32.xlu1 %v2097_v0, %s7468_s5  ;;  %2381 = vrot.lane.b32.xlu2 %v6858_v61, %s7436_s30 }
 0x52b   : > { %2343 = vrot.lane.b32.xlu0 %v6846_v55, %s7408_s8  ;;  %s6304_s8 = smov 7  }
 0x532   : > { %2309 = vrot.lane.b32.xlu1 %v6858_v61, %s7435_s4 }
 0x533   : > { %2307 = vrot.lane.b32.xlu0 %v6846_v55, %s7435_s4 }
 0x53a   : > { %2422 = vperm.xlu1 %5865, %v2089_v1  }
 0x53b   : > { %2379 = vrot.lane.b32.xlu0 %v6846_v55, %s7436_s30 }
 0x543   : > { %2417 = vperm.xlu0 %5866, %v2088_v3  }
 0x564   : > { %v2168_v10 = vpop.permute.xlu2 %2167 }
 0x565   : > { %2189 = vmatpush.msra.mxu1 %v2168_v10 }
 0x566   : > { %5545 = vmatmul.msk.f32.vlgmr.msra.gmra.mxu1 %vm2108_vm2, %v2164_v9 }
 0x56c   : > { %v2238_v21 = vpop.permute.xlu2 %2237 }
 0x56e   : > { %5546 = vmatmul.msk.f32.gmra.mxu1 %vm2108_vm2, %v2166_v8 }
 0x574   : > { %v2274_v25 = vpop.permute.xlu2 %2273 }
 0x57c   : > { %v2240_v14 = vpop.permute.xlu1 %2239  ;;  %v2346_v18 = vpop.permute.xlu2 %2345 }
 0x57d   : > { %v2106_v15 = vpop.permute.xlu0 %2105  ;;  %2261 = vmatpush.msra.mxu0 %v2240_v14 }
 0x57e   : > { %2128 = vmatpush.msrb.mxu2 %v2106_v15 }
 0x57f   : > { %5540 = vmatmul.msk.f32.vlgmr.msrb.gmra.mxu2 %vm2108_vm2, %v2101_v11 }
 0x580   : > { %5542 = vmatpush.msk.msra.mxu2 %vm2096_vm1, %v2095_v63 }
 0x584   : > { %v2276_v16 = vpop.permute.xlu1 %2275  ;;  %v2382_v22 = vpop.permute.xlu2 %2381 }
 0x585   : > { %v2236_v17 = vpop.permute.xlu0 %2235  ;;  %2297 = vmatpush.msrb.mxu2 %v2276_v16 }
 0x586   : > { %5549 = vmatmul.msk.f32.vlgmr.msra.gmra.mxu0 %vm2108_vm2, %v2236_v17 }
 0x587   : > { %5541 = vmatmul.msk.f32.gmra.mxu2 %vm2108_vm2, %v2103_v6 }
 0x58c   : > { %v2348_v19 = vpop.permute.xlu1 %2347 }
 0x58d   : > { %v2204_v20 = vpop.permute.xlu0 %2203 }
 0x58e   : > { %2225 = vmatpush.msrb.mxu3 %v2204_v20  ;;  %5550 = vmatmul.msk.f32.gmra.mxu0 %vm2108_vm2, %v2238_v21 }
 0x58f   : > { %5543 = vmatmul.msk.f32.vlgmr.msra.gmra.mxu2 %vm2108_vm2, %v6846_v55  ;;  %5547 = vmatmul.msk.f32.vlgmr.msrb.gmra.mxu3 %vm2108_vm2, %v2200_v12 }
 0x590   : > { %2369 = vmatpush.msra.mxu3 %v2348_v19  ;;  %5559 = vmatpush.msk.msra.mxu2 %vm1259_vm9, %v2445_v33 }
 0x592   : > { %2460 = vmatpush.msra.mxu2 %v2444_v34 }
 0x594   : > { %v2312_v23 = vpop.permute.xlu1 %2311  ;;  %2461 = vmatpush.msra.mxu2 %v2443_v35 }
 0x595   : > { %v2272_v24 = vpop.permute.xlu0 %2271  ;;  %2333 = vmatpush.msrb.mxu1 %v2312_v23 }
 0x596   : > { %2462 = vmatpush.msra.mxu2 %v2442_v36 }
 0x597   : > { %5544 = vmatmul.msk.f32.gmra.mxu2 %vm2108_vm2, %v6858_v61  ;;  %5548 = vmatmul.msk.f32.gmra.mxu3 %vm2108_vm2, %v2202_v7 }
 0x598   : > { %2463 = vmatpush.msra.mxu2 %v2441_v39 }
 0x59a   : > { %2464 = vmatpush.msra.mxu2 %v2440_v40 }
 0x59c   : > { %v2384_v27 = vpop.permute.xlu1 %2383  ;;  %2465 = vmatpush.msra.mxu2 %v2439_v41 }
 0x59d   : > { %v2344_v28 = vpop.permute.xlu0 %2343  ;;  %2405 = vmatpush.msrb.mxu0 %v2384_v27 }
 0x59e   : > { %2466 = vmatpush.msra.mxu2 %v2438_v42 }
 0x59f   : > { %5551 = vmatmul.msk.f32.vlgmr.msrb.gmra.mxu2 %vm2108_vm2, %v2272_v24  ;;  %5555 = vmatmul.msk.f32.vlgmr.msra.gmra.mxu3 %vm2108_vm2, %v2344_v28 }
 0x5a0   : > { %2467 = vmatpush.msra.mxu2 %v2437_v30 }
 0x5a2   : > { %2468 = vmatpush.msra.mxu2 %v2436_v43 }
 0x5a4   : > { %v2310_v31 = vpop.permute.xlu1 %2309  ;;  %2469 = vmatpush.msra.mxu2 %v2435_v38 }
 0x5a5   : > { %v2308_v29 = vpop.permute.xlu0 %2307 }
 0x5a6   : > { %5553 = vmatmul.msk.f32.vlgmr.msrb.gmra.mxu1 %vm2108_vm2, %v2308_v29  ;;  %2470 = vmatpush.msra.mxu2 %v2434_v44 }
 0x5a7   : > { %5552 = vmatmul.msk.f32.gmra.mxu2 %vm2108_vm2, %v2274_v25  ;;  %5556 = vmatmul.msk.f32.gmra.mxu3 %vm2108_vm2, %v2346_v18  ;;  %v2479_v18 = vld [vmem:[%s7470_s24] sm:$0xff] }
 0x5a8   : > { %2471 = vmatpush.msra.mxu2 %v2433_v48  ;;  %2684 = vrot.lane.b32.xlu1 %v2479_v18, %s7419_s9 }
 0x5ac   : > { %v2423_v24 = vpop.permute.xlu1 %2422 }
 0x5ad   : > { %v2380_v32 = vpop.permute.xlu0 %2379 }
 0x5ae   : > { %5557 = vmatmul.msk.f32.vlgmr.msrb.gmra.mxu0 %vm2108_vm2, %v2380_v32  ;;  %5554 = vmatmul.msk.f32.gmra.mxu1 %vm2108_vm2, %v2310_v31  ;;  %v2481_v31 = vld [vmem:[%s7470_s24 + $0x10] sm:$0xff] }
 0x5b5   : > { %v2418_v12 = vpop.permute.xlu0 %2417 }
 0x5b6   : > { %5558 = vmatmul.msk.f32.gmra.mxu0 %vm2108_vm2, %v2382_v22 }
 0x5e3   : > { %v2191_v46 = vpop.f32.mrf.mxu1 }
 0x5eb   : > { %v2194_v53 = vpop.f32.mrf.mxu1 }
 0x602   : > { %v2130_v37 = vpop.f32.mrf.mxu2 }
 0x603   : > { %v2263_v52 = vpop.f32.mrf.mxu0 }
 0x60a   : > { %v2133_v26 = vpop.f32.mrf.mxu2 }
 0x60b   : > { %v2266_v60 = vpop.f32.mrf.mxu0 }
 0x612   : > { %v2157_v45 = vpop.f32.mrf.mxu2  ;;  %v2227_v47 = vpop.f32.mrf.mxu3 }
 0x613   : > { %v2158_v49 = vadd.f32 %v2157_v45, %v2130_v37 }
 0x615   : > { %v2197_v50 = vadd.f32 %v2191_v46, %v2158_v49 }
 0x617   : > { %v2233_v54 = vadd.f32 %v2227_v47, %v2197_v50 }
 0x619   : > { %v2269_v58 = vadd.f32 %v2263_v52, %v2233_v54 }
 0x61a   : > { %v2160_v51 = vpop.f32.mrf.mxu2  ;;  %v2230_v56 = vpop.f32.mrf.mxu3 }
 0x61b   : > { %v2161_v55 = vadd.f32 %v2160_v51, %v2133_v26  ;;  %v2685_v48 = vpop.permute.xlu1 %2684 }
 0x61d   : > { %v2198_v57 = vadd.f32 %v2194_v53, %v2161_v55 }
 0x61f   : > { %v2234_v63 = vadd.f32 %v2230_v56, %v2198_v57 }
 0x621   : > { %v2270_v3 = vadd.f32 %v2266_v60, %v2234_v63 }
 0x622   : > { %v2299_v59 = vpop.f32.mrf.mxu2  ;;  %v2371_v1 = vpop.f32.mrf.mxu3 }
 0x623   : > { %v2305_v61 = vadd.f32 %v2299_v59, %v2269_v58  ;;  %v2335_v62 = vpop.f32.mrf.mxu1 }
 0x625   : > { %v2341_v0 = vadd.f32 %v2335_v62, %v2305_v61 }
 0x627   : > { %v2377_v7 = vadd.f32 %v2371_v1, %v2341_v0 }
 0x62a   : > { %v2302_v6 = vpop.f32.mrf.mxu2  ;;  %v2374_v16 = vpop.f32.mrf.mxu3 }
 0x62b   : > { %v2306_v8 = vadd.f32 %v2302_v6, %v2270_v3  ;;  %v2407_v9 = vpop.f32.mrf.mxu0  ;;  %v2338_v10 = vpop.f32.mrf.mxu1 }
 0x62c   : > { %v2413_v11 = vadd.f32 %v2407_v9, %v2377_v7 }
 0x62d   : > { %v2342_v15 = vadd.f32 %v2338_v10, %v2306_v8  ;;  %v2480_v8 = vld [vmem:[%s7470_s24 + $0x8] sm:$0xff] }
 0x62e   : > { %v2425_v14 = vadd.f32 %v2418_v12, %v2413_v11 }
 0x62f   : > { %v2378_v19 = vadd.f32 %v2374_v16, %v2342_v15 }
 0x630   : > { %v2429_v17 = vmul.f32 0.01, %v2425_v14  ;;  %vm2427_vm5 = vcmp.ge.f32.partialorder %v2425_v14, 0.0 }
 0x632   : > { %v2431_v20 = vsel %vm2427_vm5, %v2425_v14, %v2429_v17  ;;  %vm2496_vm5 = vcmask 351232   ;;  %v2482_v14 = vld [vmem:[%s7470_s24 + $0x18] sm:$0xff] }
 0x633   : > { %v2410_v21 = vpop.f32.mrf.mxu0  ;;  %5560 = vmatmul.msk.f32.vlgmr.msra.gmra.mxu2 %vm2446_vm0, %v2431_v20 }
 0x634   : > { %v2414_v23 = vadd.f32 %v2410_v21, %v2378_v19 }
 0x636   : > { %v2426_v25 = vadd.f32 %v2423_v24, %v2414_v23  ;;  %v2860_v24 = vld [vmem:[#allocation9 + $0x20] sm:$0xf] }
 0x638   : > { %vm2428_vm8 = vcmp.ge.f32.partialorder %v2426_v25, 0.0  ;;  %v2430_v27 = vmul.f32 0.01, %v2426_v25 }
 0x63a   : > { %v2432_v28 = vsel %vm2428_vm8, %v2426_v25, %v2430_v27  ;;  %vm2493_vm8 = vcmask 56320   ;;  %v2859_v27 = vld [vmem:[#allocation9 + $0x18] sm:$0xff] }
 0x63b   : > { %5561 = vmatmul.msk.f32.gmra.mxu2 %vm2446_vm0, %v2432_v28  ;;  %v2858_v28 = vld [vmem:[#allocation9 + $0x10] sm:$0xff] }
 0x6b6   : > { %v2473_v29 = vpop.f32.mrf.mxu2 }
 0x6b7   : > { %2487 = vrot.lane.b32.xlu0 %v2473_v29, %s6304_s8  ;;  %v2856_v29 = vld [vmem:[#allocation9] sm:$0xff] }
 0x6be   : > { %v2476_v32 = vpop.f32.mrf.mxu2 }
 0x6bf   : > { %2489 = vrot.lane.b32.xlu2 %v2476_v32, %s6304_s8  ;;  %2503 = vrot.lane.b32.xlu0 %v2481_v31, %s7430_s19 }
 0x6c7   : > { %2645 = vrot.lane.b32.xlu0 %v2479_v18, %s7436_s30  ;;  %2501 = vrot.lane.b32.xlu2 %v2479_v18, %s7430_s19 }
 0x6cf   : > { %2606 = vrot.lane.b32.xlu0 %v2479_v18, %s7435_s4  ;;  %2567 = vrot.lane.b32.xlu2 %v2479_v18, %s7428_s0 }
 0x6d7   : > { %2569 = vrot.lane.b32.xlu0 %v2481_v31, %s7428_s0  ;;  %2647 = vrot.lane.b32.xlu2 %v2481_v31, %s7436_s30 }
 0x719   : > { %v2490_v22 = vpop.permute.xlu2 %2489 }
 0x71a   : > { %v2495_v33 = vsel %vm2493_vm8, 0.0, %v2490_v22 }
 0x71b   : > { %5564 = vmatpush.msk.msrb.mxu3 %vm2496_vm5, %v2495_v33  ;;  %v2498_v36 = vsel %vm2496_vm5, %v2495_v33, 0.0 }
 0x721   : > { %v2502_v41 = vpop.permute.xlu2 %2501 }
 0x729   : > { %v2488_v34 = vpop.permute.xlu0 %2487  ;;  %v2568_v42 = vpop.permute.xlu2 %2567 }
 0x72a   : > { %v2494_v35 = vsel %vm2493_vm8, 0.0, %v2488_v34  ;;  %v2894_v34 = vld [vmem:[%s7373_s21 + $0x8] sm:$0xff] }
 0x72b   : > { %v2497_v37 = vsel %vm2496_vm5, %v2494_v35, 0.0  ;;  %5565 = vmatpush.msk.msrb.mxu3 %vm2496_vm5, %v2494_v35 }
 0x72c   : > { %v5892_v39 = vpack.i.bf16 %v2497_v37, %v2498_v36  ;;  %5566 = vmatmul.msk.f32.vlgmr.msrb.gmra.mxu3 %vm931_vm4, %v2479_v18 }
 0x72e   : > { %5893 = vrot.lane.b32.xlu0 %v5892_v39, %s7414_s1  ;;  %5878 = vrot.lane.b32.xlu2 %v5892_v39, %s7417_s28  ;;  %s7471_s28 = sld [smem:[#allocation25_spill]]  ;;  %s7484_s1 = smov 32  }
 0x72f   : > { %5868 = vrot.lane.b32.xlu1 %v5892_v39, %s7415_s3  ;;  %s7475_s3 = smov 121  }
 0x731   : > { %v2504_v26 = vpop.permute.xlu0 %2503  ;;  %v2648_v30 = vpop.permute.xlu2 %2647 }
 0x734   : > { %5567 = vmatmul.msk.f32.gmra.mxu3 %vm931_vm4, %v2481_v31  ;;  %v2484_v40 = vld [vmem:[%s7471_s28 + $0x8] sm:$0xff]  ;;  %v2483_v61 = vld [vmem:[%s7471_s28] sm:$0xff] }
 0x736   : > { %2686 = vrot.lane.b32.xlu0 %v2481_v31, %s7419_s9  ;;  %2608 = vrot.lane.b32.xlu2 %v2481_v31, %s7435_s4  ;;  %s7421_s9 = smov 16  }
 0x737   : > { %5873 = vrot.lane.b32.xlu1 %v5892_v39, %s7423_s7  ;;  %s7474_s7 = smov 48  }
 0x739   : > { %v2646_v43 = vpop.permute.xlu0 %2645 }
 0x73e   : > { %2725 = vrot.lane.b32.xlu0 %v2481_v31, %s7432_s11  ;;  %5903 = vrot.lane.b32.xlu2 %v5892_v39, %s6308_s27 }
 0x73f   : > { %5883 = vrot.lane.b32.xlu1 %v5892_v39, %s6309_s26 }
 0x741   : > { %v2607_v46 = vpop.permute.xlu0 %2606 }
 0x746   : > { %2845 = vperm.xlu0 %5866, %v2484_v40   ;;  %2762 = vrot.lane.b32.xlu2 %v2479_v18, %s7421_s9 }
 0x747   : > { %5888 = vrot.lane.b32.xlu1 %v5892_v39, %s7426_s29 }
 0x749   : > { %v2570_v47 = vpop.permute.xlu0 %2569 }
 0x74e   : > { %2840 = vperm.xlu2 %5907, %v2483_v61  }
 0x74f   : > { %5898 = vrot.lane.b32.xlu1 %v5892_v39, %s7433_s25 }
 0x757   : > { %2723 = vrot.lane.b32.xlu1 %v2479_v18, %s7432_s11  ;;  %v2857_v18 = vld [vmem:[#allocation9 + $0x8] sm:$0xff] }
 0x75f   : > { %2764 = vrot.lane.b32.xlu1 %v2481_v31, %s7421_s9  ;;  %s7473_s9 = smov 127  }
 0x788   : > { %v5879_v38 = vpop.permute.xlu2 %5878 }
 0x789   : > { %v5880_v44 = vunpack.i.l.bf16 %v5879_v38  ;;  %v5881_v45 = vunpack.i.h.bf16 %v5879_v38 }
 0x78b   : > { %2595 = vmatpush.msra.mxu0 %v5880_v44 }
 0x78d   : > { %2596 = vmatpush.msra.mxu0 %v5881_v45 }
 0x78e   : > { %5568 = vmatmul.msk.f32.vlgmr.msra.gmra.mxu0 %vm931_vm4, %v2568_v42 }
 0x790   : > { %v2609_v52 = vpop.permute.xlu2 %2608 }
 0x796   : > { %5569 = vmatmul.msk.f32.gmra.mxu0 %vm931_vm4, %v2570_v47 }
 0x798   : > { %v5904_v62 = vpop.permute.xlu2 %5903 }
 0x799   : > { %v5905_v0 = vunpack.i.l.bf16 %v5904_v62  ;;  %v5906_v1 = vunpack.i.h.bf16 %v5904_v62 }
 0x7a0   : > { %v5894_v55 = vpop.permute.xlu0 %5893  ;;  %v2763_v12 = vpop.permute.xlu2 %2762 }
 0x7a1   : > { %v5869_v49 = vpop.permute.xlu1 %5868  ;;  %v5895_v57 = vunpack.i.l.bf16 %v5894_v55  ;;  %v5896_v58 = vunpack.i.h.bf16 %v5894_v55 }
 0x7a2   : > { %v5870_v50 = vunpack.i.l.bf16 %v5869_v49  ;;  %v5871_v51 = vunpack.i.h.bf16 %v5869_v49 }
 0x7a4   : > { %2531 = vmatpush.msra.mxu1 %v5870_v50 }
 0x7a6   : > { %2532 = vmatpush.msra.mxu1 %v5871_v51 }
 0x7a7   : > { %5562 = vmatmul.msk.f32.vlgmr.msra.gmra.mxu1 %vm931_vm4, %v2502_v41 }
 0x7a8   : > { %v2687_v15 = vpop.permute.xlu0 %2686  ;;  %v2841_v50 = vpop.permute.xlu2 %2840 }
 0x7a9   : > { %v5874_v53 = vpop.permute.xlu1 %5873 }
 0x7aa   : > { %v5875_v54 = vunpack.i.l.bf16 %v5874_v53  ;;  %v5876_v56 = vunpack.i.h.bf16 %v5874_v53 }
 0x7ac   : > { %2673 = vmatpush.msra.mxu3 %v5875_v54 }
 0x7ae   : > { %2674 = vmatpush.msra.mxu3 %v5876_v56 }
 0x7af   : > { %5563 = vmatmul.msk.f32.gmra.mxu1 %vm931_vm4, %v2504_v26  ;;  %5572 = vmatmul.msk.f32.vlgmr.msra.gmra.mxu3 %vm931_vm4, %v2646_v43  ;;  %v2561_v20 = vpop.f32.mrf.mxu3 }
 0x7b0   : > { %2827 = vmatpush.msrb.mxu3 %v5895_v57  ;;  %v2726_v17 = vpop.permute.xlu0 %2725 }
 0x7b1   : > { %v5884_v59 = vpop.permute.xlu1 %5883 }
 0x7b2   : > { %v5885_v60 = vunpack.i.l.bf16 %v5884_v59  ;;  %2828 = vmatpush.msrb.mxu3 %v5896_v58  ;;  %v5886_v63 = vunpack.i.h.bf16 %v5884_v59 }
 0x7b4   : > { %2634 = vmatpush.msrb.mxu1 %v5885_v60 }
 0x7b6   : > { %2635 = vmatpush.msrb.mxu1 %v5886_v63 }
 0x7b7   : > { %5570 = vmatmul.msk.f32.vlgmr.msrb.gmra.mxu1 %vm931_vm4, %v2607_v46  ;;  %5573 = vmatmul.msk.f32.gmra.mxu3 %vm931_vm4, %v2648_v30  ;;  %v2564_v23 = vpop.f32.mrf.mxu3 }
 0x7b8   : > { %2790 = vmatpush.msra.mxu1 %v5905_v0  ;;  %v2846_v63 = vpop.permute.xlu0 %2845 }
 0x7b9   : > { %v5889_v3 = vpop.permute.xlu1 %5888 }
 0x7ba   : > { %v5890_v6 = vunpack.i.l.bf16 %v5889_v3  ;;  %2791 = vmatpush.msra.mxu1 %v5906_v1  ;;  %v5891_v7 = vunpack.i.h.bf16 %v5889_v3 }
 0x7bc   : > { %2712 = vmatpush.msrb.mxu2 %v5890_v6  ;;  %v2893_v6 = vld [vmem:[%s7373_s21] sm:$0xff] }
 0x7be   : > { %2713 = vmatpush.msrb.mxu2 %v5891_v7 }
 0x7bf   : > { %5571 = vmatmul.msk.f32.gmra.mxu1 %vm931_vm4, %v2609_v52  ;;  %5574 = vmatmul.msk.f32.vlgmr.msrb.gmra.mxu2 %vm931_vm4, %v2685_v48 }
 0x7c0   : > { %5580 = vmatmul.msk.f32.vlgmr.msrb.gmra.mxu3 %vm931_vm4, %v2480_v8  ;;  %5582 = vmatpush.msk.msra.mxu2 %vm1259_vm9, %v2860_v24  ;;  %v2929_v24 = vld [vmem:[%s7476_s10 + $0x8] sm:$0xff] }
 0x7c1   : > { %v5899_v9 = vpop.permute.xlu1 %5898 }
 0x7c2   : > { %v5900_v10 = vunpack.i.l.bf16 %v5899_v9  ;;  %v5901_v11 = vunpack.i.h.bf16 %v5899_v9  ;;  %2882 = vmatpush.msra.mxu2 %v2859_v27 }
 0x7c4   : > { %2751 = vmatpush.msrb.mxu0 %v5900_v10  ;;  %2883 = vmatpush.msra.mxu2 %v2858_v28 }
 0x7c6   : > { %2752 = vmatpush.msrb.mxu0 %v5901_v11  ;;  %2884 = vmatpush.msra.mxu2 %v2857_v18  ;;  %v2924_v11 = vld [vmem:[#allocation2] sm:$0xff] }
 0x7c7   : > { %5575 = vmatmul.msk.f32.gmra.mxu2 %vm931_vm4, %v2687_v15  ;;  %5578 = vmatmul.msk.f32.vlgmr.msra.gmra.mxu1 %vm931_vm4, %v2763_v12  ;;  %v2926_v12 = vld [vmem:[#allocation2 + $0x10] sm:$0xff] }
 0x7c8   : > { %5581 = vmatmul.msk.f32.gmra.mxu3 %vm931_vm4, %v2482_v14  ;;  %2885 = vmatpush.msra.mxu2 %v2856_v29 }
 0x7c9   : > { %v2724_v16 = vpop.permute.xlu1 %2723  ;;  %2915 = vmatpush.msra.mxu0 %v2894_v34  ;;  %3010 = vrot.lane.b32.xlu0 %v2924_v11, %s7428_s0 }
 0x7ca   : > { %5576 = vmatmul.msk.f32.vlgmr.msrb.gmra.mxu0 %vm931_vm4, %v2724_v16 }
 0x7cb   : > { %2916 = vmatpush.msra.mxu0 %v2893_v6  ;;  %v3301_v6 = vld [vmem:[%s7374_s22 + $0x10] sm:$0xff] }
 0x7d1   : > { %v2765_v19 = vpop.permute.xlu1 %2764  ;;  %3088 = vrot.lane.b32.xlu0 %v2924_v11, %s7436_s30 }
 0x7d2   : > { %5577 = vmatmul.msk.f32.gmra.mxu0 %vm931_vm4, %v2726_v17  ;;  %5579 = vmatmul.msk.f32.gmra.mxu1 %vm931_vm4, %v2765_v19 }
 0x80b   : > { %v2598_v22 = vpop.f32.mrf.mxu0 }
 0x813   : > { %v2601_v37 = vpop.f32.mrf.mxu0 }
 0x824   : > { %v2534_v21 = vpop.f32.mrf.mxu1 }
 0x825   : > { %v2562_v33 = vadd.f32 %v2561_v20, %v2534_v21 }
 0x827   : > { %v2604_v36 = vadd.f32 %v2598_v22, %v2562_v33 }
 0x82c   : > { %v2537_v25 = vpop.f32.mrf.mxu1 }
 0x82d   : > { %v2565_v41 = vadd.f32 %v2564_v23, %v2537_v25  ;;  %v2928_v23 = vld [vmem:[%s7476_s10] sm:$0xff]  ;;  %s7500_s10 = smov 80  }
 0x82f   : > { %v2605_v43 = vadd.f32 %v2601_v37, %v2565_v41 }
 0x832   : > { %v2676_v32 = vpop.f32.mrf.mxu3 }
 0x834   : > { %v2637_v31 = vpop.f32.mrf.mxu1 }
 0x835   : > { %v2643_v40 = vadd.f32 %v2637_v31, %v2604_v36 }
 0x837   : > { %v2682_v26 = vadd.f32 %v2676_v32, %v2643_v40 }
 0x83a   : > { %v2679_v39 = vpop.f32.mrf.mxu3 }
 0x83b   : > { %v3011_v22 = vpop.permute.xlu0 %3010 }
 0x83c   : > { %v2640_v35 = vpop.f32.mrf.mxu1 }
 0x83d   : > { %v2644_v46 = vadd.f32 %v2640_v35, %v2605_v43 }
 0x83f   : > { %v2683_v51 = vadd.f32 %v2679_v39, %v2644_v46 }
 0x842   : > { %v2715_v42 = vpop.f32.mrf.mxu2 }
 0x843   : > { %v2721_v38 = vadd.f32 %v2715_v42, %v2682_v26  ;;  %v2830_v45 = vpop.f32.mrf.mxu3  ;;  %v3089_v39 = vpop.permute.xlu0 %3088 }
 0x844   : > { %v2793_v30 = vpop.f32.mrf.mxu1 }
 0x847   : > { %v2754_v44 = vpop.f32.mrf.mxu0 }
 0x848   : > { %v2760_v47 = vadd.f32 %v2754_v44, %v2721_v38 }
 0x84a   : > { %v2799_v48 = vadd.f32 %v2793_v30, %v2760_v47  ;;  %v2718_v49 = vpop.f32.mrf.mxu2 }
 0x84b   : > { %v2722_v53 = vadd.f32 %v2718_v49, %v2683_v51  ;;  %v2833_v59 = vpop.f32.mrf.mxu3 }
 0x84c   : > { %v2836_v52 = vadd.f32 %v2830_v45, %v2799_v48 }
 0x84e   : > { %v2848_v54 = vadd.f32 %v2841_v50, %v2836_v52 }
 0x84f   : > { %v2757_v55 = vpop.f32.mrf.mxu0  ;;  %v2796_v56 = vpop.f32.mrf.mxu1 }
 0x850   : > { %vm2850_vm15 = vcmp.ge.f32.partialorder %v2848_v54, 0.0  ;;  %v2852_v57 = vmul.f32 0.01, %v2848_v54  ;;  %v2761_v58 = vadd.f32 %v2757_v55, %v2722_v53 }
 0x852   : > { %v2854_v60 = vsel %vm2850_vm15, %v2848_v54, %v2852_v57  ;;  %v2800_v61 = vadd.f32 %v2796_v56, %v2761_v58 }
 0x853   : > { %5583 = vmatmul.msk.f32.vlgmr.msra.gmra.mxu2 %vm855_vm6, %v2854_v60  ;;  %v2925_v60 = vld [vmem:[#allocation2 + $0x8] sm:$0xff] }
 0x854   : > { %v2837_v62 = vadd.f32 %v2833_v59, %v2800_v61 }
 0x856   : > { %v2849_v0 = vadd.f32 %v2846_v63, %v2837_v62  ;;  %v2927_v62 = vld [vmem:[#allocation2 + $0x18] sm:$0xff]  ;;  %v3303_v63 = vld [vmem:[%s7374_s22 + $0x20] sm:$0xf] }
 0x858   : > { %vm2851_vm10 = vcmp.ge.f32.partialorder %v2849_v0, 0.0  ;;  %v2853_v1 = vmul.f32 0.01, %v2849_v0 }
 0x85a   : > { %v2855_v3 = vsel %vm2851_vm10, %v2849_v0, %v2853_v1 }
 0x85b   : > { %5584 = vmatmul.msk.f32.gmra.mxu2 %vm855_vm6, %v2855_v3  ;;  %v3302_v3 = vld [vmem:[%s7374_s22 + $0x18] sm:$0xff] }
 0x8d6   : > { %v2887_v7 = vpop.f32.mrf.mxu2 }
 0x8d7   : > { %5585 = vmatmul.msk.f32.vlgmr.msra.gmra.mxu0 %vm931_vm4, %v2887_v7  ;;  %v3300_v7 = vld [vmem:[%s7374_s22 + $0x8] sm:$0xff] }
 0x8de   : > { %v2890_v8 = vpop.f32.mrf.mxu2 }
 0x8df   : > { %5586 = vmatmul.msk.f32.gmra.mxu0 %vm931_vm4, %v2890_v8 }
 0x954   : > { %v2918_v9 = vpop.f32.mrf.mxu0 }
 0x955   : > { %2932 = vrot.lane.b32.xlu2 %v2918_v9, %s6304_s8  ;;  %v3299_v9 = vld [vmem:[%s7374_s22] sm:$0xff] }
 0x95c   : > { %v2921_v10 = vpop.f32.mrf.mxu0 }
 0x95d   : > { %2934 = vrot.lane.b32.xlu1 %v2921_v10, %s6304_s8  ;;  %3049 = vrot.lane.b32.xlu2 %v2924_v11, %s7435_s4  ;;  %s7472_s8 = smov 126  }
 0x965   : > { %2944 = vrot.lane.b32.xlu1 %v2924_v11, %s7430_s19  ;;  %3166 = vrot.lane.b32.xlu2 %v2924_v11, %s7432_s11 }
 0x96d   : > { %2946 = vrot.lane.b32.xlu1 %v2926_v12, %s7430_s19  ;;  %s7487_s19 = smov 108  }
 0x975   : > { %3012 = vrot.lane.b32.xlu1 %v2926_v12, %s7428_s0  ;;  %s7486_s0 = smov 117  }
 0x97d   : > { %3051 = vrot.lane.b32.xlu1 %v2926_v12, %s7435_s4 }
 0x9af   : > { %v2933_v14 = vpop.permute.xlu2 %2932 }
 0x9b0   : > { %v2938_v15 = vsel %vm2493_vm8, 0.0, %v2933_v14 }
 0x9b1   : > { %v2940_v19 = vsel %vm2496_vm5, %v2938_v15, 0.0 }
 0x9b7   : > { %v3050_v25 = vpop.permute.xlu2 %3049 }
 0x9bf   : > { %v3167_v28 = vpop.permute.xlu2 %3166 }
 0x9cf   : > { %v2935_v16 = vpop.permute.xlu1 %2934 }
 0x9d0   : > { %v2939_v17 = vsel %vm2493_vm8, 0.0, %v2935_v16 }
 0x9d1   : > { %v2941_v20 = vsel %vm2496_vm5, %v2939_v17, 0.0  ;;  %5589 = vmatpush.msk.msra.mxu3 %vm2496_vm5, %v2939_v17 }
 0x9d2   : > { %v5928_v21 = vpack.i.bf16 %v2940_v19, %v2941_v20 }
 0x9d3   : > { %5590 = vmatpush.msk.msra.mxu3 %vm2496_vm5, %v2938_v15 }
 0x9d4   : > { %5929 = vrot.lane.b32.xlu1 %v5928_v21, %s7426_s29  ;;  %5914 = vrot.lane.b32.xlu2 %v5928_v21, %s7472_s8  ;;  %s7481_s29 = smov 118  }
 0x9d5   : > { %5909 = vrot.lane.b32.xlu0 %v5928_v21, %s7473_s9  ;;  %5591 = vmatmul.msk.f32.vlgmr.msra.gmra.mxu3 %vm931_vm4, %v2924_v11 }
 0x9d7   : > { %v2945_v27 = vpop.permute.xlu1 %2944 }
 0x9dc   : > { %5939 = vrot.lane.b32.xlu1 %v5928_v21, %s6308_s27  ;;  %5919 = vrot.lane.b32.xlu2 %v5928_v21, %s6309_s26  ;;  %s7477_s26 = smov 16   ;;  %s7478_s27 = smov 114  }
 0x9dd   : > { %3127 = vrot.lane.b32.xlu0 %v2924_v11, %s7474_s7  ;;  %5592 = vmatmul.msk.f32.gmra.mxu3 %vm931_vm4, %v2926_v12 }
 0x9df   : > { %v2947_v18 = vpop.permute.xlu1 %2946 }
 0x9e4   : > { %3168 = vrot.lane.b32.xlu1 %v2926_v12, %s7432_s11  ;;  %5934 = vrot.lane.b32.xlu2 %v5928_v21, %s7433_s25  ;;  %s7479_s25 = smov 11   ;;  %s7480_s11 = smov 112  }
 0x9e5   : > { %5924 = vrot.lane.b32.xlu0 %v5928_v21, %s7475_s3  ;;  %s7483_s3 = smov 116  }
 0x9e7   : > { %v3013_v33 = vpop.permute.xlu1 %3012 }
 0x9ec   : > { %3283 = vperm.xlu1 %5865, %v2928_v23   ;;  %3129 = vrot.lane.b32.xlu2 %v2926_v12, %s7474_s7 }
 0x9ed   : > { %3090 = vrot.lane.b32.xlu0 %v2926_v12, %s7436_s30 }
 0x9ef   : > { %v3052_v37 = vpop.permute.xlu1 %3051 }
 0x9f4   : > { %3205 = vrot.lane.b32.xlu2 %v2924_v11, %s7477_s26 }
 0x9f5   : > { %5944 = vrot.lane.b32.xlu0 %v5928_v21, %s7478_s27  ;;  %s7485_s27 = smov 107  }
 0x9fc   : > { %3288 = vperm.xlu2 %5907, %v2929_v24  }
 0x9fd   : > { %3207 = vrot.lane.b32.xlu0 %v2926_v12, %s7477_s26 }
 0xa2e   : > { %v5915_v29 = vpop.permute.xlu2 %5914 }
 0xa2f   : > { %v5916_v31 = vunpack.i.l.bf16 %v5915_v29  ;;  %v5917_v32 = vunpack.i.h.bf16 %v5915_v29 }
 0xa31   : > { %3038 = vmatpush.msrb.mxu2 %v5916_v31 }
 0xa33   : > { %3039 = vmatpush.msrb.mxu2 %v5917_v32 }
 0xa34   : > { %5593 = vmatmul.msk.f32.vlgmr.msrb.gmra.mxu2 %vm931_vm4, %v3011_v22 }
 0xa36   : > { %v5920_v34 = vpop.permute.xlu2 %5919 }
 0xa37   : > { %v5921_v35 = vunpack.i.l.bf16 %v5920_v34  ;;  %v5922_v36 = vunpack.i.h.bf16 %v5920_v34 }
 0xa39   : > { %3077 = vmatpush.msrb.mxu0 %v5921_v35 }
 0xa3b   : > { %3078 = vmatpush.msrb.mxu0 %v5922_v36 }
 0xa3c   : > { %5594 = vmatmul.msk.f32.gmra.mxu2 %vm931_vm4, %v3013_v33  ;;  %5595 = vmatmul.msk.f32.vlgmr.msrb.gmra.mxu0 %vm931_vm4, %v3050_v25 }
 0xa3e   : > { %v5935_v40 = vpop.permute.xlu2 %5934 }
 0xa3f   : > { %v5936_v41 = vunpack.i.l.bf16 %v5935_v40  ;;  %v5937_v42 = vunpack.i.h.bf16 %v5935_v40 }
 0xa41   : > { %3194 = vmatpush.msra.mxu2 %v5936_v41 }
 0xa43   : > { %3195 = vmatpush.msra.mxu2 %v5937_v42 }
 0xa44   : > { %5601 = vmatmul.msk.f32.vlgmr.msra.gmra.mxu2 %vm931_vm4, %v3167_v28  ;;  %5596 = vmatmul.msk.f32.gmra.mxu0 %vm931_vm4, %v3052_v37 }
 0xa46   : > { %v5930_v26 = vpop.permute.xlu1 %5929  ;;  %v3130_v44 = vpop.permute.xlu2 %3129 }
 0xa47   : > { %v5910_v30 = vpop.permute.xlu0 %5909  ;;  %v5931_v43 = vunpack.i.l.bf16 %v5930_v26  ;;  %v5932_v45 = vunpack.i.h.bf16 %v5930_v26 }
 0xa48   : > { %v5911_v38 = vunpack.i.l.bf16 %v5910_v30  ;;  %v5912_v46 = vunpack.i.h.bf16 %v5910_v30 }
 0xa49   : > { %3155 = vmatpush.msrb.mxu3 %v5931_v43 }
 0xa4a   : > { %2974 = vmatpush.msrb.mxu1 %v5911_v38 }
 0xa4b   : > { %3156 = vmatpush.msrb.mxu3 %v5932_v45 }
 0xa4c   : > { %2975 = vmatpush.msrb.mxu1 %v5912_v46 }
 0xa4d   : > { %5587 = vmatmul.msk.f32.vlgmr.msrb.gmra.mxu1 %vm931_vm4, %v2945_v27  ;;  %5607 = vmatpush.msk.msra.mxu3 %vm1259_vm9, %v3303_v63 }
 0xa4e   : > { %v5940_v47 = vpop.permute.xlu1 %5939  ;;  %v3206_v51 = vpop.permute.xlu2 %3205 }
 0xa4f   : > { %v3128_v48 = vpop.permute.xlu0 %3127  ;;  %v5941_v49 = vunpack.i.l.bf16 %v5940_v47  ;;  %v5942_v50 = vunpack.i.h.bf16 %v5940_v47  ;;  %3325 = vmatpush.msra.mxu3 %v3302_v3 }
 0xa50   : > { %5599 = vmatmul.msk.f32.vlgmr.msrb.gmra.mxu3 %vm931_vm4, %v3128_v48 }
 0xa51   : > { %3233 = vmatpush.msra.mxu0 %v5941_v49  ;;  %3326 = vmatpush.msra.mxu3 %v3301_v6 }
 0xa53   : > { %3234 = vmatpush.msra.mxu0 %v5942_v50  ;;  %3327 = vmatpush.msra.mxu3 %v3300_v7  ;;  %v3336_v50 = vld [vmem:[#allocation4] sm:$0xff] }
 0xa54   : > { %5603 = vmatmul.msk.f32.vlgmr.msra.gmra.mxu0 %vm931_vm4, %v3206_v51  ;;  %3437 = vrot.lane.b32.xlu2 %v3336_v50, %s7435_s4  ;;  %s7496_s4 = smov 92  }
 0xa55   : > { %5588 = vmatmul.msk.f32.gmra.mxu1 %vm931_vm4, %v2947_v18  ;;  %3328 = vmatpush.msra.mxu3 %v3299_v9 }
 0xa56   : > { %v3169_v52 = vpop.permute.xlu1 %3168  ;;  %v3289_v46 = vpop.permute.xlu2 %3288 }
 0xa57   : > { %v5925_v53 = vpop.permute.xlu0 %5924  ;;  %5602 = vmatmul.msk.f32.gmra.mxu2 %vm931_vm4, %v3169_v52 }
 0xa58   : > { %v5926_v54 = vunpack.i.l.bf16 %v5925_v53  ;;  %5600 = vmatmul.msk.f32.gmra.mxu3 %vm931_vm4, %v3130_v44  ;;  %v5927_v55 = vunpack.i.h.bf16 %v5925_v53  ;;  %v3004_v1 = vpop.f32.mrf.mxu3 }
 0xa5a   : > { %3116 = vmatpush.msra.mxu1 %v5926_v54 }
 0xa5c   : > { %3117 = vmatpush.msra.mxu1 %v5927_v55 }
 0xa5d   : > { %5597 = vmatmul.msk.f32.vlgmr.msra.gmra.mxu1 %vm931_vm4, %v3089_v39 }
 0xa5e   : > { %v3284_v39 = vpop.permute.xlu1 %3283 }
 0xa5f   : > { %v3091_v56 = vpop.permute.xlu0 %3090 }
 0xa60   : > { %v3007_v14 = vpop.f32.mrf.mxu3 }
 0xa65   : > { %5598 = vmatmul.msk.f32.gmra.mxu1 %vm931_vm4, %v3091_v56 }
 0xa67   : > { %v5945_v57 = vpop.permute.xlu0 %5944 }
 0xa68   : > { %v5946_v58 = vunpack.i.l.bf16 %v5945_v57  ;;  %v5947_v59 = vunpack.i.h.bf16 %v5945_v57 }
 0xa6a   : > { %3270 = vmatpush.msrb.mxu1 %v5946_v58 }
 0xa6c   : > { %3271 = vmatpush.msrb.mxu1 %v5947_v59 }
 0xa6d   : > { %5605 = vmatmul.msk.f32.vlgmr.msrb.gmra.mxu1 %vm931_vm4, %v2925_v60  ;;  %v3338_v60 = vld [vmem:[%s7488_s12] sm:$0xff]  ;;  %s7501_s12 = smov 90  }
 0xa6f   : > { %v3208_v61 = vpop.permute.xlu0 %3207 }
 0xa70   : > { %5604 = vmatmul.msk.f32.gmra.mxu0 %vm931_vm4, %v3208_v61 }
 0xa75   : > { %5606 = vmatmul.msk.f32.gmra.mxu1 %vm931_vm4, %v2927_v62 }
 0xaae   : > { %v3438_v61 = vpop.permute.xlu2 %3437 }
 0xab7   : > { %v3041_v8 = vpop.f32.mrf.mxu2 }
 0xab9   : > { %v3080_v12 = vpop.f32.mrf.mxu0 }
 0xabf   : > { %v3044_v16 = vpop.f32.mrf.mxu2 }
 0xac1   : > { %v3083_v23 = vpop.f32.mrf.mxu0 }
 0xac7   : > { %v3197_v18 = vpop.f32.mrf.mxu2 }
 0xaca   : > { %v2977_v0 = vpop.f32.mrf.mxu1 }
 0xacb   : > { %v3005_v11 = vadd.f32 %v3004_v1, %v2977_v0 }
 0xacd   : > { %v3047_v15 = vadd.f32 %v3041_v8, %v3005_v11 }
 0xacf   : > { %v3086_v19 = vadd.f32 %v3080_v12, %v3047_v15 }
 0xad1   : > { %v3236_v32 = vpop.f32.mrf.mxu0 }
 0xad2   : > { %v2980_v10 = vpop.f32.mrf.mxu1 }
 0xad3   : > { %v3008_v20 = vadd.f32 %v3007_v14, %v2980_v10  ;;  %v3158_v24 = vpop.f32.mrf.mxu3 }
 0xad5   : > { %v3048_v25 = vadd.f32 %v3044_v16, %v3008_v20 }
 0xad7   : > { %v3087_v31 = vadd.f32 %v3083_v23, %v3048_v25 }
 0xada   : > { %v3119_v17 = vpop.f32.mrf.mxu1  ;;  %v3200_v40 = vpop.f32.mrf.mxu2 }
 0xadb   : > { %v3125_v21 = vadd.f32 %v3119_v17, %v3086_v19  ;;  %v3161_v33 = vpop.f32.mrf.mxu3 }
 0xadd   : > { %v3164_v27 = vadd.f32 %v3158_v24, %v3125_v21 }
 0xadf   : > { %v3203_v29 = vadd.f32 %v3197_v18, %v3164_v27 }
 0xae1   : > { %v3242_v34 = vadd.f32 %v3236_v32, %v3203_v29 }
 0xae2   : > { %v3122_v28 = vpop.f32.mrf.mxu1 }
 0xae3   : > { %v3126_v22 = vadd.f32 %v3122_v28, %v3087_v31 }
 0xae5   : > { %v3165_v36 = vadd.f32 %v3161_v33, %v3126_v22 }
 0xae7   : > { %v3204_v26 = vadd.f32 %v3200_v40, %v3165_v36  ;;  %v3668_v36 = vld [vmem:[#allocation10 + $0x128] sm:$0xf]  ;;  %v3665_v40 = vld [vmem:[#allocation10 + $0x110] sm:$0xff] }
 0xaea   : > { %v3273_v35 = vpop.f32.mrf.mxu1 }
 0xaeb   : > { %v3279_v37 = vadd.f32 %v3273_v35, %v3242_v34  ;;  %v3337_v34 = vld [vmem:[#allocation4 + $0x8] sm:$0xff] }
 0xaec   : > { %v3667_v35 = vld [vmem:[#allocation10 + $0x120] sm:$0xf] }
 0xaed   : > { %v3291_v41 = vadd.f32 %v3284_v39, %v3279_v37  ;;  %v3239_v42 = vpop.f32.mrf.mxu0  ;;  %v3669_v37 = vld [vmem:[#allocation10 + $0x130] sm:$0xf]  ;;  %v3664_v39 = vld [vmem:[#allocation10 + $0x108] sm:$0xff] }
 0xaee   : > { %v3243_v43 = vadd.f32 %v3239_v42, %v3204_v26  ;;  %v3661_v42 = vld [vmem:[#allocation10 + $0xf0] sm:$0xff]  ;;  %v3662_v26 = vld [vmem:[#allocation10 + $0xf8] sm:$0xff] }
 0xaef   : > { %vm3293_vm10 = vcmp.ge.f32.partialorder %v3291_v41, 0.0  ;;  %v3295_v30 = vmul.f32 0.01, %v3291_v41 }
 0xaf1   : > { %v3297_v38 = vsel %vm3293_vm10, %v3291_v41, %v3295_v30  ;;  %v3666_v41 = vld [vmem:[#allocation10 + $0x118] sm:$0xff]  ;;  %v3663_v30 = vld [vmem:[#allocation10 + $0x100] sm:$0xff]  ;;  %vm7506_vm10 = vcmask 744448  }
 0xaf2   : > { %v3276_v44 = vpop.f32.mrf.mxu1  ;;  %5608 = vmatmul.msk.f32.vlgmr.msra.gmra.mxu3 %vm855_vm6, %v3297_v38  ;;  %v3659_v38 = vld [vmem:[#allocation10 + $0xe0] sm:$0xff] }
 0xaf3   : > { %v3280_v45 = vadd.f32 %v3276_v44, %v3243_v43  ;;  %v3658_v43 = vld [vmem:[#allocation10 + $0xd8] sm:$0xff]  ;;  %v3660_v44 = vld [vmem:[#allocation10 + $0xe8] sm:$0xff] }
 0xaf5   : > { %v3292_v47 = vadd.f32 %v3289_v46, %v3280_v45  ;;  %v3655_v45 = vld [vmem:[#allocation10 + $0xc0] sm:$0xff]  ;;  %v3656_v46 = vld [vmem:[#allocation10 + $0xc8] sm:$0xff] }
 0xaf7   : > { %vm3294_vm15 = vcmp.ge.f32.partialorder %v3292_v47, 0.0  ;;  %v3296_v48 = vmul.f32 0.01, %v3292_v47 }
 0xaf9   : > { %v3298_v49 = vsel %vm3294_vm15, %v3292_v47, %v3296_v48  ;;  %v3657_v47 = vld [vmem:[#allocation10 + $0xd0] sm:$0xff]  ;;  %v3652_v48 = vld [vmem:[#allocation10 + $0xa8] sm:$0xff]  ;;  %vm7507_vm15 = vcmask 752640  }
 0xafa   : > { %5609 = vmatmul.msk.f32.gmra.mxu3 %vm855_vm6, %v3298_v49  ;;  %v3653_v49 = vld [vmem:[#allocation10 + $0xb0] sm:$0xff] }
 0xb75   : > { %v3330_v51 = vpop.f32.mrf.mxu3 }
 0xb76   : > { %3341 = vrot.lane.b32.xlu1 %v3330_v51, %s7479_s25  ;;  %v3649_v51 = vld [vmem:[#allocation10 + $0x90] sm:$0xff] }
 0xb7d   : > { %v3333_v52 = vpop.f32.mrf.mxu3 }
 0xb7e   : > { %3343 = vrot.lane.b32.xlu0 %v3333_v52, %s7479_s25  ;;  %v3650_v52 = vld [vmem:[#allocation10 + $0x98] sm:$0xff]  ;;  %s7492_s25 = smov 104  }
 0xb86   : > { %3352 = vrot.lane.b32.xlu0 %v3336_v50, %s7480_s11 }
 0xb8e   : > { %3499 = vrot.lane.b32.xlu0 %v3336_v50, %s7474_s7  ;;  %s7482_s7 = smov 96  }
 0xbe8   : > { %v3342_v53 = vpop.permute.xlu1 %3341 }
 0xbe9   : > { %v3347_v54 = vsel %vm2094_vm7, 0.0, %v3342_v53  ;;  %v3651_v53 = vld [vmem:[#allocation10 + $0xa0] sm:$0xff] }
 0xbea   : > { %v3349_v57 = vsel %vm2096_vm1, %v3347_v54, 0.0 }
 0xbf0   : > { %v3344_v55 = vpop.permute.xlu0 %3343 }
 0xbf1   : > { %v3348_v56 = vsel %vm2094_vm7, 0.0, %v3344_v55  ;;  %v3647_v55 = vld [vmem:[#allocation10 + $0x80] sm:$0xff]  ;;  %vm7502_vm7 = vcmask 883712  }
 0xbf2   : > { %v3350_v58 = vsel %vm2096_vm1, %v3348_v56, 0.0  ;;  %5611 = vmatpush.msk.msrb.mxu0 %vm2096_vm1, %v3348_v56  ;;  %v3648_v56 = vld [vmem:[#allocation10 + $0x88] sm:$0xff]  ;;  %vm7505_vm5 = vmmov %vm7502_vm7 }
 0xbf3   : > { %v5958_v59 = vpack.i.bf16 %v3349_v57, %v3350_v58  ;;  %v3643_v57 = vld [vmem:[#allocation10 + $0x60] sm:$0xff]  ;;  %v3644_v58 = vld [vmem:[#allocation10 + $0x68] sm:$0xff] }
 0xbf4   : > { %5612 = vmatpush.msk.msrb.mxu0 %vm2096_vm1, %v3347_v54  ;;  %v3646_v54 = vld [vmem:[#allocation10 + $0x78] sm:$0xff]  ;;  %vm7503_vm1 = vcmask 891904  }
 0xbf5   : > { %5959 = vrot.lane.b32.xlu0 %v5958_v59, %s7472_s8  ;;  %5954 = vrot.lane.b32.xlu1 %v5958_v59, %s7481_s29  ;;  %s7493_s29 = smov 110   ;;  %vm7504_vm8 = vmmov %vm7503_vm1 }
 0xbf6   : > { %5949 = vrot.lane.b32.xlu2 %v5958_v59, %s7473_s9  ;;  %5613 = vmatmul.msk.f32.vlgmr.msrb.gmra.mxu0 %vm931_vm4, %v3336_v50 }
 0xbf8   : > { %v3353_v1 = vpop.permute.xlu0 %3352 }
 0xbfd   : > { %3561 = vrot.lane.b32.xlu1 %v3336_v50, %s7477_s26  ;;  %3468 = vrot.lane.b32.xlu0 %v3336_v50, %s7436_s30  ;;  %s7494_s26 = smov 88   ;;  %s7497_s30 = smov 72  }
 0xbfe   : > { %3406 = vrot.lane.b32.xlu2 %v3336_v50, %s7482_s7 }
 0xc00   : > { %v3500_v6 = vpop.permute.xlu0 %3499 }
 0xc05   : > { %5964 = vrot.lane.b32.xlu1 %v5958_v59, %s7483_s3  ;;  %3530 = vrot.lane.b32.xlu0 %v3336_v50, %s7484_s1  ;;  %v3654_v50 = vld [vmem:[#allocation10 + $0xb8] sm:$0xff]  ;;  %s7495_s1 = smov 109  }
 0xc06   : > { %5974 = vrot.lane.b32.xlu2 %v5958_v59, %s7485_s27 }
 0xc0d   : > { %5969 = vrot.lane.b32.xlu1 %v5958_v59, %s7486_s0  ;;  %s7491_s0 = smov 120  }
 0xc0e   : > { %5979 = vrot.lane.b32.xlu2 %v5958_v59, %s7487_s19 }
 0xc15   : > { %5984 = vrot.lane.b32.xlu1 %v5958_v59, %s7468_s5  ;;  %v3645_v59 = vld [vmem:[#allocation10 + $0x70] sm:$0xff]  ;;  %s7489_s5 = smov 19  }
 0xc16   : > { %3624 = vperm.xlu2 %5907, %v3338_v60   ;;  %v3640_v60 = vld [vmem:[#allocation10 + $0x48] sm:$0xff] }
 0xc50   : > { %v5950_v62 = vpop.permute.xlu2 %5949 }
 0xc51   : > { %v5951_v63 = vunpack.i.l.bf16 %v5950_v62  ;;  %v5952_v0 = vunpack.i.h.bf16 %v5950_v62  ;;  %v3642_v62 = vld [vmem:[#allocation10 + $0x58] sm:$0xff] }
 0xc53   : > { %3378 = vmatpush.msrb.mxu2 %v5951_v63  ;;  %v3637_v63 = vld [vmem:[#allocation10 + $0x30] sm:$0xff] }
 0xc55   : > { %3379 = vmatpush.msrb.mxu2 %v5952_v0  ;;  %v3638_v0 = vld [vmem:[#allocation10 + $0x38] sm:$0xff] }
 0xc56   : > { %5610 = vmatmul.msk.f32.vlgmr.msrb.gmra.mxu2 %vm931_vm4, %v3353_v1  ;;  %v3639_v1 = vld [vmem:[#allocation10 + $0x40] sm:$0xff] }
 0xc58   : > { %v3407_v3 = vpop.permute.xlu2 %3406 }
 0xc60   : > { %v5975_v7 = vpop.permute.xlu2 %5974 }
 0xc61   : > { %v5976_v17 = vunpack.i.l.bf16 %v5975_v7  ;;  %v5977_v20 = vunpack.i.h.bf16 %v5975_v7  ;;  %v3636_v7 = vld [vmem:[#allocation10 + $0x28] sm:$0xff] }
 0xc67   : > { %v5955_v8 = vpop.permute.xlu1 %5954  ;;  %v5960_v9 = vpop.permute.xlu0 %5959 }
 0xc68   : > { %v5956_v10 = vunpack.i.l.bf16 %v5955_v8  ;;  %v5980_v11 = vpop.permute.xlu2 %5979  ;;  %v5961_v12 = vunpack.i.l.bf16 %v5960_v9  ;;  %v5957_v14 = vunpack.i.h.bf16 %v5955_v8  ;;  %v5962_v15 = vunpack.i.h.bf16 %v5960_v9  ;;  %v3631_v8 = vld [vmem:[#allocation10] sm:$0xff]  ;;  %v3632_v9 = vld [vmem:[#allocation10 + $0x8] sm:$0xff] }
 0xc69   : > { %v5981_v16 = vunpack.i.l.bf16 %v5980_v11  ;;  %v5982_v19 = vunpack.i.h.bf16 %v5980_v11 }
 0xc6a   : > { %3430 = vmatpush.msra.mxu1 %v5961_v12  ;;  %3461 = vmatpush.msra.mxu2 %v5956_v10  ;;  %v3633_v10 = vld [vmem:[#allocation10 + $0x10] sm:$0xff] }
 0xc6c   : > { %3431 = vmatpush.msra.mxu1 %v5962_v15  ;;  %3462 = vmatpush.msra.mxu2 %v5957_v14 }
 0xc6d   : > { %5615 = vmatmul.msk.f32.vlgmr.msra.gmra.mxu2 %vm931_vm4, %v3438_v61  ;;  %5614 = vmatmul.msk.f32.vlgmr.msra.gmra.mxu1 %vm931_vm4, %v3407_v3  ;;  %v3641_v61 = vld [vmem:[#allocation10 + $0x50] sm:$0xff]  ;;  %v3634_v3 = vld [vmem:[#allocation10 + $0x18] sm:$0xff] }
 0xc6e   : > { %3554 = vmatpush.msrb.mxu1 %v5981_v16  ;;  %3585 = vmatpush.msrb.mxu2 %v5976_v17 }
 0xc6f   : > { %v3562_v21 = vpop.permute.xlu1 %3561  ;;  %v3469_v23 = vpop.permute.xlu0 %3468 }
 0xc70   : > { %3555 = vmatpush.msrb.mxu1 %v5982_v19  ;;  %3586 = vmatpush.msrb.mxu2 %v5977_v20 }
 0xc72   : > { %5623 = vmatpush.msk.msra.mxu1 %vm1259_vm9, %v3668_v36  ;;  %5625 = vmatpush.msk.msra.mxu2 %vm1259_vm9, %v3669_v37 }
 0xc73   : > { %v3403_v12 = vpop.f32.mrf.mxu0 }
 0xc74   : > { %3706 = vmatpush.msra.mxu1 %v3665_v40  ;;  %3726 = vmatpush.msra.mxu2 %v3666_v41 }
 0xc75   : > { %5619 = vmatmul.msk.f32.vlgmr.msrb.gmra.mxu2 %vm931_vm4, %v3562_v21 }
 0xc76   : > { %3707 = vmatpush.msra.mxu1 %v3662_v26  ;;  %3727 = vmatpush.msra.mxu2 %v3663_v30 }
 0xc77   : > { %v5965_v24 = vpop.permute.xlu1 %5964  ;;  %v3531_v25 = vpop.permute.xlu0 %3530 }
 0xc78   : > { %v5966_v27 = vunpack.i.l.bf16 %v5965_v24  ;;  %5618 = vmatmul.msk.f32.vlgmr.msrb.gmra.mxu1 %vm931_vm4, %v3531_v25  ;;  %v5967_v28 = vunpack.i.h.bf16 %v5965_v24  ;;  %3728 = vmatpush.msra.mxu2 %v3660_v44 }
 0xc79   : > { %3708 = vmatpush.msra.mxu1 %v3659_v38 }
 0xc7a   : > { %3523 = vmatpush.msrb.mxu3 %v5966_v27  ;;  %3729 = vmatpush.msra.mxu2 %v3657_v47 }
 0xc7b   : > { %3709 = vmatpush.msra.mxu1 %v3656_v46  ;;  %v3743_v46 = vld [vmem:[%s7366_s14] sm:$0xf] }
 0xc7c   : > { %3524 = vmatpush.msrb.mxu3 %v5967_v28  ;;  %3730 = vmatpush.msra.mxu2 %v3654_v50 }
 0xc7d   : > { %5617 = vmatmul.msk.f32.vlgmr.msrb.gmra.mxu3 %vm931_vm4, %v3500_v6  ;;  %3710 = vmatpush.msra.mxu1 %v3653_v49  ;;  %v3635_v6 = vld [vmem:[#allocation10 + $0x20] sm:$0xff] }
 0xc7e   : > { %5621 = vmatpush.msk.msra.mxu3 %vm1259_vm9, %v3667_v35  ;;  %3731 = vmatpush.msra.mxu2 %v3651_v53 }
 0xc7f   : > { %v5970_v18 = vpop.permute.xlu1 %5969  ;;  %3711 = vmatpush.msra.mxu1 %v3650_v52 }
 0xc80   : > { %v5971_v29 = vunpack.i.l.bf16 %v5970_v18  ;;  %v5972_v31 = vunpack.i.h.bf16 %v5970_v18  ;;  %3686 = vmatpush.msra.mxu3 %v3664_v39  ;;  %3732 = vmatpush.msra.mxu2 %v3648_v56  ;;  %v3742_v39 = vld [vmem:[%s7490_s13] sm:$0xf] }
 0xc81   : > { %3712 = vmatpush.msra.mxu1 %v3647_v55 }
 0xc82   : > { %3492 = vmatpush.msra.mxu0 %v5971_v29  ;;  %3687 = vmatpush.msra.mxu3 %v3661_v42 }
 0xc83   : > { %3713 = vmatpush.msra.mxu1 %v3644_v58  ;;  %3733 = vmatpush.msra.mxu2 %v3645_v59 }
 0xc84   : > { %3493 = vmatpush.msra.mxu0 %v5972_v31  ;;  %3688 = vmatpush.msra.mxu3 %v3658_v43 }
 0xc85   : > { %5616 = vmatmul.msk.f32.vlgmr.msra.gmra.mxu0 %vm931_vm4, %v3469_v23  ;;  %3714 = vmatpush.msra.mxu1 %v3641_v61 }
 0xc86   : > { %3689 = vmatpush.msra.mxu3 %v3655_v45  ;;  %3734 = vmatpush.msra.mxu2 %v3642_v62 }
 0xc87   : > { %v5985_v32 = vpop.permute.xlu1 %5984  ;;  %3715 = vmatpush.msra.mxu1 %v3638_v0 }
 0xc88   : > { %v5986_v22 = vunpack.i.l.bf16 %v5985_v32  ;;  %v5987_v33 = vunpack.i.h.bf16 %v5985_v32  ;;  %3690 = vmatpush.msra.mxu3 %v3652_v48  ;;  %3735 = vmatpush.msra.mxu2 %v3639_v1  ;;  %v3625_v32 = vpop.permute.xlu2 %3624 }
 0xc89   : > { %3716 = vmatpush.msra.mxu1 %v3635_v6 }
 0xc8a   : > { %3615 = vmatpush.msrb.mxu0 %v5986_v22  ;;  %3691 = vmatpush.msra.mxu3 %v3649_v51 }
 0xc8b   : > { %3736 = vmatpush.msra.mxu2 %v3636_v7  ;;  %3717 = vmatpush.msra.mxu1 %v3632_v9 }
 0xc8c   : > { %3616 = vmatpush.msrb.mxu0 %v5987_v33  ;;  %3692 = vmatpush.msra.mxu3 %v3646_v54 }
 0xc8d   : > { %5620 = vmatmul.msk.f32.vlgmr.msrb.gmra.mxu0 %vm931_vm4, %v3337_v34  ;;  %3737 = vmatpush.msra.mxu2 %v3633_v10 }
 0xc8e   : > { %3693 = vmatpush.msra.mxu3 %v3643_v57 }
 0xc90   : > { %3694 = vmatpush.msra.mxu3 %v3640_v60 }
 0xc92   : > { %3695 = vmatpush.msra.mxu3 %v3637_v63 }
 0xc94   : > { %3696 = vmatpush.msra.mxu3 %v3634_v3 }
 0xc96   : > { %3697 = vmatpush.msra.mxu3 %v3631_v8 }
 0xcd9   : > { %v3381_v11 = vpop.f32.mrf.mxu2 }
 0xcda   : > { %v3404_v14 = vadd.f32 %v3403_v12, %v3381_v11 }
 0xcea   : > { %v3433_v15 = vpop.f32.mrf.mxu1 }
 0xceb   : > { %v3436_v16 = vadd.f32 %v3433_v15, %v3404_v14 }
 0xcf0   : > { %v3464_v17 = vpop.f32.mrf.mxu2 }
 0xcf1   : > { %v3467_v19 = vadd.f32 %v3464_v17, %v3436_v16 }
 0xcf5   : > { %v3557_v24 = vpop.f32.mrf.mxu1 }
 0xcf8   : > { %v3588_v28 = vpop.f32.mrf.mxu2 }
 0xd00   : > { %v3526_v23 = vpop.f32.mrf.mxu3 }
 0xd02   : > { %v3495_v20 = vpop.f32.mrf.mxu0 }
 0xd03   : > { %v3498_v21 = vadd.f32 %v3495_v20, %v3467_v19 }
 0xd05   : > { %v3529_v25 = vadd.f32 %v3526_v23, %v3498_v21 }
 0xd07   : > { %v3560_v27 = vadd.f32 %v3557_v24, %v3529_v25 }
 0xd09   : > { %v3591_v18 = vadd.f32 %v3588_v28, %v3560_v27 }
 0xd0a   : > { %v3618_v29 = vpop.f32.mrf.mxu0 }
 0xd0b   : > { %v3621_v31 = vadd.f32 %v3618_v29, %v3591_v18 }
 0xd0d   : > { %v3627_v22 = vadd.f32 %v3625_v32, %v3621_v31 }
 0xd0f   : > { %vm3628_vm6 = vcmp.ge.f32.partialorder %v3627_v22, 0.0  ;;  %v3629_v33 = vmul.f32 0.01, %v3627_v22 }
 0xd11   : > { %v3630_v34 = vsel %vm3628_vm6, %v3627_v22, %v3629_v33  ;;  %vm7508_vm6 = vmmov %vm7507_vm15 }
 0xd12   : > { %5622 = vmatmul.msk.f32.vlgmr.msra.gmra.mxu3 %vm2446_vm0, %v3630_v34  ;;  %5624 = vmatmul.msk.f32.vlgmr.msra.gmra.mxu1 %vm2446_vm0, %v3630_v34 }
 0xd13   : > { %5626 = vmatmul.msk.f32.vlgmr.msra.gmra.mxu2 %vm2446_vm0, %v3630_v34  ;;  %vm5630_vm0 = vmneg %vm851_vm3 }
 0xd8f   : > { %v3719_v35 = vpop.f32.mrf.mxu1 }
 0xd90   : > { %3749 = vrot.lane.b32.xlu1 %v3719_v35, %s7489_s5 }
 0xd95   : > { %v3699_v36 = vpop.f32.mrf.mxu3 }
 0xd96   : > { %v3739_v37 = vpop.f32.mrf.mxu2  ;;  %3747 = vrot.lane.b32.xlu0 %v3699_v36, %s7489_s5 }
 0xd97   : > { %3751 = vrot.lane.b32.xlu2 %v3739_v37, %s7489_s5 }
 0xd98   : > { %3761 = vrot.lane.b32.xlu1 %v3742_v39, %s7491_s0 }
 0xda0   : > { %3978 = vrot.lane.b32.xlu1 %v3742_v39, %s7492_s25 }
 0xdf1   : > { %v3752_v40 = vpop.permute.xlu2 %3751 }
 0xe02   : > { %v3750_v41 = vpop.permute.xlu1 %3749 }
 0xe03   : > { %v3754_v42 = vsel %vm851_vm3, %v3750_v41, %v3752_v40 }
 0xe04   : > { %v3759_v26 = vsel %vm986_vm11, %v3754_v42, 0.0  ;;  %5634 = vmatpush.msk.msrb.mxu2 %vm986_vm11, %v3754_v42 }
 0xe05   : > { %3906 = vrot.lane.b32.xlu1 %v3759_v26, %s7472_s8  ;;  %3769 = vrot.lane.b32.xlu2 %v3759_v26, %s7473_s9 }
 0xe06   : > { %5635 = vmatmul.msk.f32.vlgmr.msrb.gmra.mxu2 %vm2108_vm2, %v3742_v39 }
 0xe08   : > { %v3748_v30 = vpop.permute.xlu0 %3747 }
 0xe09   : > { %v3753_v43 = vsel %vm851_vm3, %v3748_v30, %v3750_v41  ;;  %v3758_v38 = vsel %vm851_vm3, 0.0, %v3748_v30  ;;  %5631 = vmatpush.msk.msrb.mxu3 %vm5630_vm0, %v3748_v30  ;;  %vm7509_vm0 = vmmov %vm7506_vm10 }
 0xe0a   : > { %3875 = vmatpush.msrb.mxu1 %v3753_v43  ;;  %v5988_v44 = vpack.i.bf16 %v3753_v43, %v3758_v38  ;;  %5632 = vmatmul.msk.f32.vlgmr.msrb.gmra.mxu3 %vm2108_vm2, %v3742_v39  ;;  %v6008_v45 = vpack.i.bf16 %v3759_v26, %v3753_v43  ;;  %v3762_v48 = vpop.permute.xlu1 %3761 }
 0xe0b   : > { %5633 = vmatmul.msk.f32.vlgmr.msrb.gmra.mxu1 %vm2108_vm2, %v3742_v39 }
 0xe0c   : > { %5989 = vrot.lane.b32.xlu0 %v5988_v44, %s7473_s9 }
 0xe0d   : > { %4056 = vrot.lane.b32.xlu1 %v3742_v39, %s7482_s7  ;;  %5999 = vrot.lane.b32.xlu2 %v5988_v44, %s7493_s29 }
 0xe12   : > { %v3979_v53 = vpop.permute.xlu1 %3978 }
 0xe14   : > { %5994 = vrot.lane.b32.xlu0 %v5988_v44, %s7472_s8 }
 0xe15   : > { %4134 = vrot.lane.b32.xlu1 %v3742_v39, %s7494_s26  ;;  %4058 = vrot.lane.b32.xlu2 %v3758_v38, %s7495_s1  ;;  %s7499_s26 = smov 64  }
 0xe1c   : > { %3900 = vrot.lane.b32.xlu0 %v3742_v39, %s7480_s11 }
 0xe1d   : > { %4218 = vrot.lane.b32.xlu1 %v3759_v26, %s7496_s4  ;;  %3984 = vrot.lane.b32.xlu2 %v3759_v26, %s7493_s29 }
 0xe24   : > { %6004 = vrot.lane.b32.xlu0 %v5988_v44, %s7487_s19 }
 0xe25   : > { %4140 = vrot.lane.b32.xlu2 %v3759_v26, %s7487_s19  ;;  %4290 = vrot.lane.b32.xlu1 %v3742_v39, %s7497_s30  ;;  %s7512_s30 = smov 124  }
 0xe2c   : > { %6009 = vrot.lane.b32.xlu0 %v6008_v45, %s7495_s1 }
 0xe2d   : > { %6019 = vrot.lane.b32.xlu2 %v5988_v44, %s7498_s2  ;;  %4368 = vrot.lane.b32.xlu1 %v3742_v39, %s7499_s26  ;;  %s6323_s26 = smov 95  }
 0xe34   : > { %6014 = vrot.lane.b32.xlu0 %v5988_v44, %s7496_s4 }
 0xe35   : > { %4296 = vrot.lane.b32.xlu2 %v3759_v26, %s7498_s2 }
 0xe3c   : > { %4212 = vrot.lane.b32.xlu0 %v3742_v39, %s7500_s10  ;;  %s5713_s10 = sshll.u32 %s7554_s6, 3 }
 0xe3d   : > { %4370 = vrot.lane.b32.xlu2 %v3758_v38, %s7501_s12 }
 0xe44   : > { %6024 = vrot.lane.b32.xlu0 %v6008_v45, %s7501_s12 }
 0xe4c   : > { %4448 = vperm.xlu0 %5866, %v3743_v46  }
 0xe5f   : > { %v3770_v47 = vpop.permute.xlu2 %3769 }
 0xe67   : > { %v6000_v49 = vpop.permute.xlu2 %5999 }
 0xe68   : > { %v6002_v50 = vunpack.i.h.bf16 %v6000_v49  ;;  %v6001_v51 = vunpack.i.l.bf16 %v6000_v49 }
 0xe6a   : > { %v3986_v52 = vsel %vm1068_vm14, %v6001_v51, %v6002_v50 }
 0xe6b   : > { %4008 = vmatpush.msra.mxu2 %v3986_v52 }
 0xe6c   : > { %5639 = vmatmul.msk.f32.vlgmr.msra.gmra.mxu2 %vm2108_vm2, %v3979_v53 }
 0xe6f   : > { %v4059_v58 = vpop.permute.xlu2 %4058 }
 0xe77   : > { %v3907_v54 = vpop.permute.xlu1 %3906  ;;  %v3985_v3 = vpop.permute.xlu2 %3984 }
 0xe78   : > { %3970 = vmatpush.msra.mxu1 %v3907_v54  ;;  %v3987_v8 = vsel %vm1068_vm14, %v6002_v50, %v3985_v3 }
 0xe7e   : > { %v5990_v55 = vpop.permute.xlu0 %5989 }
 0xe7f   : > { %v5992_v56 = vunpack.i.h.bf16 %v5990_v55  ;;  %v5991_v57 = vunpack.i.l.bf16 %v5990_v55  ;;  %v4057_v7 = vpop.permute.xlu1 %4056  ;;  %v4141_v9 = vpop.permute.xlu2 %4140 }
 0xe81   : > { %v3771_v59 = vsel %vm1018_vm12, %v5991_v57, %v5992_v56  ;;  %v3772_v60 = vsel %vm1018_vm12, %v5992_v56, %v3770_v47 }
 0xe82   : > { %3793 = vmatpush.msra.mxu0 %v3771_v59 }
 0xe83   : > { %5627 = vmatmul.msk.f32.vlgmr.msra.gmra.mxu0 %vm2108_vm2, %v3762_v48 }
 0xe84   : > { %3813 = vmatpush.msrb.mxu0 %v3772_v60 }
 0xe86   : > { %3833 = vmatpush.msra.mxu0 %v3770_v47  ;;  %v5995_v61 = vpop.permute.xlu0 %5994 }
 0xe87   : > { %v5997_v62 = vunpack.i.h.bf16 %v5995_v61  ;;  %v5996_v63 = vunpack.i.l.bf16 %v5995_v61  ;;  %v4135_v15 = vpop.permute.xlu1 %4134  ;;  %v6020_v16 = vpop.permute.xlu2 %6019 }
 0xe88   : > { %v6022_v21 = vunpack.i.h.bf16 %v6020_v16  ;;  %v6021_v23 = vunpack.i.l.bf16 %v6020_v16  ;;  %v3877_v46 = vpop.f32.mrf.mxu1 }
 0xe89   : > { %v3909_v0 = vsel %vm1043_vm13, %v5997_v62, %v3907_v54  ;;  %v3908_v1 = vsel %vm1043_vm13, %v5996_v63, %v5997_v62 }
 0xe8a   : > { %3950 = vmatpush.msra.mxu3 %v3909_v0  ;;  %v4298_v18 = vsel %vm7506_vm10, %v6021_v23, %v6022_v21  ;;  %vm7513_vm10 = vcmask 31744  }
 0xe8b   : > { %5628 = vmatmul.msk.f32.vlgmr.msrb.gmra.mxu0 %vm2108_vm2, %v3762_v48 }
 0xe8c   : > { %4048 = vmatpush.msrb.mxu3 %v3985_v3  ;;  %3930 = vmatpush.msrb.mxu0 %v3908_v1 }
 0xe8d   : > { %v3857_v45 = vpop.f32.mrf.mxu3 }
 0xe8e   : > { %v3901_v6 = vpop.permute.xlu0 %3900 }
 0xe8f   : > { %5637 = vmatmul.msk.f32.vlgmr.msra.gmra.mxu3 %vm2108_vm2, %v3901_v6  ;;  %5638 = vmatmul.msk.f32.vlgmr.msra.gmra.mxu1 %vm2108_vm2, %v3901_v6  ;;  %v4219_v28 = vpop.permute.xlu1 %4218  ;;  %v4297_v22 = vpop.permute.xlu2 %4296 }
 0xe90   : > { %v4299_v35 = vsel %vm7509_vm0, %v6022_v21, %v4297_v22 }
 0xe93   : > { %5629 = vmatmul.msk.f32.vlgmr.msra.gmra.mxu0 %vm2108_vm2, %v3762_v48  ;;  %v3897_v48 = vpop.f32.mrf.mxu2 }
 0xe94   : > { %4028 = vmatpush.msra.mxu0 %v3987_v8 }
 0xe96   : > { %v6005_v10 = vpop.permute.xlu0 %6004 }
 0xe97   : > { %v6007_v11 = vunpack.i.h.bf16 %v6005_v10  ;;  %v6006_v12 = vunpack.i.l.bf16 %v6005_v10  ;;  %5641 = vmatmul.msk.f32.vlgmr.msrb.gmra.mxu3 %vm2108_vm2, %v3979_v53  ;;  %v4291_v37 = vpop.permute.xlu1 %4290  ;;  %v4371_v42 = vpop.permute.xlu2 %4370 }
 0xe99   : > { %v4142_v14 = vsel %vm7502_vm7, %v6006_v12, %v6007_v11  ;;  %v4143_v27 = vsel %vm7505_vm5, %v6007_v11, %v4141_v9  ;;  %vm7510_vm7 = vcmask 736256  }
 0xe9a   : > { %4164 = vmatpush.msra.mxu3 %v4142_v14 }
 0xe9b   : > { %5636 = vmatmul.msk.f32.vlgmr.msrb.gmra.mxu0 %vm2108_vm2, %v3901_v6 }
 0xe9e   : > { %v6010_v17 = vpop.permute.xlu0 %6009 }
 0xe9f   : > { %v6012_v19 = vunpack.i.h.bf16 %v6010_v17  ;;  %v6011_v20 = vunpack.i.l.bf16 %v6010_v17  ;;  %5645 = vmatmul.msk.f32.vlgmr.msra.gmra.mxu3 %vm2108_vm2, %v4135_v15  ;;  %v4369_v26 = vpop.permute.xlu1 %4368 }
 0xea1   : > { %4126 = vmatpush.msrb.mxu0 %v6012_v19  ;;  %v4064_v24 = vsel %vm7503_vm1, %v4059_v58, %v6011_v20  ;;  %v4065_v25 = vsel %vm7504_vm8, %v6011_v20, %v6012_v19  ;;  %vm7511_vm1 = vmmov %vm7510_vm7 }
 0xea2   : > { %4086 = vmatpush.msrb.mxu1 %v4064_v24  ;;  %4106 = vmatpush.msrb.mxu2 %v4065_v25 }
 0xea3   : > { %5640 = vmatmul.msk.f32.vlgmr.msra.gmra.mxu0 %vm2108_vm2, %v3979_v53  ;;  %5642 = vmatmul.msk.f32.vlgmr.msrb.gmra.mxu1 %vm2108_vm2, %v4057_v7 }
 0xea4   : > { %5643 = vmatmul.msk.f32.vlgmr.msrb.gmra.mxu2 %vm2108_vm2, %v4057_v7  ;;  %4184 = vmatpush.msra.mxu1 %v4143_v27 }
 0xea5   : > { %4204 = vmatpush.msra.mxu2 %v4141_v9 }
 0xea6   : > { %4282 = vmatpush.msrb.mxu1 %v4219_v28  ;;  %v6015_v29 = vpop.permute.xlu0 %6014 }
 0xea7   : > { %4320 = vmatpush.msrb.mxu2 %v4298_v18  ;;  %v6017_v31 = vunpack.i.h.bf16 %v6015_v29  ;;  %v6016_v32 = vunpack.i.l.bf16 %v6015_v29 }
 0xea9   : > { %v4220_v33 = vsel %vm7507_vm15, %v6016_v32, %v6017_v31  ;;  %v4221_v34 = vsel %vm7508_vm6, %v6017_v31, %v4219_v28 }
 0xeaa   : > { %4242 = vmatpush.msra.mxu0 %v4220_v33  ;;  %4262 = vmatpush.msrb.mxu3 %v4221_v34 }
 0xeab   : > { %5644 = vmatmul.msk.f32.vlgmr.msrb.gmra.mxu0 %vm2108_vm2, %v4057_v7  ;;  %5646 = vmatmul.msk.f32.vlgmr.msra.gmra.mxu1 %vm2108_vm2, %v4135_v15 }
 0xeac   : > { %5647 = vmatmul.msk.f32.vlgmr.msra.gmra.mxu2 %vm2108_vm2, %v4135_v15  ;;  %4340 = vmatpush.msrb.mxu0 %v4299_v35 }
 0xead   : > { %4360 = vmatpush.msra.mxu3 %v4297_v22 }
 0xeae   : > { %v4213_v36 = vpop.permute.xlu0 %4212 }
 0xeaf   : > { %5649 = vmatmul.msk.f32.vlgmr.msrb.gmra.mxu3 %vm2108_vm2, %v4213_v36 }
 0xeb3   : > { %5648 = vmatmul.msk.f32.vlgmr.msra.gmra.mxu0 %vm2108_vm2, %v4213_v36  ;;  %5650 = vmatmul.msk.f32.vlgmr.msrb.gmra.mxu1 %vm2108_vm2, %v4213_v36 }
 0xeb4   : > { %5651 = vmatmul.msk.f32.vlgmr.msrb.gmra.mxu2 %vm2108_vm2, %v4291_v37 }
 0xeb6   : > { %v6025_v39 = vpop.permute.xlu0 %6024 }
 0xeb7   : > { %v6027_v40 = vunpack.i.h.bf16 %v6025_v39  ;;  %v6026_v41 = vunpack.i.l.bf16 %v6025_v39  ;;  %5653 = vmatmul.msk.f32.vlgmr.msra.gmra.mxu3 %vm2108_vm2, %v4291_v37 }
 0xeb9   : > { %4438 = vmatpush.msra.mxu0 %v6027_v40  ;;  %v4376_v30 = vsel %vm7510_vm7, %v4371_v42, %v6026_v41  ;;  %v4377_v43 = vsel %vm7511_vm1, %v6026_v41, %v6027_v40 }
 0xeba   : > { %4398 = vmatpush.msra.mxu1 %v4376_v30  ;;  %4418 = vmatpush.msra.mxu2 %v4377_v43 }
 0xebb   : > { %5652 = vmatmul.msk.f32.vlgmr.msrb.gmra.mxu0 %vm2108_vm2, %v4291_v37  ;;  %5654 = vmatmul.msk.f32.vlgmr.msra.gmra.mxu1 %vm2108_vm2, %v4369_v26 }
 0xebc   : > { %5655 = vmatmul.msk.f32.vlgmr.msra.gmra.mxu2 %vm2108_vm2, %v4369_v26 }
 0xebe   : > { %v4449_v28 = vpop.permute.xlu0 %4448 }
 0xec3   : > { %5656 = vmatmul.msk.f32.vlgmr.msra.gmra.mxu0 %vm2108_vm2, %v4369_v26 }
 0xeef   : > { %v4010_v52 = vpop.f32.mrf.mxu2 }
 0xf00   : > { %v3795_v38 = vpop.f32.mrf.mxu0 }
 0xf01   : > { %v3858_v57 = vadd.f32 %v3857_v45, %v3795_v38 }
 0xf08   : > { %v3815_v44 = vpop.f32.mrf.mxu0 }
 0xf09   : > { %v3878_v1 = vadd.f32 %v3877_v46, %v3815_v44 }
 0xf0c   : > { %v3972_v50 = vpop.f32.mrf.mxu1 }
 0xf10   : > { %v3835_v47 = vpop.f32.mrf.mxu0 }
 0xf11   : > { %v3898_v63 = vadd.f32 %v3897_v48, %v3835_v47 }
 0xf12   : > { %v3952_v49 = vpop.f32.mrf.mxu3 }
 0xf13   : > { %v3976_v8 = vadd.f32 %v3952_v49, %v3878_v1  ;;  %v3977_v10 = vadd.f32 %v3972_v50, %v3898_v63 }
 0xf18   : > { %v3932_v51 = vpop.f32.mrf.mxu0 }
 0xf19   : > { %v3975_v60 = vadd.f32 %v3932_v51, %v3858_v57 }
 0xf1a   : > { %v4050_v53 = vpop.f32.mrf.mxu3 }
 0xf1b   : > { %v4053_v62 = vadd.f32 %v4010_v52, %v3975_v60  ;;  %v4055_v14 = vadd.f32 %v4050_v53, %v3977_v10 }
 0xf20   : > { %v4030_v54 = vpop.f32.mrf.mxu0  ;;  %v4088_v55 = vpop.f32.mrf.mxu1 }
 0xf21   : > { %v4131_v3 = vadd.f32 %v4088_v55, %v4053_v62  ;;  %v4054_v11 = vadd.f32 %v4030_v54, %v3976_v8 }
 0xf22   : > { %v4166_v61 = vpop.f32.mrf.mxu3 }
 0xf23   : > { %v4209_v12 = vadd.f32 %v4166_v61, %v4131_v3 }
 0xf27   : > { %v4108_v56 = vpop.f32.mrf.mxu2 }
 0xf28   : > { %v4128_v58 = vpop.f32.mrf.mxu0  ;;  %v4186_v59 = vpop.f32.mrf.mxu1  ;;  %v4132_v15 = vadd.f32 %v4108_v56, %v4054_v11 }
 0xf29   : > { %v4133_v17 = vadd.f32 %v4128_v58, %v4055_v14 }
 0xf2a   : > { %v4210_v25 = vadd.f32 %v4186_v59, %v4132_v15 }
 0xf2f   : > { %v4206_v0 = vpop.f32.mrf.mxu2 }
 0xf30   : > { %v4244_v6 = vpop.f32.mrf.mxu0  ;;  %v4284_v7 = vpop.f32.mrf.mxu1  ;;  %v4211_v24 = vadd.f32 %v4206_v0, %v4133_v17 }
 0xf31   : > { %v4287_v16 = vadd.f32 %v4244_v6, %v4209_v12 }
 0xf32   : > { %v4264_v9 = vpop.f32.mrf.mxu3  ;;  %v4289_v32 = vadd.f32 %v4284_v7, %v4211_v24 }
 0xf33   : > { %v4288_v18 = vadd.f32 %v4264_v9, %v4210_v25 }
 0xf37   : > { %v4322_v19 = vpop.f32.mrf.mxu2 }
 0xf38   : > { %v4365_v20 = vadd.f32 %v4322_v19, %v4287_v16  ;;  %v4342_v21 = vpop.f32.mrf.mxu0  ;;  %v4400_v23 = vpop.f32.mrf.mxu1 }
 0xf39   : > { %v4366_v22 = vadd.f32 %v4342_v21, %v4288_v18 }
 0xf3a   : > { %v4443_v27 = vadd.f32 %v4400_v23, %v4365_v20  ;;  %v4362_v31 = vpop.f32.mrf.mxu3 }
 0xf3b   : > { %v4367_v34 = vadd.f32 %v4362_v31, %v4289_v32 }
 0xf3c   : > { %v4451_v29 = vadd.f32 %v4449_v28, %v4443_v27 }
 0xf3e   : > { %vm4454_vm2 = vcmp.ge.f32.partialorder %v4451_v29, 0.0  ;;  %v4457_v33 = vmul.f32 0.01, %v4451_v29 }
 0xf3f   : > { %v4420_v35 = vpop.f32.mrf.mxu2 }
 0xf40   : > { %v4460_v36 = vsel %vm4454_vm2, %v4451_v29, %v4457_v33  ;;  %v4444_v37 = vadd.f32 %v4420_v35, %v4366_v22  ;;  %v4440_v39 = vpop.f32.mrf.mxu0 }
 0xf41   : > { %v4445_v40 = vadd.f32 %v4440_v39, %v4367_v34  ;;  %v4463_v41 = vmul.f32 %v4460_v36, %v1217_v4  ;;  %v7210_v4 = vld [vmem:[%s7367_s15] sm:$0x7] }
 0xf42   : > { %v4452_v42 = vadd.f32 %v4449_v28, %v4444_v37 }
 0xf43   : > { %v4453_v26 = vadd.f32 %v4449_v28, %v4445_v40  ;;  %4471 = vrot.lane.b32.xlu1 %v4463_v41, %s7489_s5 }
 0xf44   : > { %vm4455_vm8 = vcmp.ge.f32.partialorder %v4452_v42, 0.0  ;;  %v4458_v30 = vmul.f32 0.01, %v4452_v42 }
 0xf45   : > { %vm4456_vm5 = vcmp.ge.f32.partialorder %v4453_v26, 0.0  ;;  %v4459_v43 = vmul.f32 0.01, %v4453_v26 }
 0xf46   : > { %v4461_v38 = vsel %vm4455_vm8, %v4452_v42, %v4458_v30 }
 0xf47   : > { %v4462_v44 = vsel %vm4456_vm5, %v4453_v26, %v4459_v43  ;;  %v4464_v45 = vmul.f32 %v4461_v38, %v1218_v5 }
 0xf48   : > { %v4465_v46 = vmul.f32 %v4462_v44, %v1219_v13 }
 0xf49   : > { %4473 = vrot.lane.b32.xlu2 %v4464_v45, %s7489_s5 }
 0xf4a   : > { %4475 = vrot.lane.b32.xlu0 %v4465_v46, %s7489_s5  ;;  %s6317_s5 = smov 89  }
 0xf4b   : > { %4632 = vrot.lane.b32.xlu1 %v7210_v4, %s7491_s0  ;;  %s6318_s0 = smov 87  }
 0xf51   : > { %4713 = vrot.lane.b32.xlu2 %v7210_v4, %s7483_s3  ;;  %s6314_s3 = smov 105  }
 0xf52   : > { %4484 = vrot.lane.b32.xlu0 %v7210_v4, %s7512_s30 }
 0xf5a   : > { %4794 = vrot.lane.b32.xlu0 %v7210_v4, %s7480_s11  ;;  %s7515_s11 = sld [smem:[#allocation31_spill]] }
 0xf60   : > { %v4467_v51 = vld [vmem:[%s7515_s11] sm:$0x7] }
 0xfa3   : > { %v4474_v13 = vpop.permute.xlu2 %4473 }
 0xfab   : > { %v4714_v52 = vpop.permute.xlu2 %4713 }
 0xfb5   : > { %v4472_v2 = vpop.permute.xlu1 %4471 }
 0xfb6   : > { %v4481_v5 = vsel %vm851_vm3, 0.0, %v4472_v2  ;;  %v4477_v47 = vsel %vm851_vm3, %v4472_v2, %v4474_v13 }
 0xfb7   : > { %4488 = vrot.lane.b32.xlu1 %v4481_v5, %s7473_s9  ;;  %5663 = vmatpush.msk.msrb.mxu0 %vm1259_vm9, %v4481_v5 }
 0xfb8   : > { %4715 = vrot.lane.b32.xlu0 %v4481_v5, %s7493_s29  ;;  %4634 = vrot.lane.b32.xlu2 %v4481_v5, %s7472_s8 }
 0xfb9   : > { %5664 = vmatmul.msk.f32.vlgmr.msrb.gmra.mxu0 %vm7513_vm10, %v7210_v4 }
 0xfbc   : > { %v4476_v48 = vpop.permute.xlu0 %4475 }
 0xfbd   : > { %v4478_v49 = vsel %vm851_vm3, %v4474_v13, %v4476_v48  ;;  %v4633_v56 = vpop.permute.xlu1 %4632  ;;  %vm7516_vm3 = vmmov %vm7513_vm10 }
 0xfbe   : > { %v4482_v50 = vsel %vm986_vm11, %v4478_v49, 0.0  ;;  %vm7517_vm11 = vcmask 891904   ;;  %vm7518_vm15 = vmmov %vm7516_vm3 }
 0xfbf   : > { %4796 = vrot.lane.b32.xlu1 %v4481_v5, %s7495_s1  ;;  %vm7519_vm6 = vmmov %vm7516_vm3 }
 0xfc0   : > { %4636 = vrot.lane.b32.xlu0 %v4477_v47, %s7472_s8  ;;  %4490 = vrot.lane.b32.xlu2 %v4477_v47, %s7473_s9  ;;  %vm7520_vm0 = vmmov %vm7516_vm3 }
 0xfc1   : > { %vm7521_vm7 = vmmov %vm7520_vm0 }
 0xfc2   : > { %vm7522_vm1 = vmmov %vm7520_vm0 }
 0xfc3   : > { %vm7523_vm2 = vmmov %vm7520_vm0 }
 0xfc4   : > { %v4485_v54 = vpop.permute.xlu0 %4484  ;;  %vm7526_vm8 = vmmov %vm7520_vm0 }
 0xfc5   : > { %vm7527_vm5 = vmmov %vm7520_vm0 }
 0xfc6   : > { %vm7529_vm10 = vmmov %vm7520_vm0 }
 0xfc7   : > { %4958 = vrot.lane.b32.xlu1 %v4481_v5, %s7496_s4 }
 0xfc8   : > { %4717 = vrot.lane.b32.xlu0 %v4477_v47, %s7493_s29  ;;  %4798 = vrot.lane.b32.xlu2 %v4477_v47, %s7495_s1 }
 0xfcc   : > { %v7262_v57 = vpop.permute.xlu0 %4794 }
 0xfcf   : > { %4492 = vrot.lane.b32.xlu1 %v4482_v50, %s7473_s9 }
 0xfd0   : > { %4875 = vrot.lane.b32.xlu0 %v7210_v4, %s7487_s19  ;;  %4879 = vrot.lane.b32.xlu2 %v4477_v47, %s7487_s19 }
 0xfd7   : > { %4719 = vrot.lane.b32.xlu1 %v4482_v50, %s7493_s29  ;;  %s6320_s29 = smov 85  }
 0xfd8   : > { %5037 = vrot.lane.b32.xlu0 %v7210_v4, %s7514_s16  ;;  %4638 = vrot.lane.b32.xlu2 %v4482_v50, %s7472_s8  ;;  %s7551_s16 = sld [smem:[#allocation33_spill]] }
 0xfde   : > { %s832_s8 = scalar_lea.vmem %s7551_s16, %s5713_s10 }
 0xfdf   : > { %4956 = vrot.lane.b32.xlu1 %v7210_v4, %s7492_s25  ;;  %s6319_s25 = smov 83  }
 0xfe0   : > { %4881 = vrot.lane.b32.xlu0 %v4482_v50, %s7487_s19  ;;  %4960 = vrot.lane.b32.xlu2 %v4477_v47, %s7496_s4 }
 0xfe7   : > { %4800 = vrot.lane.b32.xlu1 %v4482_v50, %s7495_s1 }
 0xfe8   : > { %4962 = vrot.lane.b32.xlu0 %v4482_v50, %s7496_s4  ;;  %4877 = vrot.lane.b32.xlu2 %v4481_v5, %s7487_s19  ;;  %s6312_s4 = smov 97   ;;  %s6316_s19 = smov 93  }
 0xfef   : > { %5041 = vrot.lane.b32.xlu1 %v4477_v47, %s7498_s2 }
 0xff0   : > { %5122 = vrot.lane.b32.xlu0 %v4477_v47, %s7501_s12  ;;  %5043 = vrot.lane.b32.xlu2 %v4482_v50, %s7498_s2 }
 0xff7   : > { %5039 = vrot.lane.b32.xlu1 %v4481_v5, %s7498_s2 }
 0xff8   : > { %5201 = vperm.xlu0 %5866, %v4467_v51   ;;  %5120 = vrot.lane.b32.xlu2 %v4481_v5, %s7501_s12 }
 0xfff   : > { %5118 = vrot.lane.b32.xlu1 %v7210_v4, %s7482_s7  ;;  %s6313_s7 = smov 103  }
0x1000   : > { %5124 = vrot.lane.b32.xlu2 %v4482_v50, %s7501_s12  ;;  %s6311_s12 = smov 101  }
0x1012   : > { %v4635_v53 = vpop.permute.xlu2 %4634 }
0x101a   : > { %v4491_v55 = vpop.permute.xlu2 %4490 }
0x1022   : > { %v4799_v58 = vpop.permute.xlu2 %4798 }
0x1029   : > { %v4489_v59 = vpop.permute.xlu1 %4488 }
0x102a   : > { %v4494_v60 = vsel %vm1018_vm12, %v4489_v59, %v4491_v55  ;;  %v4716_v61 = vpop.permute.xlu0 %4715  ;;  %v4880_v62 = vpop.permute.xlu2 %4879 }
0x102b   : > { %5657 = vmatpush.msk.msrb.mxu3 %vm1259_vm9, %v4494_v60 }
0x102c   : > { %5658 = vmatmul.msk.f32.vlgmr.msrb.gmra.mxu3 %vm7516_vm3, %v4485_v54  ;;  %vm7530_vm3 = vmmov %vm7520_vm0 }
0x102d   : > { %5665 = vmatpush.msk.msra.mxu3 %vm1259_vm9, %v4477_v47 }
0x1031   : > { %v4797_v63 = vpop.permute.xlu1 %4796 }
0x1032   : > { %v4802_v0 = vsel %vm7517_vm11, %v4797_v63, %v4799_v58  ;;  %v4637_v1 = vpop.permute.xlu0 %4636  ;;  %v4639_v3 = vpop.permute.xlu2 %4638  ;;  %vm7531_vm11 = vmmov %vm7520_vm0 }
0x1033   : > { %v4641_v6 = vsel %vm1043_vm13, %v4637_v1, %v4639_v3  ;;  %5673 = vmatpush.msk.msrb.mxu3 %vm1259_vm9, %v4639_v3  ;;  %v4640_v14 = vsel %vm1043_vm13, %v4635_v53, %v4637_v1  ;;  %vm7525_vm13 = vmmov %vm7520_vm0 }
0x1034   : > { %5671 = vmatpush.msk.msra.mxu0 %vm1259_vm9, %v4641_v6  ;;  %5666 = vmatmul.msk.f32.vlgmr.msra.gmra.mxu3 %vm7518_vm15, %v7210_v4  ;;  %vm7532_vm15 = vmmov %vm7520_vm0 }
0x1035   : > { %5672 = vmatmul.msk.f32.vlgmr.msra.gmra.mxu0 %vm7519_vm6, %v4633_v56  ;;  %5681 = vmatpush.msk.msra.mxu3 %vm1259_vm9, %v4802_v0  ;;  %vm7533_vm6 = vcmask 891904  }
0x1036   : > { %v4589_v43 = vpop.f32.mrf.mxu0 }
0x1039   : > { %v4959_v7 = vpop.permute.xlu1 %4958 }
0x103a   : > { %v4718_v8 = vpop.permute.xlu0 %4717  ;;  %v4961_v9 = vpop.permute.xlu2 %4960 }
0x103b   : > { %v4721_v15 = vsel %vm1068_vm14, %v4716_v61, %v4718_v8 }
0x103c   : > { %5674 = vmatmul.msk.f32.vlgmr.msrb.gmra.mxu3 %vm7520_vm0, %v4633_v56  ;;  %vm7534_vm0 = vcmask 752640  }
0x1041   : > { %v4493_v10 = vpop.permute.xlu1 %4492 }
0x1042   : > { %v4495_v11 = vsel %vm1018_vm12, %v4491_v55, %v4493_v10  ;;  %v4876_v12 = vpop.permute.xlu0 %4875  ;;  %5661 = vmatpush.msk.msrb.mxu2 %vm1259_vm9, %v4493_v10  ;;  %v4878_v16 = vpop.permute.xlu2 %4877  ;;  %vm7524_vm12 = vcmask 883712  }
0x1043   : > { %5659 = vmatpush.msk.msrb.mxu1 %vm1259_vm9, %v4495_v11  ;;  %5662 = vmatmul.msk.f32.vlgmr.msrb.gmra.mxu2 %vm7521_vm7, %v4485_v54  ;;  %v4883_v21 = vsel %vm7524_vm12, %v4878_v16, %v4880_v62  ;;  %vm7535_vm7 = vmmov %vm7534_vm0 }
0x1044   : > { %5669 = vmatpush.msk.msra.mxu2 %vm1259_vm9, %v4640_v14  ;;  %5660 = vmatmul.msk.f32.vlgmr.msrb.gmra.mxu1 %vm7522_vm1, %v4485_v54  ;;  %v4964_v22 = vsel %vm7535_vm7, %v4959_v7, %v4961_v9 }
0x1045   : > { %5667 = vmatpush.msk.msra.mxu1 %vm1259_vm9, %v4482_v50  ;;  %5682 = vmatmul.msk.f32.vlgmr.msra.gmra.mxu3 %vm7523_vm2, %v7262_v57  ;;  %vm7536_vm2 = vmmov %vm7522_vm1 }
0x1047   : > { %5675 = vmatpush.msk.msrb.mxu1 %vm1259_vm9, %v4721_v15 }
0x1049   : > { %v4720_v17 = vpop.permute.xlu1 %4719 }
0x104a   : > { %v4722_v19 = vsel %vm1068_vm14, %v4718_v8, %v4720_v17  ;;  %v5038_v20 = vpop.permute.xlu0 %5037  ;;  %5679 = vmatpush.msk.msrb.mxu0 %vm1259_vm9, %v4720_v17  ;;  %v5044_v23 = vpop.permute.xlu2 %5043  ;;  %vm7528_vm14 = vmmov %vm7524_vm12 }
0x104b   : > { %5670 = vmatmul.msk.f32.vlgmr.msra.gmra.mxu2 %vm7525_vm13, %v4633_v56  ;;  %5680 = vmatmul.msk.f32.vlgmr.msrb.gmra.mxu0 %vm7526_vm8, %v4714_v52  ;;  %vm7537_vm12 = vmmov %vm7522_vm1  ;;  %vm7539_vm8 = vcmask 744448  }
0x104c   : > { %5677 = vmatpush.msk.msrb.mxu2 %vm1259_vm9, %v4722_v19  ;;  %5687 = vmatpush.msk.msra.mxu0 %vm1259_vm9, %v4883_v21  ;;  %vm7538_vm13 = vmmov %vm7522_vm1 }
0x104d   : > { %5668 = vmatmul.msk.f32.vlgmr.msra.gmra.mxu1 %vm7527_vm5, %v7210_v4  ;;  %vm7540_vm5 = vcmask 736256  }
0x1051   : > { %v4957_v24 = vpop.permute.xlu1 %4956 }
0x1052   : > { %v4882_v25 = vpop.permute.xlu0 %4881  ;;  %v5121_v18 = vpop.permute.xlu2 %5120 }
0x1053   : > { %v4884_v27 = vsel %vm7528_vm14, %v4880_v62, %v4882_v25  ;;  %5678 = vmatmul.msk.f32.vlgmr.msrb.gmra.mxu2 %vm7529_vm10, %v4714_v52  ;;  %5688 = vmatmul.msk.f32.vlgmr.msra.gmra.mxu0 %vm7530_vm3, %v4876_v12  ;;  %vm7541_vm14 = vmmov %vm7522_vm1 }
0x1054   : > { %5689 = vmatpush.msk.msrb.mxu3 %vm1259_vm9, %v4884_v27  ;;  %vm7542_vm10 = vmmov %vm7522_vm1 }
0x1055   : > { %5676 = vmatmul.msk.f32.vlgmr.msrb.gmra.mxu1 %vm7531_vm11, %v4714_v52  ;;  %5690 = vmatmul.msk.f32.vlgmr.msrb.gmra.mxu3 %vm7532_vm15, %v4876_v12  ;;  %vm7543_vm3 = vmmov %vm7522_vm1 }
0x1056   : > { %vm7544_vm11 = vmmov %vm7539_vm8 }
0x1057   : > { %vm7545_vm15 = vmmov %vm7540_vm5 }
0x1059   : > { %v4801_v28 = vpop.permute.xlu1 %4800 }
0x105a   : > { %v4803_v29 = vsel %vm7533_vm6, %v4799_v58, %v4801_v28  ;;  %v4963_v31 = vpop.permute.xlu0 %4962  ;;  %5685 = vmatpush.msk.msra.mxu2 %vm1259_vm9, %v4801_v28  ;;  %v5125_v37 = vpop.permute.xlu2 %5124  ;;  %vm7546_vm6 = vmmov %vm7522_vm1 }
0x105b   : > { %v4965_v32 = vsel %vm7534_vm0, %v4961_v9, %v4963_v31  ;;  %5697 = vmatpush.msk.msra.mxu3 %vm1259_vm9, %v4963_v31  ;;  %5683 = vmatpush.msk.msra.mxu1 %vm1259_vm9, %v4803_v29  ;;  %vm7547_vm0 = vmmov %vm7522_vm1 }
0x105c   : > { %5686 = vmatmul.msk.f32.vlgmr.msra.gmra.mxu2 %vm7522_vm1, %v7262_v57  ;;  %5695 = vmatpush.msk.msrb.mxu0 %vm1259_vm9, %v4965_v32  ;;  %vm7548_vm7 = vmmov %vm7547_vm0 }
0x105d   : > { %5693 = vmatpush.msk.msrb.mxu2 %vm1259_vm9, %v4964_v22  ;;  %5684 = vmatmul.msk.f32.vlgmr.msra.gmra.mxu1 %vm7536_vm2, %v7262_v57  ;;  %vm7549_vm1 = vmmov %vm7547_vm0 }
0x105e   : > { %5691 = vmatpush.msk.msrb.mxu1 %vm1259_vm9, %v4882_v25  ;;  %5696 = vmatmul.msk.f32.vlgmr.msrb.gmra.mxu0 %vm7537_vm12, %v4957_v24  ;;  %vm7550_vm2 = vmmov %vm7547_vm0 }
0x105f   : > { %5703 = vmatpush.msk.msra.mxu0 %vm1259_vm9, %v5044_v23  ;;  %5698 = vmatmul.msk.f32.vlgmr.msra.gmra.mxu3 %vm7538_vm13, %v4957_v24 }
0x1061   : > { %v5042_v33 = vpop.permute.xlu1 %5041 }
0x1062   : > { %v5046_v34 = vsel %vm7539_vm8, %v5042_v33, %v5044_v23  ;;  %v5123_v35 = vpop.permute.xlu0 %5122 }
0x1063   : > { %v5126_v36 = vsel %vm7540_vm5, %v5121_v18, %v5123_v35  ;;  %5701 = vmatpush.msk.msra.mxu2 %vm1259_vm9, %v5046_v34  ;;  %v5127_v41 = vsel %vm7545_vm15, %v5123_v35, %v5125_v37 }
0x1064   : > { %5694 = vmatmul.msk.f32.vlgmr.msrb.gmra.mxu2 %vm7541_vm14, %v4957_v24  ;;  %5705 = vmatpush.msk.msrb.mxu3 %vm1259_vm9, %v5126_v36 }
0x1065   : > { %5692 = vmatmul.msk.f32.vlgmr.msrb.gmra.mxu1 %vm7542_vm10, %v4876_v12  ;;  %5709 = vmatpush.msk.msrb.mxu2 %vm1259_vm9, %v5125_v37 }
0x1066   : > { %5704 = vmatmul.msk.f32.vlgmr.msra.gmra.mxu0 %vm7543_vm3, %v5038_v20 }
0x1069   : > { %v5040_v39 = vpop.permute.xlu1 %5039 }
0x106a   : > { %v5045_v40 = vsel %vm7544_vm11, %v5040_v39, %v5042_v33  ;;  %v5202_v21 = vpop.permute.xlu0 %5201 }
0x106b   : > { %5699 = vmatpush.msk.msra.mxu1 %vm1259_vm9, %v5045_v40 }
0x106c   : > { %5702 = vmatmul.msk.f32.vlgmr.msra.gmra.mxu2 %vm7546_vm6, %v5038_v20 }
0x106d   : > { %5707 = vmatpush.msk.msrb.mxu1 %vm1259_vm9, %v5127_v41 }
0x106e   : > { %5700 = vmatmul.msk.f32.vlgmr.msra.gmra.mxu1 %vm7547_vm0, %v5038_v20 }
0x1071   : > { %v5119_v42 = vpop.permute.xlu1 %5118 }
0x1072   : > { %5706 = vmatmul.msk.f32.vlgmr.msrb.gmra.mxu3 %vm7548_vm7, %v5119_v42 }
0x1074   : > { %5710 = vmatmul.msk.f32.vlgmr.msrb.gmra.mxu2 %vm7549_vm1, %v5119_v42  ;;  %vm5324_vm1 = vcmask 261120  }
0x1076   : > { %5708 = vmatmul.msk.f32.vlgmr.msrb.gmra.mxu1 %vm7550_vm2, %v5119_v42  ;;  %vm5326_vm2 = vcmask 392192  }
0x10af   : > { %v4521_v26 = vpop.f32.mrf.mxu3 }
0x10b0   : > { %v4590_v52 = vadd.f32 %v4589_v43, %v4521_v26 }
0x10b2   : > { %v4687_v4 = vpop.f32.mrf.mxu0 }
0x10b7   : > { %v4609_v44 = vpop.f32.mrf.mxu3 }
0x10bf   : > { %v4707_v2 = vpop.f32.mrf.mxu3 }
0x10c1   : > { %v4541_v30 = vpop.f32.mrf.mxu1 }
0x10c2   : > { %v4610_v50 = vadd.f32 %v4609_v44, %v4541_v30 }
0x10c4   : > { %v4711_v54 = vadd.f32 %v4687_v4, %v4610_v50 }
0x10c6   : > { %v4561_v38 = vpop.f32.mrf.mxu2 }
0x10c8   : > { %v4788_v47 = vpop.f32.mrf.mxu0  ;;  %v4829_v49 = vpop.f32.mrf.mxu3 }
0x10ca   : > { %v4629_v45 = vpop.f32.mrf.mxu1 }
0x10cb   : > { %v4630_v53 = vadd.f32 %v4629_v45, %v4561_v38 }
0x10cd   : > { %v4712_v60 = vadd.f32 %v4707_v2, %v4630_v53 }
0x10ce   : > { %v4667_v46 = vpop.f32.mrf.mxu2 }
0x10cf   : > { %v4710_v56 = vadd.f32 %v4667_v46, %v4590_v52  ;;  %v4793_v0 = vadd.f32 %v4788_v47, %v4712_v60 }
0x10d0   : > { %v4910_v55 = vpop.f32.mrf.mxu0 }
0x10d2   : > { %v4748_v5 = vpop.f32.mrf.mxu1 }
0x10d3   : > { %v4791_v61 = vadd.f32 %v4748_v5, %v4710_v56 }
0x10d5   : > { %v4872_v1 = vadd.f32 %v4829_v49, %v4791_v61 }
0x10d6   : > { %v4768_v13 = vpop.f32.mrf.mxu2 }
0x10d7   : > { %v4792_v57 = vadd.f32 %v4768_v13, %v4711_v54  ;;  %v4953_v10 = vadd.f32 %v4910_v55, %v4872_v1 }
0x10d8   : > { %v4930_v59 = vpop.f32.mrf.mxu3 }
0x10da   : > { %v4849_v48 = vpop.f32.mrf.mxu1 }
0x10db   : > { %v4873_v62 = vadd.f32 %v4849_v48, %v4792_v57  ;;  %v5011_v8 = vpop.f32.mrf.mxu0 }
0x10dd   : > { %v4954_v3 = vadd.f32 %v4930_v59, %v4873_v62 }
0x10df   : > { %v4869_v51 = vpop.f32.mrf.mxu2  ;;  %v5035_v11 = vadd.f32 %v5011_v8, %v4954_v3 }
0x10e0   : > { %v4874_v6 = vadd.f32 %v4869_v51, %v4793_v0 }
0x10e2   : > { %v4950_v58 = vpop.f32.mrf.mxu1  ;;  %v5031_v9 = vpop.f32.mrf.mxu3 }
0x10e3   : > { %v4955_v12 = vadd.f32 %v4950_v58, %v4874_v6  ;;  %v5112_v24 = vpop.f32.mrf.mxu0 }
0x10e5   : > { %v5036_v17 = vadd.f32 %v5031_v9, %v4955_v12 }
0x10e7   : > { %v4991_v63 = vpop.f32.mrf.mxu2  ;;  %v5117_v18 = vadd.f32 %v5112_v24, %v5036_v17 }
0x10e8   : > { %v5034_v15 = vadd.f32 %v4991_v63, %v4953_v10 }
0x10eb   : > { %v5072_v7 = vpop.f32.mrf.mxu1 }
0x10ec   : > { %v5115_v23 = vadd.f32 %v5072_v7, %v5034_v15 }
0x10ef   : > { %v5092_v14 = vpop.f32.mrf.mxu2 }
0x10f0   : > { %v5116_v16 = vadd.f32 %v5092_v14, %v5035_v11 }
0x10f3   : > { %v5173_v19 = vpop.f32.mrf.mxu1 }
0x10f4   : > { %v5197_v20 = vadd.f32 %v5173_v19, %v5116_v16 }
0x10f5   : > { %v5153_v27 = vpop.f32.mrf.mxu3 }
0x10f6   : > { %v5205_v25 = vadd.f32 %v5202_v21, %v5197_v20  ;;  %v5196_v28 = vadd.f32 %v5153_v27, %v5115_v23 }
0x10f7   : > { %v5193_v31 = vpop.f32.mrf.mxu2 }
0x10f8   : > { %v5208_v29 = vsub.f32 0.0, %v5205_v25  ;;  %v5204_v32 = vadd.f32 %v5202_v21, %v5196_v28  ;;  %v5198_v22 = vadd.f32 %v5193_v31, %v5117_v18 }
0x10fa   : > { %v5212_v33 = vmul.f32 1.442695, %v5208_v29  ;;  %v5207_v34 = vsub.f32 0.0, %v5204_v32  ;;  %v5206_v35 = vadd.f32 %v5202_v21, %v5198_v22 }
0x10fc   : > { %v5210_v36 = vmul.f32 1.442695, %v5207_v34  ;;  %6028 = vpow2.f32 %v5212_v33  ;;  %v5209_v37 = vsub.f32 0.0, %v5206_v35 }
0x10fe   : > { %6030 = vpow2.f32 %v5210_v36  ;;  %v5214_v39 = vmul.f32 1.442695, %v5209_v37 }
0x1100   : > { %6032 = vpow2.f32 %v5214_v39 }
0x1102   : > { %v6029_v40 = vpop.eup %6028 }
0x1103   : > { %v5217_v26 = vadd.f32 1.0, %v6029_v40 }
0x1104   : > { %v6031_v41 = vpop.eup %6030 }
0x1105   : > { %v5216_v42 = vadd.f32 1.0, %v6031_v41  ;;  %v5245_v56 = vand.u32 2147483648, %v5217_v26  ;;  %vm5239_vm10 = vweird.f32 %v5217_v26  ;;  %v5243_v58 = vand.u32 2147483647, %v5217_v26 }
0x1106   : > { %v6033_v30 = vpop.eup %6032 }
0x1107   : > { %6034 = vrcp.f32 %v5216_v42  ;;  %v5218_v45 = vadd.f32 1.0, %v6033_v30  ;;  %v5230_v4 = vand.u32 2147483648, %v5216_v42  ;;  %v5228_v5 = vand.u32 2147483647, %v5216_v42 }
0x1108   : > { %6036 = vrcp.f32 %v5217_v26  ;;  %vm5224_vm13 = vweird.f32 %v5216_v42  ;;  %v5246_v60 = vor.u32 1.1754944e-38, %v5245_v56  ;;  %vm5244_vm11 = vcmp.eq.f32.partialorder %v5243_v58, 8.507059e+37 }
0x1109   : > { %6038 = vrcp.f32 %v5218_v45  ;;  %v5231_v48 = vor.u32 1.1754944e-38, %v5230_v4  ;;  %vm5229_vm5 = vcmp.eq.f32.partialorder %v5228_v5, 8.507059e+37  ;;  %v5260_v0 = vand.u32 2147483648, %v5218_v45 }
0x110a   : > { %vm5254_vm6 = vweird.f32 %v5218_v45  ;;  %v5258_v1 = vand.u32 2147483647, %v5218_v45 }
0x110b   : > { %v5261_v6 = vor.u32 1.1754944e-38, %v5260_v0 }
0x110c   : > { %vm5259_vm7 = vcmp.eq.f32.partialorder %v5258_v1, 8.507059e+37 }
0x110d   : > { %v6035_v43 = vpop.eup %6034 }
0x110e   : > { %v5220_v38 = vmul.f32 %v6035_v43, %v5216_v42  ;;  %v6037_v46 = vpop.eup %6036  ;;  %vm5225_vm12 = vweird.f32 %v6035_v43 }
0x110f   : > { %v5235_v13 = vmul.f32 %v6037_v46, %v5217_v26  ;;  %vm5226_vm8 = vmor %vm5224_vm13, %vm5225_vm12  ;;  %v6039_v52 = vpop.eup %6038  ;;  %vm5240_vm14 = vweird.f32 %v6037_v46  ;;  %vm5314_vm12 = vcmask 678912   ;;  %vm5328_vm13 = vcmask 523264  }
0x1110   : > { %v5221_v44 = vsub.f32 1.0, %v5220_v38  ;;  %v5250_v54 = vmul.f32 %v6039_v52, %v5218_v45  ;;  %vm5241_vm3 = vmor %vm5239_vm10, %vm5240_vm14  ;;  %vm5255_vm15 = vweird.f32 %v6039_v52  ;;  %vm5334_vm14 = vcmask 916480  }
0x1111   : > { %v5236_v51 = vsub.f32 1.0, %v5235_v13  ;;  %vm5256_vm0 = vmor %vm5254_vm6, %vm5255_vm15  ;;  %vm5288_vm10 = vcmask 793600  }
0x1112   : > { %v5222_v2 = vmul.f32 %v6035_v43, %v5221_v44  ;;  %v5251_v57 = vsub.f32 1.0, %v5250_v54 }
0x1113   : > { %v5237_v53 = vmul.f32 %v6037_v46, %v5236_v51 }
0x1114   : > { %v5223_v47 = vadd.f32 %v6035_v43, %v5222_v2  ;;  %v5252_v61 = vmul.f32 %v6039_v52, %v5251_v57 }
0x1115   : > { %v5238_v55 = vadd.f32 %v6037_v46, %v5237_v53 }
0x1116   : > { %v5227_v49 = vsel %vm5226_vm8, %v6035_v43, %v5223_v47  ;;  %v5253_v63 = vadd.f32 %v6039_v52, %v5252_v61  ;;  %vm5330_vm8 = vcmask 654336  }
0x1117   : > { %v5232_v50 = vsel %vm5229_vm5, %v5231_v48, %v5227_v49  ;;  %v5242_v59 = vsel %vm5241_vm3, %v6037_v46, %v5238_v55  ;;  %vm5332_vm5 = vcmask 785408  }
0x1118   : > { %5277 = vrot.lane.b32.xlu0 %v5232_v50, %s6311_s12  ;;  %5268 = vrot.lane.b32.xlu2 %v5232_v50, %s7485_s27  ;;  %v5247_v62 = vsel %vm5244_vm11, %v5246_v60, %v5242_v59  ;;  %s6315_s27 = smov 99   ;;  %v5257_v3 = vsel %vm5256_vm0, %v6039_v52, %v5253_v63 }
0x1119   : > { %5265 = vrot.lane.b32.xlu1 %v5232_v50, %s7495_s1  ;;  %v5262_v7 = vsel %vm5259_vm7, %v5261_v6, %v5257_v3  ;;  %s6322_s1 = smov 79  }
0x1120   : > { %5284 = vrot.lane.b32.xlu0 %v5232_v50, %s6312_s4  ;;  %5274 = vrot.lane.b32.xlu2 %v5232_v50, %s6313_s7 }
0x1121   : > { %5271 = vrot.lane.b32.xlu1 %v5232_v50, %s6314_s3 }
0x1128   : > { %5280 = vrot.lane.b32.xlu2 %v5232_v50, %s6315_s27  ;;  %5294 = vrot.lane.b32.xlu0 %v5247_v62, %s6316_s19 }
0x1129   : > { %5297 = vrot.lane.b32.xlu1 %v5247_v62, %s7498_s2  ;;  %s6321_s2 = smov 81  }
0x1130   : > { %5300 = vrot.lane.b32.xlu2 %v5247_v62, %s6317_s5  ;;  %5303 = vrot.lane.b32.xlu0 %v5247_v62, %s6318_s0 }
0x1131   : > { %5312 = vrot.lane.b32.xlu1 %v5262_v7, %s6319_s25 }
0x1138   : > { %5306 = vrot.lane.b32.xlu2 %v5247_v62, %s6320_s29  ;;  %5310 = vrot.lane.b32.xlu0 %v5247_v62, %s6319_s25 }
0x1139   : > { %5317 = vrot.lane.b32.xlu1 %v5262_v7, %s6321_s2 }
0x1140   : > { %5320 = vrot.lane.b32.xlu2 %v5262_v7, %s6322_s1  ;;  %5291 = vrot.lane.b32.xlu0 %v5247_v62, %s6323_s26 }
0x1141   : > { %5286 = vrot.lane.b32.xlu1 %v5247_v62, %s6312_s4 }
0x1172   : > { %v5269_v8 = vpop.permute.xlu2 %5268 }
0x117a   : > { %v5275_v9 = vpop.permute.xlu2 %5274 }
0x1182   : > { %v5281_v14 = vpop.permute.xlu2 %5280 }
0x118a   : > { %v5278_v10 = vpop.permute.xlu0 %5277  ;;  %v5301_v19 = vpop.permute.xlu2 %5300 }
0x118b   : > { %v5266_v11 = vpop.permute.xlu1 %5265 }
0x118c   : > { %v5323_v28 = vsel %vm931_vm4, %v5266_v11, %v5269_v8 }
0x1192   : > { %v5285_v12 = vpop.permute.xlu0 %5284  ;;  %v5307_v24 = vpop.permute.xlu2 %5306 }
0x1193   : > { %v5272_v15 = vpop.permute.xlu1 %5271 }
0x1194   : > { %v5325_v29 = vsel %vm5324_vm1, %v5323_v28, %v5272_v15 }
0x1195   : > { %v5327_v34 = vsel %vm5326_vm2, %v5325_v29, %v5275_v9 }
0x1196   : > { %v5329_v36 = vsel %vm5328_vm13, %v5327_v34, %v5278_v10 }
0x1197   : > { %v5331_v42 = vsel %vm5330_vm8, %v5329_v36, %v5281_v14 }
0x119a   : > { %v5295_v16 = vpop.permute.xlu0 %5294  ;;  %v5321_v37 = vpop.permute.xlu2 %5320 }
0x119b   : > { %v5298_v17 = vpop.permute.xlu1 %5297 }
0x119c   : > { %v5336_v23 = vsel %vm931_vm4, %v5295_v16, %v5298_v17 }
0x119d   : > { %v5337_v25 = vsel %vm5324_vm1, %v5336_v23, %v5301_v19 }
0x11a2   : > { %v5304_v20 = vpop.permute.xlu0 %5303 }
0x11a3   : > { %v5313_v21 = vpop.permute.xlu1 %5312  ;;  %v5338_v27 = vsel %vm5326_vm2, %v5337_v25, %v5304_v20 }
0x11a4   : > { %v5339_v31 = vsel %vm5328_vm13, %v5338_v27, %v5307_v24 }
0x11aa   : > { %v5311_v18 = vpop.permute.xlu0 %5310 }
0x11ab   : > { %v5318_v32 = vpop.permute.xlu1 %5317  ;;  %v5315_v22 = vsel %vm5314_vm12, %v5311_v18, %v5313_v21 }
0x11ac   : > { %v5340_v33 = vsel %vm5330_vm8, %v5339_v31, %v5315_v22 }
0x11ad   : > { %v5341_v35 = vsel %vm5332_vm5, %v5340_v33, %v5318_v32 }
0x11ae   : > { %v5342_v39 = vsel %vm5334_vm14, %v5341_v35, %v5321_v37 }
0x11af   : > { %v5345_v43 = vrot.slane %v5342_v39, 4 }
0x11b2   : > { %v5292_v26 = vpop.permute.xlu0 %5291 }
0x11b3   : > { %v5287_v40 = vpop.permute.xlu1 %5286 }
0x11b4   : > { %v5289_v41 = vsel %vm5288_vm10, %v5285_v12, %v5287_v40 }
0x11b5   : > { %v5333_v30 = vsel %vm5332_vm5, %v5331_v42, %v5289_v41 }
0x11b6   : > { %v5335_v38 = vsel %vm5334_vm14, %v5333_v30, %v5292_v26 }
0x11b7   : > { %v5346_v44 = vsel %vm1259_vm9, %v5335_v38, %v5345_v43 }
0x11b8   : > { %5348 = vst [vmem:[%s832_s8] sm:$0x77] %v5346_v44 }
0x11b9 PF: > { %s7552_s9 = sld [smem:[#allocation16_spill]] }
0x11bf   : > { %s38_s5 = sadd.s32 1, %s7552_s9  }
0x11c0   : > { %p35_p7 = scmp.ge.s32.totalorder %s38_s5, 4  }
0x11c2   :  { %37 = sbr.rel (!%p35_p7) target bundleno = 22 (0x16), region = 171 }
0x11c7   :  { %5370 = vsyncpa [#allocation3], 1 }
0x11c8   :  { %5372 = vsyncpa [#allocation3 + $0x1], 1 }
0x11c9   :  { %5373 = vsyncpa [#allocation5], 1 }
0x11ca   :  { %5374 = vsyncpa [#allocation8], 1 }
0x11cb   :  { %5375 = vsyncpa [#allocation11], 1 }

</bundles_post_ra>
